<compile_context>
chip_gen: v5e
topology: v5e:2x2
jax: 0.10.0
libtpu: 0.0.40
codegen_flags: <defaults>
</compile_context>

<pallas_src>
import functools

import numpy as np

import jax
import jax.numpy as jnp
from jax.experimental import pallas as pl
from jax.experimental.pallas import tpu as pltpu


def _genclean_kernel(x_ref, y_ref, m_ref, w1_ref, b1_ref, w2h_ref, w2y_ref,
                     b2_ref, w3_ref, b3_ref, o_ref,
                     h_scr, yc_scr, patch_scr, *, F, n_mid, shifts):
    """Fused GenClean forward for one grid step (a group of images on lanes).

    Activation layout: (channels, L) — channels on the sublane axis, the
    flattened (and possibly batch-folded / lane-padded) spatial dim on lanes.

    x_ref, y_ref : (1, 1, L)    input / match image(s), C == 1
    m_ref        : (8, L)       precomputed border masks (non-centre taps)
    w1_ref       : (9, F, 1)    conv1 taps  [t, cout, cin], t = kh*3 + kw
    b1_ref       : (F, 1)
    w2h_ref      : (F, 9*F)     conv2 taps for the h channels (bfloat16)
    w2y_ref      : (9, F, 1)    conv2 taps for the y channel
    b2_ref       : (F, 1)
    w3_ref       : (F, 1)       1x1 conv3 [cin, cout=1]
    b3_ref       : (1, 1)
    o_ref        : (1, 1, L)
    scratch      : h_scr (F, L) f32, yc_scr (F, L) f32, patch_scr (9F, L) bf16
    """
    f32 = jnp.float32
    bf16 = jnp.bfloat16
    L = x_ref.shape[-1]

    def tap(v, t):
        """Shifted + zero-padded copy of v (c, L) for 3x3 tap t (f32)."""
        u = v if shifts[t] == 0 else pltpu.roll(v, shift=shifts[t], axis=1)
        if t == 4:                       # centre tap: no mask needed
            return u
        mrow = t if t < 4 else t - 1
        return u * m_ref[pl.ds(mrow, 1), :]          # (1, L) mask, bcast over c

    def conv_cin1(v, w_ref, b_ref):
        """3x3 conv with a single input channel: v (1, L) -> (F, L). One-time."""
        acc = jnp.zeros((F, L), f32)
        for t in range(9):
            acc = acc + w_ref[t] * tap(v, t)         # (F,1)*(1,L) outer product
        return acc + b_ref[...]

    x = x_ref[0].astype(f32)                         # (1, L)
    y = y_ref[0].astype(f32)                         # (1, L)

    # conv1 (1 -> F) + ReLU  -> resident in VMEM scratch.
    h_scr[...] = jnp.maximum(conv_cin1(x, w1_ref, b1_ref), 0.0)

    # Per-layer constant: y's contribution through conv2 (+ bias), cached.
    yc_scr[...] = conv_cin1(y, w2y_ref, b2_ref)

    # Middle layers: concat([h, y]) -> conv2 -> ReLU, with the concat folded
    # into (W2_h @ im2col(h)) + yc.  Patch and weights in bf16, f32 accumulate.
    @pl.loop(0, n_mid)
    def _(step):
        h = h_scr[...]                               # (F, L) f32
        for t in range(9):
            patch_scr[pl.ds(t * F, F), :] = tap(h, t).astype(bf16)
        acc = jax.lax.dot_general(w2h_ref[...], patch_scr[...],
                                  (((1,), (0,)), ((), ())),
                                  preferred_element_type=f32)
        h_scr[...] = jnp.maximum(acc + yc_scr[...], 0.0)

    # conv3: 1x1, F -> 1 (cross-sublane reduction over channels; one-time).
    out = jnp.sum(h_scr[...] * w3_ref[...], axis=0, keepdims=True) + b3_ref[...]
    o_ref[0] = out.astype(o_ref.dtype)


def _prep_params(params):
    """PyTorch-layout (OIHW) params -> kernel layouts (tap index t = kh*3+kw)."""
    F = params["b1"].shape[0]
    w1, w2, w3 = params["w1"], params["w2"], params["w3"]
    # conv2's input channels are ordered [h (F channels), y (1 channel)],
    # matching AddCoords: cat([input_tensor, match_tensor], dim=1).
    w2h, w2y = w2[:, :F], w2[:, F:]
    w1_t = jnp.transpose(w1, (2, 3, 0, 1)).reshape(9, F, 1)        # [t, co, ci]
    w2y_t = jnp.transpose(w2y, (2, 3, 0, 1)).reshape(9, F, 1)      # [t, co, ci]
    w2h_m = (jnp.transpose(w2h, (0, 2, 3, 1))                      # [co, t*F+ci]
             .reshape(F, 9 * F).astype(jnp.bfloat16))              # bf16 for MXU
    w3_c = w3.reshape(F, 1)                                        # [ci, co=1]
    b1 = params["b1"].reshape(F, 1)
    b2 = params["b2"].reshape(F, 1)
    b3 = params["b3"].reshape(1, 1)
    return F, w1_t, b1, w2h_m, w2y_t, b2, w3_c, b3


def _default_shards(N):
    """How many grid steps to use: 1 on single-TC chips (fold whole batch into
    lanes), up to 2 on v7x so both TensorCores get an image group."""
    try:
        kind = jax.devices()[0].device_kind.lower()
    except Exception:
        kind = ""
    cores = 2 if ("v7" in kind or "7x" in kind) else 1
    return cores if (cores > 1 and N % cores == 0) else 1


def gen_clean_forward(x_nchw, y_nchw, params, num_of_layers=10):
    """GenClean.forward.  x, y: (N, 1, H, W) float32 -> (N, 1, H, W)."""
    N, C, H, W = x_nchw.shape
    assert C == 1, "GenClean hard-codes conv2 in_channels=33 (=> channels must be 1)"
    HW = H * W

    shards = _default_shards(N)
    nimg = N // shards                       # images folded into lanes per step
    L = nimg * HW
    Lp = ((L + 127) // 128) * 128            # lane-dense padding (no-op here)

    F, w1_t, b1, w2h_m, w2y_t, b2, w3_c, b3 = _prep_params(params)

    def fold(a):                             # (N,1,H,W) -> (shards, 1, Lp)
        a = a.reshape(shards, L)
        if Lp != L:
            a = jnp.pad(a, ((0, 0), (0, Lp - L)))
        return a.reshape(shards, 1, Lp)

    x = fold(x_nchw)
    y = fold(y_nchw)

    # Host-side: per-tap lane shifts + zero-padding border masks.  row/col are
    # taken from lane % HW so every cross-image (and into-the-lane-pad) wrap of
    # the roll is zeroed by the mask.
    lane = np.arange(Lp)
    pix = lane % HW
    row, col = pix // W, pix % W
    in_img = lane < L
    mask_rows, shifts = [], []
    for kh in range(3):
        for kw in range(3):
            dh, dw = kh - 1, kw - 1
            shifts.append(int((-(dh * W + dw)) % Lp))
            if dh == 0 and dw == 0:
                continue
            valid = ((row + dh >= 0) & (row + dh < H) &
                     (col + dw >= 0) & (col + dw < W) & in_img)
            mask_rows.append(valid.astype(np.float32))
    masks = jnp.asarray(np.stack(mask_rows))                       # (8, Lp)

    kernel = functools.partial(_genclean_kernel, F=F,
                               n_mid=num_of_layers - 2, shifts=tuple(shifts))

    io_spec = pl.BlockSpec((1, 1, Lp), lambda n: (n, 0, 0))
    c2 = lambda n: (0, 0)
    c3 = lambda n: (0, 0, 0)

    out = pl.pallas_call(
        kernel,
        out_shape=jax.ShapeDtypeStruct((shards, 1, Lp), x_nchw.dtype),
        grid=(shards,),
        in_specs=[
            io_spec,                                   # x
            io_spec,                                   # y
            pl.BlockSpec((8, Lp), c2),                 # border masks
            pl.BlockSpec((9, F, 1), c3),               # w1
            pl.BlockSpec((F, 1), c2),                  # b1
            pl.BlockSpec((F, 9 * F), c2),              # w2 (h part, bf16)
            pl.BlockSpec((9, F, 1), c3),               # w2 (y part)
            pl.BlockSpec((F, 1), c2),                  # b2
            pl.BlockSpec((F, 1), c2),                  # w3
            pl.BlockSpec((1, 1), c2),                  # b3
        ],
        out_specs=io_spec,
        scratch_shapes=[
            pltpu.VMEM((F, Lp), jnp.float32),          # h (running feature map)
            pltpu.VMEM((F, Lp), jnp.float32),          # yc (cached y-term + b2)
            pltpu.VMEM((9 * F, Lp), jnp.bfloat16),     # im2col patch
        ],
        compiler_params=pltpu.CompilerParams(
            dimension_semantics=("parallel",)),
    )(x, y, masks, w1_t, b1, w2h_m, w2y_t, b2, w3_c, b3)

    return out[:, 0, :L].reshape(N, C, H, W)


def init_params(key, channels=1, features=32):
    """Deterministic synthetic parameters in PyTorch Conv2d (OIHW) layout."""
    assert channels == 1
    ks = jax.random.split(key, 6)

    def winit(k, cout, cin, kh, kw):
        fan_in = float(cin * kh * kw)
        return jax.random.normal(k, (cout, cin, kh, kw), jnp.float32) / (fan_in ** 0.5)

    return {
        "w1": winit(ks[0], features, channels, 3, 3),             # conv1
        "b1": 0.01 * jax.random.normal(ks[1], (features,), jnp.float32),
        "w2": winit(ks[2], features, features + channels, 3, 3),  # conv2 (Cin=33)
        "b2": 0.01 * jax.random.normal(ks[3], (features,), jnp.float32),
        "w3": winit(ks[4], channels, features, 1, 1),             # conv3 (1x1)
        "b3": 0.01 * jax.random.normal(ks[5], (channels,), jnp.float32),
    }


def _reference_forward(x, y, params, num_of_layers=10):
    """Pure-JAX reference mirroring the PyTorch module (for verification)."""
    def conv(inp, w, b, pad):
        out = jax.lax.conv_general_dilated(
            inp, w, window_strides=(1, 1),
            padding=[(pad, pad), (pad, pad)],
            dimension_numbers=("NCHW", "OIHW", "NCHW"),
            precision=jax.lax.Precision.HIGHEST)
        return out + b.reshape(1, -1, 1, 1)

    h = jnp.maximum(conv(x, params["w1"], params["b1"], 1), 0.0)
    for _ in range(num_of_layers - 2):
        h = jnp.concatenate([h, y], axis=1)                       # AddCoords
        h = jnp.maximum(conv(h, params["w2"], params["b2"], 1), 0.0)
    return conv(h, params["w3"], params["b3"], 0)


if __name__ == "__main__":
    key = jax.random.PRNGKey(0)
    kx, ky, kp = jax.random.split(key, 3)

    N, C, H, W = 2, 1, 16, 16
    x = jax.random.normal(kx, (N, C, H, W), jnp.float32)
    y = jax.random.normal(ky, (N, C, H, W), jnp.float32)
    params = init_params(kp, channels=C, features=32)

    fwd = jax.jit(gen_clean_forward, static_argnums=(3,))
    out = fwd(x, y, params, 10)
    jax.block_until_ready(out)
    assert out.shape == (N, C, H, W), out.shape

    ref = _reference_forward(x, y, params, 10)
    err = float(jnp.max(jnp.abs(out - ref)))
    # bf16 patch/weights with f32 accumulation across 8 stacked convs.
    assert err < 5e-2, f"kernel/reference mismatch: max |err| = {err}"
    print("KERNEL_OK")
</pallas_src>

<mosaic_0001>
module attributes {stable_mosaic.version = 11 : i64} {
  func.func @_genclean_kernel(%arg0: i32, %arg1: memref<1x1x512xf32, #tpu.memory_space<vmem>>, %arg2: memref<1x1x512xf32, #tpu.memory_space<vmem>>, %arg3: memref<8x512xf32, #tpu.memory_space<vmem>>, %arg4: memref<9x32x1xf32, #tpu.memory_space<vmem>>, %arg5: memref<32x1xf32, #tpu.memory_space<vmem>>, %arg6: memref<32x288xbf16, #tpu.memory_space<vmem>>, %arg7: memref<9x32x1xf32, #tpu.memory_space<vmem>>, %arg8: memref<32x1xf32, #tpu.memory_space<vmem>>, %arg9: memref<32x1xf32, #tpu.memory_space<vmem>>, %arg10: memref<1x1xf32, #tpu.memory_space<vmem>>, %arg11: memref<1x1x512xf32, #tpu.memory_space<vmem>>, %arg12: memref<32x512xf32, #tpu.memory_space<vmem>>, %arg13: memref<32x512xf32, #tpu.memory_space<vmem>>, %arg14: memref<288x512xbf16, #tpu.memory_space<vmem>>) attributes {dimension_semantics = [#tpu.dimension_semantics<parallel>], iteration_bounds = array<i64: 1>, scalar_prefetch = 0 : i64, scratch_operands = 3 : i64, tpu.core_type = #tpu.core_type<tc>, window_params = [{transform_indices = @transform_0, window_bounds = array<i64: 1, 1, 512>}, {transform_indices = @transform_1, window_bounds = array<i64: 1, 1, 512>}, {pipeline_mode = #tpu.pipeline_mode<synchronous>, transform_indices = @transform_2, window_bounds = array<i64: 8, 512>}, {pipeline_mode = #tpu.pipeline_mode<synchronous>, transform_indices = @transform_3, window_bounds = array<i64: 9, 32, 1>}, {pipeline_mode = #tpu.pipeline_mode<synchronous>, transform_indices = @transform_4, window_bounds = array<i64: 32, 1>}, {pipeline_mode = #tpu.pipeline_mode<synchronous>, transform_indices = @transform_5, window_bounds = array<i64: 32, 288>}, {pipeline_mode = #tpu.pipeline_mode<synchronous>, transform_indices = @transform_6, window_bounds = array<i64: 9, 32, 1>}, {pipeline_mode = #tpu.pipeline_mode<synchronous>, transform_indices = @transform_7, window_bounds = array<i64: 32, 1>}, {pipeline_mode = #tpu.pipeline_mode<synchronous>, transform_indices = @transform_8, window_bounds = array<i64: 32, 1>}, {pipeline_mode = #tpu.pipeline_mode<synchronous>, transform_indices = @transform_9, window_bounds = array<i64: 1, 1>}, {transform_indices = @transform_10, window_bounds = array<i64: 1, 1, 512>}]} {
    %c0 = arith.constant 0 : index
    %c0_0 = arith.constant 0 : index
    %c0_1 = arith.constant 0 : index
    %0 = vector.load %arg1[%c0, %c0_0, %c0_1] : memref<1x1x512xf32, #tpu.memory_space<vmem>>, vector<1x1x512xf32>
    %1 = vector.shape_cast %0 : vector<1x1x512xf32> to vector<1x512xf32>
    %c0_2 = arith.constant 0 : index
    %c0_3 = arith.constant 0 : index
    %c0_4 = arith.constant 0 : index
    %2 = vector.load %arg2[%c0_2, %c0_3, %c0_4] : memref<1x1x512xf32, #tpu.memory_space<vmem>>, vector<1x1x512xf32>
    %3 = vector.shape_cast %2 : vector<1x1x512xf32> to vector<1x512xf32>
    %cst = arith.constant 0.000000e+00 : f32
    %4 = vector.broadcast %cst : f32 to vector<32x512xf32>
    %c0_5 = arith.constant 0 : index
    %c0_6 = arith.constant 0 : index
    %c0_7 = arith.constant 0 : index
    %5 = vector.load %arg4[%c0_5, %c0_6, %c0_7] : memref<9x32x1xf32, #tpu.memory_space<vmem>>, vector<1x32x1xf32>
    %6 = vector.shape_cast %5 : vector<1x32x1xf32> to vector<32x1xf32>
    %c17_i32 = arith.constant 17 : i32
    %7 = tpu.dynamic_rotate %1 by %c17_i32 dim 1 : vector<1x512xf32>, i32 -> vector<1x512xf32>
    %c0_8 = arith.constant 0 : index
    %c0_9 = arith.constant 0 : index
    %8 = vector.load %arg3[%c0_8, %c0_9] : memref<8x512xf32, #tpu.memory_space<vmem>>, vector<1x512xf32>
    %9 = arith.mulf %7, %8 : vector<1x512xf32>
    %10 = vector.broadcast %6 : vector<32x1xf32> to vector<32x512xf32>
    %11 = vector.broadcast %9 : vector<1x512xf32> to vector<32x512xf32>
    %12 = arith.mulf %10, %11 : vector<32x512xf32>
    %13 = arith.addf %4, %12 : vector<32x512xf32>
    %c1 = arith.constant 1 : index
    %c0_10 = arith.constant 0 : index
    %c0_11 = arith.constant 0 : index
    %14 = vector.load %arg4[%c1, %c0_10, %c0_11] : memref<9x32x1xf32, #tpu.memory_space<vmem>>, vector<1x32x1xf32>
    %15 = vector.shape_cast %14 : vector<1x32x1xf32> to vector<32x1xf32>
    %c16_i32 = arith.constant 16 : i32
    %16 = tpu.dynamic_rotate %1 by %c16_i32 dim 1 : vector<1x512xf32>, i32 -> vector<1x512xf32>
    %c1_12 = arith.constant 1 : index
    %c0_13 = arith.constant 0 : index
    %17 = vector.load %arg3[%c1_12, %c0_13] : memref<8x512xf32, #tpu.memory_space<vmem>>, vector<1x512xf32>
    %18 = arith.mulf %16, %17 : vector<1x512xf32>
    %19 = vector.broadcast %15 : vector<32x1xf32> to vector<32x512xf32>
    %20 = vector.broadcast %18 : vector<1x512xf32> to vector<32x512xf32>
    %21 = arith.mulf %19, %20 : vector<32x512xf32>
    %22 = arith.addf %13, %21 : vector<32x512xf32>
    %c2 = arith.constant 2 : index
    %c0_14 = arith.constant 0 : index
    %c0_15 = arith.constant 0 : index
    %23 = vector.load %arg4[%c2, %c0_14, %c0_15] : memref<9x32x1xf32, #tpu.memory_space<vmem>>, vector<1x32x1xf32>
    %24 = vector.shape_cast %23 : vector<1x32x1xf32> to vector<32x1xf32>
    %c15_i32 = arith.constant 15 : i32
    %25 = tpu.dynamic_rotate %1 by %c15_i32 dim 1 : vector<1x512xf32>, i32 -> vector<1x512xf32>
    %c2_16 = arith.constant 2 : index
    %c0_17 = arith.constant 0 : index
    %26 = vector.load %arg3[%c2_16, %c0_17] : memref<8x512xf32, #tpu.memory_space<vmem>>, vector<1x512xf32>
    %27 = arith.mulf %25, %26 : vector<1x512xf32>
    %28 = vector.broadcast %24 : vector<32x1xf32> to vector<32x512xf32>
    %29 = vector.broadcast %27 : vector<1x512xf32> to vector<32x512xf32>
    %30 = arith.mulf %28, %29 : vector<32x512xf32>
    %31 = arith.addf %22, %30 : vector<32x512xf32>
    %c3 = arith.constant 3 : index
    %c0_18 = arith.constant 0 : index
    %c0_19 = arith.constant 0 : index
    %32 = vector.load %arg4[%c3, %c0_18, %c0_19] : memref<9x32x1xf32, #tpu.memory_space<vmem>>, vector<1x32x1xf32>
    %33 = vector.shape_cast %32 : vector<1x32x1xf32> to vector<32x1xf32>
    %c1_i32 = arith.constant 1 : i32
    %34 = tpu.dynamic_rotate %1 by %c1_i32 dim 1 : vector<1x512xf32>, i32 -> vector<1x512xf32>
    %c3_20 = arith.constant 3 : index
    %c0_21 = arith.constant 0 : index
    %35 = vector.load %arg3[%c3_20, %c0_21] : memref<8x512xf32, #tpu.memory_space<vmem>>, vector<1x512xf32>
    %36 = arith.mulf %34, %35 : vector<1x512xf32>
    %37 = vector.broadcast %33 : vector<32x1xf32> to vector<32x512xf32>
    %38 = vector.broadcast %36 : vector<1x512xf32> to vector<32x512xf32>
    %39 = arith.mulf %37, %38 : vector<32x512xf32>
    %40 = arith.addf %31, %39 : vector<32x512xf32>
    %c4 = arith.constant 4 : index
    %c0_22 = arith.constant 0 : index
    %c0_23 = arith.constant 0 : index
    %41 = vector.load %arg4[%c4, %c0_22, %c0_23] : memref<9x32x1xf32, #tpu.memory_space<vmem>>, vector<1x32x1xf32>
    %42 = vector.shape_cast %41 : vector<1x32x1xf32> to vector<32x1xf32>
    %43 = vector.broadcast %42 : vector<32x1xf32> to vector<32x512xf32>
    %44 = vector.broadcast %1 : vector<1x512xf32> to vector<32x512xf32>
    %45 = arith.mulf %43, %44 : vector<32x512xf32>
    %46 = arith.addf %40, %45 : vector<32x512xf32>
    %c5 = arith.constant 5 : index
    %c0_24 = arith.constant 0 : index
    %c0_25 = arith.constant 0 : index
    %47 = vector.load %arg4[%c5, %c0_24, %c0_25] : memref<9x32x1xf32, #tpu.memory_space<vmem>>, vector<1x32x1xf32>
    %48 = vector.shape_cast %47 : vector<1x32x1xf32> to vector<32x1xf32>
    %c511_i32 = arith.constant 511 : i32
    %49 = tpu.dynamic_rotate %1 by %c511_i32 dim 1 : vector<1x512xf32>, i32 -> vector<1x512xf32>
    %c4_26 = arith.constant 4 : index
    %c0_27 = arith.constant 0 : index
    %50 = vector.load %arg3[%c4_26, %c0_27] : memref<8x512xf32, #tpu.memory_space<vmem>>, vector<1x512xf32>
    %51 = arith.mulf %49, %50 : vector<1x512xf32>
    %52 = vector.broadcast %48 : vector<32x1xf32> to vector<32x512xf32>
    %53 = vector.broadcast %51 : vector<1x512xf32> to vector<32x512xf32>
    %54 = arith.mulf %52, %53 : vector<32x512xf32>
    %55 = arith.addf %46, %54 : vector<32x512xf32>
    %c6 = arith.constant 6 : index
    %c0_28 = arith.constant 0 : index
    %c0_29 = arith.constant 0 : index
    %56 = vector.load %arg4[%c6, %c0_28, %c0_29] : memref<9x32x1xf32, #tpu.memory_space<vmem>>, vector<1x32x1xf32>
    %57 = vector.shape_cast %56 : vector<1x32x1xf32> to vector<32x1xf32>
    %c497_i32 = arith.constant 497 : i32
    %58 = tpu.dynamic_rotate %1 by %c497_i32 dim 1 : vector<1x512xf32>, i32 -> vector<1x512xf32>
    %c5_30 = arith.constant 5 : index
    %c0_31 = arith.constant 0 : index
    %59 = vector.load %arg3[%c5_30, %c0_31] : memref<8x512xf32, #tpu.memory_space<vmem>>, vector<1x512xf32>
    %60 = arith.mulf %58, %59 : vector<1x512xf32>
    %61 = vector.broadcast %57 : vector<32x1xf32> to vector<32x512xf32>
    %62 = vector.broadcast %60 : vector<1x512xf32> to vector<32x512xf32>
    %63 = arith.mulf %61, %62 : vector<32x512xf32>
    %64 = arith.addf %55, %63 : vector<32x512xf32>
    %c7 = arith.constant 7 : index
    %c0_32 = arith.constant 0 : index
    %c0_33 = arith.constant 0 : index
    %65 = vector.load %arg4[%c7, %c0_32, %c0_33] : memref<9x32x1xf32, #tpu.memory_space<vmem>>, vector<1x32x1xf32>
    %66 = vector.shape_cast %65 : vector<1x32x1xf32> to vector<32x1xf32>
    %c496_i32 = arith.constant 496 : i32
    %67 = tpu.dynamic_rotate %1 by %c496_i32 dim 1 : vector<1x512xf32>, i32 -> vector<1x512xf32>
    %c6_34 = arith.constant 6 : index
    %c0_35 = arith.constant 0 : index
    %68 = vector.load %arg3[%c6_34, %c0_35] : memref<8x512xf32, #tpu.memory_space<vmem>>, vector<1x512xf32>
    %69 = arith.mulf %67, %68 : vector<1x512xf32>
    %70 = vector.broadcast %66 : vector<32x1xf32> to vector<32x512xf32>
    %71 = vector.broadcast %69 : vector<1x512xf32> to vector<32x512xf32>
    %72 = arith.mulf %70, %71 : vector<32x512xf32>
    %73 = arith.addf %64, %72 : vector<32x512xf32>
    %c8 = arith.constant 8 : index
    %c0_36 = arith.constant 0 : index
    %c0_37 = arith.constant 0 : index
    %74 = vector.load %arg4[%c8, %c0_36, %c0_37] : memref<9x32x1xf32, #tpu.memory_space<vmem>>, vector<1x32x1xf32>
    %75 = vector.shape_cast %74 : vector<1x32x1xf32> to vector<32x1xf32>
    %c495_i32 = arith.constant 495 : i32
    %76 = tpu.dynamic_rotate %1 by %c495_i32 dim 1 : vector<1x512xf32>, i32 -> vector<1x512xf32>
    %c7_38 = arith.constant 7 : index
    %c0_39 = arith.constant 0 : index
    %77 = vector.load %arg3[%c7_38, %c0_39] : memref<8x512xf32, #tpu.memory_space<vmem>>, vector<1x512xf32>
    %78 = arith.mulf %76, %77 : vector<1x512xf32>
    %79 = vector.broadcast %75 : vector<32x1xf32> to vector<32x512xf32>
    %80 = vector.broadcast %78 : vector<1x512xf32> to vector<32x512xf32>
    %81 = arith.mulf %79, %80 : vector<32x512xf32>
    %82 = arith.addf %73, %81 : vector<32x512xf32>
    %c0_40 = arith.constant 0 : index
    %c0_41 = arith.constant 0 : index
    %83 = vector.load %arg5[%c0_40, %c0_41] : memref<32x1xf32, #tpu.memory_space<vmem>>, vector<32x1xf32>
    %84 = vector.broadcast %83 : vector<32x1xf32> to vector<32x512xf32>
    %85 = arith.addf %82, %84 : vector<32x512xf32>
    %cst_42 = arith.constant 0.000000e+00 : f32
    %86 = vector.broadcast %cst_42 : f32 to vector<32x512xf32>
    %87 = arith.maximumf %85, %86 : vector<32x512xf32>
    %c0_43 = arith.constant 0 : index
    %c0_44 = arith.constant 0 : index
    %88 = vector.load %arg12[%c0_43, %c0_44] : memref<32x512xf32, #tpu.memory_space<vmem>>, vector<32x512xf32>
    tpu.vector_store %arg12[%c0_43, %c0_44], %87 {strides = array<i32>} : memref<32x512xf32, #tpu.memory_space<vmem>>, vector<32x512xf32>,
    %cst_45 = arith.constant 0.000000e+00 : f32
    %89 = vector.broadcast %cst_45 : f32 to vector<32x512xf32>
    %c0_46 = arith.constant 0 : index
    %c0_47 = arith.constant 0 : index
    %c0_48 = arith.constant 0 : index
    %90 = vector.load %arg7[%c0_46, %c0_47, %c0_48] : memref<9x32x1xf32, #tpu.memory_space<vmem>>, vector<1x32x1xf32>
    %91 = vector.shape_cast %90 : vector<1x32x1xf32> to vector<32x1xf32>
    %c17_i32_49 = arith.constant 17 : i32
    %92 = tpu.dynamic_rotate %3 by %c17_i32_49 dim 1 : vector<1x512xf32>, i32 -> vector<1x512xf32>
    %c0_50 = arith.constant 0 : index
    %c0_51 = arith.constant 0 : index
    %93 = vector.load %arg3[%c0_50, %c0_51] : memref<8x512xf32, #tpu.memory_space<vmem>>, vector<1x512xf32>
    %94 = arith.mulf %92, %93 : vector<1x512xf32>
    %95 = vector.broadcast %91 : vector<32x1xf32> to vector<32x512xf32>
    %96 = vector.broadcast %94 : vector<1x512xf32> to vector<32x512xf32>
    %97 = arith.mulf %95, %96 : vector<32x512xf32>
    %98 = arith.addf %89, %97 : vector<32x512xf32>
    %c1_52 = arith.constant 1 : index
    %c0_53 = arith.constant 0 : index
    %c0_54 = arith.constant 0 : index
    %99 = vector.load %arg7[%c1_52, %c0_53, %c0_54] : memref<9x32x1xf32, #tpu.memory_space<vmem>>, vector<1x32x1xf32>
    %100 = vector.shape_cast %99 : vector<1x32x1xf32> to vector<32x1xf32>
    %c16_i32_55 = arith.constant 16 : i32
    %101 = tpu.dynamic_rotate %3 by %c16_i32_55 dim 1 : vector<1x512xf32>, i32 -> vector<1x512xf32>
    %c1_56 = arith.constant 1 : index
    %c0_57 = arith.constant 0 : index
    %102 = vector.load %arg3[%c1_56, %c0_57] : memref<8x512xf32, #tpu.memory_space<vmem>>, vector<1x512xf32>
    %103 = arith.mulf %101, %102 : vector<1x512xf32>
    %104 = vector.broadcast %100 : vector<32x1xf32> to vector<32x512xf32>
    %105 = vector.broadcast %103 : vector<1x512xf32> to vector<32x512xf32>
    %106 = arith.mulf %104, %105 : vector<32x512xf32>
    %107 = arith.addf %98, %106 : vector<32x512xf32>
    %c2_58 = arith.constant 2 : index
    %c0_59 = arith.constant 0 : index
    %c0_60 = arith.constant 0 : index
    %108 = vector.load %arg7[%c2_58, %c0_59, %c0_60] : memref<9x32x1xf32, #tpu.memory_space<vmem>>, vector<1x32x1xf32>
    %109 = vector.shape_cast %108 : vector<1x32x1xf32> to vector<32x1xf32>
    %c15_i32_61 = arith.constant 15 : i32
    %110 = tpu.dynamic_rotate %3 by %c15_i32_61 dim 1 : vector<1x512xf32>, i32 -> vector<1x512xf32>
    %c2_62 = arith.constant 2 : index
    %c0_63 = arith.constant 0 : index
    %111 = vector.load %arg3[%c2_62, %c0_63] : memref<8x512xf32, #tpu.memory_space<vmem>>, vector<1x512xf32>
    %112 = arith.mulf %110, %111 : vector<1x512xf32>
    %113 = vector.broadcast %109 : vector<32x1xf32> to vector<32x512xf32>
    %114 = vector.broadcast %112 : vector<1x512xf32> to vector<32x512xf32>
    %115 = arith.mulf %113, %114 : vector<32x512xf32>
    %116 = arith.addf %107, %115 : vector<32x512xf32>
    %c3_64 = arith.constant 3 : index
    %c0_65 = arith.constant 0 : index
    %c0_66 = arith.constant 0 : index
    %117 = vector.load %arg7[%c3_64, %c0_65, %c0_66] : memref<9x32x1xf32, #tpu.memory_space<vmem>>, vector<1x32x1xf32>
    %118 = vector.shape_cast %117 : vector<1x32x1xf32> to vector<32x1xf32>
    %c1_i32_67 = arith.constant 1 : i32
    %119 = tpu.dynamic_rotate %3 by %c1_i32_67 dim 1 : vector<1x512xf32>, i32 -> vector<1x512xf32>
    %c3_68 = arith.constant 3 : index
    %c0_69 = arith.constant 0 : index
    %120 = vector.load %arg3[%c3_68, %c0_69] : memref<8x512xf32, #tpu.memory_space<vmem>>, vector<1x512xf32>
    %121 = arith.mulf %119, %120 : vector<1x512xf32>
    %122 = vector.broadcast %118 : vector<32x1xf32> to vector<32x512xf32>
    %123 = vector.broadcast %121 : vector<1x512xf32> to vector<32x512xf32>
    %124 = arith.mulf %122, %123 : vector<32x512xf32>
    %125 = arith.addf %116, %124 : vector<32x512xf32>
    %c4_70 = arith.constant 4 : index
    %c0_71 = arith.constant 0 : index
    %c0_72 = arith.constant 0 : index
    %126 = vector.load %arg7[%c4_70, %c0_71, %c0_72] : memref<9x32x1xf32, #tpu.memory_space<vmem>>, vector<1x32x1xf32>
    %127 = vector.shape_cast %126 : vector<1x32x1xf32> to vector<32x1xf32>
    %128 = vector.broadcast %127 : vector<32x1xf32> to vector<32x512xf32>
    %129 = vector.broadcast %3 : vector<1x512xf32> to vector<32x512xf32>
    %130 = arith.mulf %128, %129 : vector<32x512xf32>
    %131 = arith.addf %125, %130 : vector<32x512xf32>
    %c5_73 = arith.constant 5 : index
    %c0_74 = arith.constant 0 : index
    %c0_75 = arith.constant 0 : index
    %132 = vector.load %arg7[%c5_73, %c0_74, %c0_75] : memref<9x32x1xf32, #tpu.memory_space<vmem>>, vector<1x32x1xf32>
    %133 = vector.shape_cast %132 : vector<1x32x1xf32> to vector<32x1xf32>
    %c511_i32_76 = arith.constant 511 : i32
    %134 = tpu.dynamic_rotate %3 by %c511_i32_76 dim 1 : vector<1x512xf32>, i32 -> vector<1x512xf32>
    %c4_77 = arith.constant 4 : index
    %c0_78 = arith.constant 0 : index
    %135 = vector.load %arg3[%c4_77, %c0_78] : memref<8x512xf32, #tpu.memory_space<vmem>>, vector<1x512xf32>
    %136 = arith.mulf %134, %135 : vector<1x512xf32>
    %137 = vector.broadcast %133 : vector<32x1xf32> to vector<32x512xf32>
    %138 = vector.broadcast %136 : vector<1x512xf32> to vector<32x512xf32>
    %139 = arith.mulf %137, %138 : vector<32x512xf32>
    %140 = arith.addf %131, %139 : vector<32x512xf32>
    %c6_79 = arith.constant 6 : index
    %c0_80 = arith.constant 0 : index
    %c0_81 = arith.constant 0 : index
    %141 = vector.load %arg7[%c6_79, %c0_80, %c0_81] : memref<9x32x1xf32, #tpu.memory_space<vmem>>, vector<1x32x1xf32>
    %142 = vector.shape_cast %141 : vector<1x32x1xf32> to vector<32x1xf32>
    %c497_i32_82 = arith.constant 497 : i32
    %143 = tpu.dynamic_rotate %3 by %c497_i32_82 dim 1 : vector<1x512xf32>, i32 -> vector<1x512xf32>
    %c5_83 = arith.constant 5 : index
    %c0_84 = arith.constant 0 : index
    %144 = vector.load %arg3[%c5_83, %c0_84] : memref<8x512xf32, #tpu.memory_space<vmem>>, vector<1x512xf32>
    %145 = arith.mulf %143, %144 : vector<1x512xf32>
    %146 = vector.broadcast %142 : vector<32x1xf32> to vector<32x512xf32>
    %147 = vector.broadcast %145 : vector<1x512xf32> to vector<32x512xf32>
    %148 = arith.mulf %146, %147 : vector<32x512xf32>
    %149 = arith.addf %140, %148 : vector<32x512xf32>
    %c7_85 = arith.constant 7 : index
    %c0_86 = arith.constant 0 : index
    %c0_87 = arith.constant 0 : index
    %150 = vector.load %arg7[%c7_85, %c0_86, %c0_87] : memref<9x32x1xf32, #tpu.memory_space<vmem>>, vector<1x32x1xf32>
    %151 = vector.shape_cast %150 : vector<1x32x1xf32> to vector<32x1xf32>
    %c496_i32_88 = arith.constant 496 : i32
    %152 = tpu.dynamic_rotate %3 by %c496_i32_88 dim 1 : vector<1x512xf32>, i32 -> vector<1x512xf32>
    %c6_89 = arith.constant 6 : index
    %c0_90 = arith.constant 0 : index
    %153 = vector.load %arg3[%c6_89, %c0_90] : memref<8x512xf32, #tpu.memory_space<vmem>>, vector<1x512xf32>
    %154 = arith.mulf %152, %153 : vector<1x512xf32>
    %155 = vector.broadcast %151 : vector<32x1xf32> to vector<32x512xf32>
    %156 = vector.broadcast %154 : vector<1x512xf32> to vector<32x512xf32>
    %157 = arith.mulf %155, %156 : vector<32x512xf32>
    %158 = arith.addf %149, %157 : vector<32x512xf32>
    %c8_91 = arith.constant 8 : index
    %c0_92 = arith.constant 0 : index
    %c0_93 = arith.constant 0 : index
    %159 = vector.load %arg7[%c8_91, %c0_92, %c0_93] : memref<9x32x1xf32, #tpu.memory_space<vmem>>, vector<1x32x1xf32>
    %160 = vector.shape_cast %159 : vector<1x32x1xf32> to vector<32x1xf32>
    %c495_i32_94 = arith.constant 495 : i32
    %161 = tpu.dynamic_rotate %3 by %c495_i32_94 dim 1 : vector<1x512xf32>, i32 -> vector<1x512xf32>
    %c7_95 = arith.constant 7 : index
    %c0_96 = arith.constant 0 : index
    %162 = vector.load %arg3[%c7_95, %c0_96] : memref<8x512xf32, #tpu.memory_space<vmem>>, vector<1x512xf32>
    %163 = arith.mulf %161, %162 : vector<1x512xf32>
    %164 = vector.broadcast %160 : vector<32x1xf32> to vector<32x512xf32>
    %165 = vector.broadcast %163 : vector<1x512xf32> to vector<32x512xf32>
    %166 = arith.mulf %164, %165 : vector<32x512xf32>
    %167 = arith.addf %158, %166 : vector<32x512xf32>
    %c0_97 = arith.constant 0 : index
    %c0_98 = arith.constant 0 : index
    %168 = vector.load %arg8[%c0_97, %c0_98] : memref<32x1xf32, #tpu.memory_space<vmem>>, vector<32x1xf32>
    %169 = vector.broadcast %168 : vector<32x1xf32> to vector<32x512xf32>
    %170 = arith.addf %167, %169 : vector<32x512xf32>
    %c0_99 = arith.constant 0 : index
    %c0_100 = arith.constant 0 : index
    %171 = vector.load %arg13[%c0_99, %c0_100] : memref<32x512xf32, #tpu.memory_space<vmem>>, vector<32x512xf32>
    tpu.vector_store %arg13[%c0_99, %c0_100], %170 {strides = array<i32>} : memref<32x512xf32, #tpu.memory_space<vmem>>, vector<32x512xf32>,
    %c0_i32 = arith.constant 0 : i32
    %c8_i32 = arith.constant 8 : i32
    %172 = arith.addi %c0_i32, %c8_i32 : i32
    %c1_i32_101 = arith.constant 1 : i32
    scf.for %arg15 = %c0_i32 to %172 step %c1_i32_101  : i32 {
      %c0_112 = arith.constant 0 : index
      %c0_113 = arith.constant 0 : index
      %185 = vector.load %arg12[%c0_112, %c0_113] : memref<32x512xf32, #tpu.memory_space<vmem>>, vector<32x512xf32>
      %c17_i32_114 = arith.constant 17 : i32
      %186 = tpu.dynamic_rotate %185 by %c17_i32_114 dim 1 : vector<32x512xf32>, i32 -> vector<32x512xf32>
      %c0_115 = arith.constant 0 : index
      %c0_116 = arith.constant 0 : index
      %187 = vector.load %arg3[%c0_115, %c0_116] : memref<8x512xf32, #tpu.memory_space<vmem>>, vector<1x512xf32>
      %188 = vector.broadcast %187 : vector<1x512xf32> to vector<32x512xf32>
      %189 = arith.mulf %186, %188 : vector<32x512xf32>
      %190 = arith.truncf %189 : vector<32x512xf32> to vector<32x512xbf16>
      %c0_117 = arith.constant 0 : index
      %c0_118 = arith.constant 0 : index
      %191 = vector.load %arg14[%c0_117, %c0_118] : memref<288x512xbf16, #tpu.memory_space<vmem>>, vector<32x512xbf16>
      tpu.vector_store %arg14[%c0_117, %c0_118], %190 {strides = array<i32>} : memref<288x512xbf16, #tpu.memory_space<vmem>>, vector<32x512xbf16>,
      %c16_i32_119 = arith.constant 16 : i32
      %192 = tpu.dynamic_rotate %185 by %c16_i32_119 dim 1 : vector<32x512xf32>, i32 -> vector<32x512xf32>
      %c1_120 = arith.constant 1 : index
      %c0_121 = arith.constant 0 : index
      %193 = vector.load %arg3[%c1_120, %c0_121] : memref<8x512xf32, #tpu.memory_space<vmem>>, vector<1x512xf32>
      %194 = vector.broadcast %193 : vector<1x512xf32> to vector<32x512xf32>
      %195 = arith.mulf %192, %194 : vector<32x512xf32>
      %196 = arith.truncf %195 : vector<32x512xf32> to vector<32x512xbf16>
      %c32 = arith.constant 32 : index
      %c0_122 = arith.constant 0 : index
      %197 = vector.load %arg14[%c32, %c0_122] : memref<288x512xbf16, #tpu.memory_space<vmem>>, vector<32x512xbf16>
      tpu.vector_store %arg14[%c32, %c0_122], %196 {strides = array<i32>} : memref<288x512xbf16, #tpu.memory_space<vmem>>, vector<32x512xbf16>,
      %c15_i32_123 = arith.constant 15 : i32
      %198 = tpu.dynamic_rotate %185 by %c15_i32_123 dim 1 : vector<32x512xf32>, i32 -> vector<32x512xf32>
      %c2_124 = arith.constant 2 : index
      %c0_125 = arith.constant 0 : index
      %199 = vector.load %arg3[%c2_124, %c0_125] : memref<8x512xf32, #tpu.memory_space<vmem>>, vector<1x512xf32>
      %200 = vector.broadcast %199 : vector<1x512xf32> to vector<32x512xf32>
      %201 = arith.mulf %198, %200 : vector<32x512xf32>
      %202 = arith.truncf %201 : vector<32x512xf32> to vector<32x512xbf16>
      %c64 = arith.constant 64 : index
      %c0_126 = arith.constant 0 : index
      %203 = vector.load %arg14[%c64, %c0_126] : memref<288x512xbf16, #tpu.memory_space<vmem>>, vector<32x512xbf16>
      tpu.vector_store %arg14[%c64, %c0_126], %202 {strides = array<i32>} : memref<288x512xbf16, #tpu.memory_space<vmem>>, vector<32x512xbf16>,
      %c1_i32_127 = arith.constant 1 : i32
      %204 = tpu.dynamic_rotate %185 by %c1_i32_127 dim 1 : vector<32x512xf32>, i32 -> vector<32x512xf32>
      %c3_128 = arith.constant 3 : index
      %c0_129 = arith.constant 0 : index
      %205 = vector.load %arg3[%c3_128, %c0_129] : memref<8x512xf32, #tpu.memory_space<vmem>>, vector<1x512xf32>
      %206 = vector.broadcast %205 : vector<1x512xf32> to vector<32x512xf32>
      %207 = arith.mulf %204, %206 : vector<32x512xf32>
      %208 = arith.truncf %207 : vector<32x512xf32> to vector<32x512xbf16>
      %c96 = arith.constant 96 : index
      %c0_130 = arith.constant 0 : index
      %209 = vector.load %arg14[%c96, %c0_130] : memref<288x512xbf16, #tpu.memory_space<vmem>>, vector<32x512xbf16>
      tpu.vector_store %arg14[%c96, %c0_130], %208 {strides = array<i32>} : memref<288x512xbf16, #tpu.memory_space<vmem>>, vector<32x512xbf16>,
      %210 = arith.truncf %185 : vector<32x512xf32> to vector<32x512xbf16>
      %c128 = arith.constant 128 : index
      %c0_131 = arith.constant 0 : index
      %211 = vector.load %arg14[%c128, %c0_131] : memref<288x512xbf16, #tpu.memory_space<vmem>>, vector<32x512xbf16>
      tpu.vector_store %arg14[%c128, %c0_131], %210 {strides = array<i32>} : memref<288x512xbf16, #tpu.memory_space<vmem>>, vector<32x512xbf16>,
      %c511_i32_132 = arith.constant 511 : i32
      %212 = tpu.dynamic_rotate %185 by %c511_i32_132 dim 1 : vector<32x512xf32>, i32 -> vector<32x512xf32>
      %c4_133 = arith.constant 4 : index
      %c0_134 = arith.constant 0 : index
      %213 = vector.load %arg3[%c4_133, %c0_134] : memref<8x512xf32, #tpu.memory_space<vmem>>, vector<1x512xf32>
      %214 = vector.broadcast %213 : vector<1x512xf32> to vector<32x512xf32>
      %215 = arith.mulf %212, %214 : vector<32x512xf32>
      %216 = arith.truncf %215 : vector<32x512xf32> to vector<32x512xbf16>
      %c160 = arith.constant 160 : index
      %c0_135 = arith.constant 0 : index
      %217 = vector.load %arg14[%c160, %c0_135] : memref<288x512xbf16, #tpu.memory_space<vmem>>, vector<32x512xbf16>
      tpu.vector_store %arg14[%c160, %c0_135], %216 {strides = array<i32>} : memref<288x512xbf16, #tpu.memory_space<vmem>>, vector<32x512xbf16>,
      %c497_i32_136 = arith.constant 497 : i32
      %218 = tpu.dynamic_rotate %185 by %c497_i32_136 dim 1 : vector<32x512xf32>, i32 -> vector<32x512xf32>
      %c5_137 = arith.constant 5 : index
      %c0_138 = arith.constant 0 : index
      %219 = vector.load %arg3[%c5_137, %c0_138] : memref<8x512xf32, #tpu.memory_space<vmem>>, vector<1x512xf32>
      %220 = vector.broadcast %219 : vector<1x512xf32> to vector<32x512xf32>
      %221 = arith.mulf %218, %220 : vector<32x512xf32>
      %222 = arith.truncf %221 : vector<32x512xf32> to vector<32x512xbf16>
      %c192 = arith.constant 192 : index
      %c0_139 = arith.constant 0 : index
      %223 = vector.load %arg14[%c192, %c0_139] : memref<288x512xbf16, #tpu.memory_space<vmem>>, vector<32x512xbf16>
      tpu.vector_store %arg14[%c192, %c0_139], %222 {strides = array<i32>} : memref<288x512xbf16, #tpu.memory_space<vmem>>, vector<32x512xbf16>,
      %c496_i32_140 = arith.constant 496 : i32
      %224 = tpu.dynamic_rotate %185 by %c496_i32_140 dim 1 : vector<32x512xf32>, i32 -> vector<32x512xf32>
      %c6_141 = arith.constant 6 : index
      %c0_142 = arith.constant 0 : index
      %225 = vector.load %arg3[%c6_141, %c0_142] : memref<8x512xf32, #tpu.memory_space<vmem>>, vector<1x512xf32>
      %226 = vector.broadcast %225 : vector<1x512xf32> to vector<32x512xf32>
      %227 = arith.mulf %224, %226 : vector<32x512xf32>
      %228 = arith.truncf %227 : vector<32x512xf32> to vector<32x512xbf16>
      %c224 = arith.constant 224 : index
      %c0_143 = arith.constant 0 : index
      %229 = vector.load %arg14[%c224, %c0_143] : memref<288x512xbf16, #tpu.memory_space<vmem>>, vector<32x512xbf16>
      tpu.vector_store %arg14[%c224, %c0_143], %228 {strides = array<i32>} : memref<288x512xbf16, #tpu.memory_space<vmem>>, vector<32x512xbf16>,
      %c495_i32_144 = arith.constant 495 : i32
      %230 = tpu.dynamic_rotate %185 by %c495_i32_144 dim 1 : vector<32x512xf32>, i32 -> vector<32x512xf32>
      %c7_145 = arith.constant 7 : index
      %c0_146 = arith.constant 0 : index
      %231 = vector.load %arg3[%c7_145, %c0_146] : memref<8x512xf32, #tpu.memory_space<vmem>>, vector<1x512xf32>
      %232 = vector.broadcast %231 : vector<1x512xf32> to vector<32x512xf32>
      %233 = arith.mulf %230, %232 : vector<32x512xf32>
      %234 = arith.truncf %233 : vector<32x512xf32> to vector<32x512xbf16>
      %c256 = arith.constant 256 : index
      %c0_147 = arith.constant 0 : index
      %235 = vector.load %arg14[%c256, %c0_147] : memref<288x512xbf16, #tpu.memory_space<vmem>>, vector<32x512xbf16>
      tpu.vector_store %arg14[%c256, %c0_147], %234 {strides = array<i32>} : memref<288x512xbf16, #tpu.memory_space<vmem>>, vector<32x512xbf16>,
      %c0_148 = arith.constant 0 : index
      %c0_149 = arith.constant 0 : index
      %236 = vector.load %arg6[%c0_148, %c0_149] : memref<32x288xbf16, #tpu.memory_space<vmem>>, vector<32x288xbf16>
      %c0_150 = arith.constant 0 : index
      %c0_151 = arith.constant 0 : index
      %237 = vector.load %arg14[%c0_150, %c0_151] : memref<288x512xbf16, #tpu.memory_space<vmem>>, vector<288x512xbf16>
      %cst_152 = arith.constant dense<0.000000e+00> : vector<32x512xf32>
      %238 = tpu.matmul %236, %237, %cst_152 {dimension_numbers = #tpu.dot_dimension_numbers<[1], [0], [0], [1], [0, 0, 1, 1], [], []>} : vector<32x288xbf16>, vector<288x512xbf16>, vector<32x512xf32> -> vector<32x512xf32>
      %c0_153 = arith.constant 0 : index
      %c0_154 = arith.constant 0 : index
      %239 = vector.load %arg13[%c0_153, %c0_154] : memref<32x512xf32, #tpu.memory_space<vmem>>, vector<32x512xf32>
      %240 = arith.addf %238, %239 : vector<32x512xf32>
      %cst_155 = arith.constant 0.000000e+00 : f32
      %241 = vector.broadcast %cst_155 : f32 to vector<32x512xf32>
      %242 = arith.maximumf %240, %241 : vector<32x512xf32>
      %c0_156 = arith.constant 0 : index
      %c0_157 = arith.constant 0 : index
      %243 = vector.load %arg12[%c0_156, %c0_157] : memref<32x512xf32, #tpu.memory_space<vmem>>, vector<32x512xf32>
      tpu.vector_store %arg12[%c0_156, %c0_157], %242 {strides = array<i32>} : memref<32x512xf32, #tpu.memory_space<vmem>>, vector<32x512xf32>,
    }
    %c0_102 = arith.constant 0 : index
    %c0_103 = arith.constant 0 : index
    %173 = vector.load %arg12[%c0_102, %c0_103] : memref<32x512xf32, #tpu.memory_space<vmem>>, vector<32x512xf32>
    %c0_104 = arith.constant 0 : index
    %c0_105 = arith.constant 0 : index
    %174 = vector.load %arg9[%c0_104, %c0_105] : memref<32x1xf32, #tpu.memory_space<vmem>>, vector<32x1xf32>
    %175 = vector.broadcast %174 : vector<32x1xf32> to vector<32x512xf32>
    %176 = arith.mulf %173, %175 : vector<32x512xf32>
    %cst_106 = arith.constant dense<0.000000e+00> : vector<512xf32>
    %177 = vector.multi_reduction <add>, %176, %cst_106 [0] : vector<32x512xf32> to vector<512xf32>
    %178 = vector.shape_cast %177 : vector<512xf32> to vector<1x512xf32>
    %c0_107 = arith.constant 0 : index
    %c0_108 = arith.constant 0 : index
    %179 = vector.load %arg10[%c0_107, %c0_108] : memref<1x1xf32, #tpu.memory_space<vmem>>, vector<1x1xf32>
    %180 = vector.broadcast %179 : vector<1x1xf32> to vector<1x512xf32>
    %181 = arith.addf %178, %180 : vector<1x512xf32>
    %c0_109 = arith.constant 0 : index
    %c0_110 = arith.constant 0 : index
    %c0_111 = arith.constant 0 : index
    %182 = vector.load %arg11[%c0_109, %c0_110, %c0_111] : memref<1x1x512xf32, #tpu.memory_space<vmem>>, vector<1x1x512xf32>
    %183 = vector.shape_cast %182 : vector<1x1x512xf32> to vector<1x512xf32>
    %184 = vector.shape_cast %181 : vector<1x512xf32> to vector<1x1x512xf32>
    tpu.vector_store %arg11[%c0_109, %c0_110, %c0_111], %184 {strides = array<i32>} : memref<1x1x512xf32, #tpu.memory_space<vmem>>, vector<1x1x512xf32>,
    return
  }
  func.func @transform_0(%arg0: i32) -> (i32, i32, i32) {
    %c0_i32 = arith.constant 0 : i32
    %c0_i32_0 = arith.constant 0 : i32
    %c0_i32_1 = arith.constant 0 : i32
    return %arg0, %c0_i32, %c0_i32_0 : i32, i32, i32
  }
  func.func @transform_1(%arg0: i32) -> (i32, i32, i32) {
    %c0_i32 = arith.constant 0 : i32
    %c0_i32_0 = arith.constant 0 : i32
    %c0_i32_1 = arith.constant 0 : i32
    return %arg0, %c0_i32, %c0_i32_0 : i32, i32, i32
  }
  func.func @transform_2(%arg0: i32) -> (i32, i32) {
    %c0_i32 = arith.constant 0 : i32
    %c0_i32_0 = arith.constant 0 : i32
    %c0_i32_1 = arith.constant 0 : i32
    return %c0_i32, %c0_i32_0 : i32, i32
  }
  func.func @transform_3(%arg0: i32) -> (i32, i32, i32) {
    %c0_i32 = arith.constant 0 : i32
    %c0_i32_0 = arith.constant 0 : i32
    %c0_i32_1 = arith.constant 0 : i32
    %c0_i32_2 = arith.constant 0 : i32
    return %c0_i32, %c0_i32_0, %c0_i32_1 : i32, i32, i32
  }
  func.func @transform_4(%arg0: i32) -> (i32, i32) {
    %c0_i32 = arith.constant 0 : i32
    %c0_i32_0 = arith.constant 0 : i32
    %c0_i32_1 = arith.constant 0 : i32
    return %c0_i32, %c0_i32_0 : i32, i32
  }
  func.func @transform_5(%arg0: i32) -> (i32, i32) {
    %c0_i32 = arith.constant 0 : i32
    %c0_i32_0 = arith.constant 0 : i32
    %c0_i32_1 = arith.constant 0 : i32
    return %c0_i32, %c0_i32_0 : i32, i32
  }
  func.func @transform_6(%arg0: i32) -> (i32, i32, i32) {
    %c0_i32 = arith.constant 0 : i32
    %c0_i32_0 = arith.constant 0 : i32
    %c0_i32_1 = arith.constant 0 : i32
    %c0_i32_2 = arith.constant 0 : i32
    return %c0_i32, %c0_i32_0, %c0_i32_1 : i32, i32, i32
  }
  func.func @transform_7(%arg0: i32) -> (i32, i32) {
    %c0_i32 = arith.constant 0 : i32
    %c0_i32_0 = arith.constant 0 : i32
    %c0_i32_1 = arith.constant 0 : i32
    return %c0_i32, %c0_i32_0 : i32, i32
  }
  func.func @transform_8(%arg0: i32) -> (i32, i32) {
    %c0_i32 = arith.constant 0 : i32
    %c0_i32_0 = arith.constant 0 : i32
    %c0_i32_1 = arith.constant 0 : i32
    return %c0_i32, %c0_i32_0 : i32, i32
  }
  func.func @transform_9(%arg0: i32) -> (i32, i32) {
    %c0_i32 = arith.constant 0 : i32
    %c0_i32_0 = arith.constant 0 : i32
    %c0_i32_1 = arith.constant 0 : i32
    return %c0_i32, %c0_i32_0 : i32, i32
  }
  func.func @transform_10(%arg0: i32) -> (i32, i32, i32) {
    %c0_i32 = arith.constant 0 : i32
    %c0_i32_0 = arith.constant 0 : i32
    %c0_i32_1 = arith.constant 0 : i32
    return %arg0, %c0_i32, %c0_i32_0 : i32, i32, i32
  }
}

</mosaic_0001>

<bundles_post_ra>
// kernel: squeeze.1
= control target key start
LH: loop header
LB: loop body
LE: loop exit
PB: predicated region body
PF: predicated region fallthrough
CT: control target
= control target key end

     0   :  { %s130_s0 = inlined_call_operand.vmem [shape: f32[512], index: 0, kind: input, shape index: {}]   ;;  %s131_s1 = inlined_call_operand.hbm [shape: f32[2,1,16,16], index: 1, kind: output, shape index: {}]  }
   0x1   :  { %v5_v0 = vld [vmem:[%s130_s0] sm:$0xf] }
   0x2   :  { %6 = vst [vmem:[#allocation2] sm:$0xf] %v5_v0 }
   0x3   :  { %2 = vsyncpa [#allocation1], 0  ;;  %s98_s0 = smov 112   ;;  %s99_s8 = smov 80   ;;  %vm8_vm0 = vcmask 130048  }
   0x4   :  { %s100_s9 = smov 48   ;;  %s101_s10 = smov 96  }
   0x5   :  { %s102_s11 = smov 64   ;;  %s103_s12 = smov 32  }
   0x6   :  { %s104_s13 = smov 16   ;;  %s105_s14 = smov [#allocation0]  }
   0x7   :  { %s55_s15 = sshll.u32 %s105_s14, 4  ;;  %s57_s1 = sshll.u32 %s131_s1, 4  ;;  %s56_s15 = int_to_ptr.vmem [resolvable:$true] %s55_s15  ;;  %s58_s1 = int_to_ptr.hbm [resolvable:$true] %s57_s1 }
   0x9   :  { %v10_v1 = vld [vmem:[#allocation2] sm:$0xf]  }
   0xa   :  { %v22_v2 = vld [vmem:[#allocation2] sm:$0xf]   ;;  %11 = vrot.lane.b32.xlu0 %v10_v1, %s98_s0 }
   0xb   :  { %23 = vrot.lane.b32.xlu1 %v22_v2, %s99_s8  ;;  %v34_v3 = vld [vmem:[#allocation2] sm:$0xf]  }
   0xc   :  { %35 = vrot.lane.b32.xlu2 %v34_v3, %s100_s9  ;;  %v16_v4 = vld [vmem:[#allocation2] sm:$0xf]  }
   0xd   :  { %v28_v5 = vld [vmem:[#allocation2] sm:$0xf]  }
   0xe   :  { %v40_v6 = vld [vmem:[#allocation2] sm:$0xf]  }
   0xf   :  { %v46_v7 = vld [vmem:[#allocation2] sm:$0xf]  }
  0x10   :  { %v7_v9 = vld [vmem:[#allocation2] sm:$0xf]  }
  0x11   :  { %9 = vst.msk [vmem:[#allocation0] ss:$8 sm:$0xf] %vm8_vm0, %v7_v9  }
  0x12   :  { %17 = vrot.lane.b32.xlu0 %v16_v4, %s101_s10 }
  0x13   :  { %29 = vrot.lane.b32.xlu1 %v28_v5, %s102_s11 }
  0x14   :  { %41 = vrot.lane.b32.xlu2 %v40_v6, %s103_s12 }
  0x1a   :  { %47 = vrot.lane.b32.xlu0 %v46_v7, %s104_s13 }
  0x66   :  { %v36_v8 = vpop.permute.xlu2 %35  }
  0x67   :  { %39 = vst.msk [vmem:[#allocation0 + $0x5] ss:$8 sm:$0xf] %vm8_vm0, %v36_v8  }
  0x6e   :  { %v42_v10 = vpop.permute.xlu2 %41  }
  0x6f   :  { %45 = vst.msk [vmem:[#allocation0 + $0x6] ss:$8 sm:$0xf] %vm8_vm0, %v42_v10  }
  0x7c   :  { %v12_v11 = vpop.permute.xlu0 %11  }
  0x7d   :  { %v24_v12 = vpop.permute.xlu1 %23   ;;  %15 = vst.msk [vmem:[#allocation0 + $0x1] ss:$8 sm:$0xf] %vm8_vm0, %v12_v11  }
  0x7e   :  { %27 = vst.msk [vmem:[#allocation0 + $0x3] ss:$8 sm:$0xf] %vm8_vm0, %v24_v12  }
  0x84   :  { %v18_v13 = vpop.permute.xlu0 %17  }
  0x85   :  { %v30_v14 = vpop.permute.xlu1 %29   ;;  %21 = vst.msk [vmem:[#allocation0 + $0x2] ss:$8 sm:$0xf] %vm8_vm0, %v18_v13  }
  0x86   :  { %33 = vst.msk [vmem:[#allocation0 + $0x4] ss:$8 sm:$0xf] %vm8_vm0, %v30_v14  }
  0x8c   :  { %v48_v15 = vpop.permute.xlu0 %47  }
  0x8d   :  { %51 = vst.msk [vmem:[#allocation0 + $0x7] ss:$8 sm:$0xf] %vm8_vm0, %v48_v15  }
  0x8e   :  { %60 = dma.vmem_to_hbm [thread:$0]  %s56_s15, 512, %s58_s1, [#allocation1]  }
  0x8f   :  { %96 = dma.done.wait [#allocation1], 512  }
  0x90   :  { %97 = vsyncadd [#allocation1], 4294966784 }
  0x91   :  { %63 = vsyncpa [#allocation1], 1 }

// kernel: gen_clean_forward.1
= control target key start
LH: loop header
LB: loop body
LE: loop exit
PB: predicated region body
PF: predicated region fallthrough
CT: control target
= control target key end

     0   :  { %v6470_v0 = vmov 0   ;;  %s3897_s17 = smov 17   ;;  %s3898_s23 = smov 16   ;;  %v6469_v34 = vlaneseq  ;;  %s6458_s3 = inlined_call_operand.vmem [shape: f32[9,32,1], index: 3, kind: input, shape index: {}]   ;;  %s6459_s0 = inlined_call_operand.vmem [shape: f32[1,1,512], index: 0, kind: input, shape index: {}]   ;;  %s6460_s2 = inlined_call_operand.vmem [shape: f32[8,512], index: 2, kind: input, shape index: {}]   ;;  %s6461_s4 = inlined_call_operand.vmem [shape: f32[32,1], index: 4, kind: input, shape index: {}]   ;;  %s6462_s1 = inlined_call_operand.vmem [shape: f32[1,1,512], index: 1, kind: input, shape index: {}]   ;;  %s6463_s6 = inlined_call_operand.vmem [shape: f32[9,32,1], index: 6, kind: input, shape index: {}]   ;;  %s6464_s7 = inlined_call_operand.vmem [shape: f32[32,1], index: 7, kind: input, shape index: {}]   ;;  %s6465_s5 = inlined_call_operand.vmem [shape: bf16[32,288], index: 5, kind: input, shape index: {}]   ;;  %s6466_s8 = inlined_call_operand.vmem [shape: f32[32,1], index: 8, kind: input, shape index: {}]   ;;  %s6467_s10 = inlined_call_operand.vmem [shape: f32[1,1,512], index: 10, kind: output, shape index: {}]   ;;  %s6468_s9 = inlined_call_operand.<no memory space> [shape: f32[1,1], index: 9, kind: input, shape index: {}]  }
   0x1   :  { %3865 = vset.pattern.permute.xlu2 %v6470_v0  ;;  %v40_v1 = vld [vmem:[%s6458_s3] sm:$0xff]  ;;  %3867 = vset.pattern.permute.xlu1 %v6470_v0  ;;  %v41_v5 = vld [vmem:[%s6458_s3 + $0x8] sm:$0xff]  ;;  %v43_v8 = vld [vmem:[%s6458_s3 + $0x18] sm:$0xff]  ;;  %s3899_s12 = smov 15   ;;  %s3900_s21 = smov 1  }
   0x2   :  { %v38_v2 = vld [vmem:[%s6459_s0] sm:$0xf]  ;;  %84 = vperm.xlu2 %3865, %v40_v1   ;;  %3866 = vset.pattern.permute.xlu0 %v6470_v0  ;;  %v42_v9 = vld [vmem:[%s6458_s3 + $0x10] sm:$0xff]  ;;  %v3350_v10 = vld [vmem:[%s6458_s3 + $0x28] sm:$0xff]  ;;  %s3901_s20 = smov 127   ;;  %s3902_s11 = smov 113  }
   0x3   :  { %v3976_v3 = vperm.slane %v38_v2, 2  ;;  %v3978_v4 = vperm.slane %v38_v2, 0  ;;  %v3988_v6 = vperm.slane %v38_v2, 3  ;;  %v3990_v7 = vperm.slane %v38_v2, 1  ;;  %v3349_v11 = vld [vmem:[%s6458_s3 + $0x20] sm:$0xff]  ;;  %v3351_v12 = vld [vmem:[%s6458_s3 + $0x30] sm:$0xff] }
   0x4   :  { %v3352_v13 = vld [vmem:[%s6458_s3 + $0x38] sm:$0xff]  ;;  %v3354_v14 = vld [vmem:[%s6458_s3 + $0x40] sm:$0xff]  ;;  %v3356_v15 = vld [vmem:[%s6458_s3 + $0x50] sm:$0xff]  ;;  %v4103_v37 = vand.u32 127, %v6469_v34  ;;  %s3903_s30 = smov 112   ;;  %s3904_s24 = smov 111  }
   0x5   :  { %57 = vrot.lane.b32.xlu1 %v3976_v3, %s3897_s17  ;;  %53 = vrot.lane.b32.xlu0 %v3978_v4, %s3897_s17  ;;  %v3355_v16 = vld [vmem:[%s6458_s3 + $0x48] sm:$0xff]  ;;  %v3357_v17 = vld [vmem:[%s6458_s3 + $0x58] sm:$0xff] }
   0x6   :  { %v3359_v18 = vld [vmem:[%s6458_s3 + $0x60] sm:$0xff]  ;;  %v3360_v19 = vld [vmem:[%s6458_s3 + $0x68] sm:$0xff]  ;;  %v3362_v20 = vld [vmem:[%s6458_s3 + $0x78] sm:$0xff]  ;;  %vm63_vm0 = vcmp.lt.s32.totalorder %v4103_v37, 17  ;;  %vm240_vm1 = vcmp.lt.s32.totalorder %v4103_v37, 15  ;;  %vm151_vm2 = vcmp.lt.s32.totalorder %v4103_v37, 16 }
   0x7   :  { %v3361_v21 = vld [vmem:[%s6458_s3 + $0x70] sm:$0xff]  ;;  %v3364_v22 = vld [vmem:[%s6458_s3 + $0x80] sm:$0xff]  ;;  %v3365_v24 = vld [vmem:[%s6458_s3 + $0x88] sm:$0xff]  ;;  %vm329_vm3 = vcmp.lt.s32.totalorder %v4103_v37, 1  ;;  %vm475_vm4 = vcmp.lt.s32.totalorder %v4103_v37, 127  ;;  %vm564_vm5 = vcmp.lt.s32.totalorder %v4103_v37, 113 }
   0x8   :  { %v3366_v23 = vld [vmem:[%s6458_s3 + $0x90] sm:$0xff]  ;;  %v3367_v25 = vld [vmem:[%s6458_s3 + $0x98] sm:$0xff]  ;;  %v3368_v28 = vld [vmem:[%s6458_s3 + $0xa0] sm:$0xff]  ;;  %vm653_vm6 = vcmp.lt.s32.totalorder %v4103_v37, 112  ;;  %vm742_vm7 = vcmp.lt.s32.totalorder %v4103_v37, 111 }
   0x9   :  { %v3369_v29 = vld [vmem:[%s6458_s3 + $0xa8] sm:$0xff]  ;;  %v3371_v31 = vld [vmem:[%s6458_s3 + $0xb8] sm:$0xff]  ;;  %v3370_v32 = vld [vmem:[%s6458_s3 + $0xb0] sm:$0xff] }
   0xa   :  { %89 = vperm.xlu2 %3865, %v41_v5   ;;  %v68_v38 = vld [vmem:[%s6460_s2] ss:$8 sm:$0xf] }
   0xb   :  { %v70_v39 = vperm.slane %v68_v38, 0  ;;  %v73_v41 = vperm.slane %v68_v38, 3  ;;  %v71_v42 = vperm.slane %v68_v38, 1  ;;  %v72_v43 = vperm.slane %v68_v38, 2  ;;  %v3374_v50 = vld [vmem:[%s6458_s3 + $0xc8] sm:$0xff]  ;;  %v3373_v55 = vld [vmem:[%s6458_s3 + $0xc0] sm:$0xff] }
   0xc   :  { %v3375_v60 = vld [vmem:[%s6458_s3 + $0xd0] sm:$0xff] }
   0xd   :  { %59 = vrot.lane.b32.xlu1 %v3988_v6, %s3897_s17  ;;  %55 = vrot.lane.b32.xlu0 %v3990_v7, %s3897_s17 }
  0x12   :  { %143 = vrot.lane.b32.xlu2 %v3978_v4, %s3898_s23 }
  0x15   :  { %99 = vperm.xlu1 %3867, %v43_v8   ;;  %94 = vperm.xlu0 %3866, %v42_v9  }
  0x1a   :  { %147 = vrot.lane.b32.xlu2 %v3976_v3, %s3898_s23 }
  0x1d   :  { %145 = vrot.lane.b32.xlu1 %v3990_v7, %s3898_s23  ;;  %149 = vrot.lane.b32.xlu0 %v3988_v6, %s3898_s23 }
  0x22   :  { %178 = vperm.xlu2 %3865, %v3350_v10  }
  0x25   :  { %173 = vperm.xlu1 %3867, %v3349_v11   ;;  %183 = vperm.xlu0 %3866, %v3351_v12  }
  0x2a   :  { %232 = vrot.lane.b32.xlu2 %v3978_v4, %s3899_s12 }
  0x2d   :  { %188 = vperm.xlu1 %3867, %v3352_v13   ;;  %234 = vrot.lane.b32.xlu0 %v3990_v7, %s3899_s12 }
  0x32   :  { %238 = vrot.lane.b32.xlu2 %v3988_v6, %s3899_s12 }
  0x35   :  { %236 = vrot.lane.b32.xlu1 %v3976_v3, %s3899_s12  ;;  %262 = vperm.xlu0 %3866, %v3354_v14  }
  0x3a   :  { %272 = vperm.xlu2 %3865, %v3356_v15  }
  0x3d   :  { %267 = vperm.xlu1 %3867, %v3355_v16   ;;  %277 = vperm.xlu0 %3866, %v3357_v17   ;;  %v4167_v17 = vld [vmem:[%s6460_s2 + $0x2] ss:$8 sm:$0xf] }
  0x42   :  { %323 = vrot.lane.b32.xlu2 %v3990_v7, %s3900_s21 }
  0x45   :  { %321 = vrot.lane.b32.xlu1 %v3978_v4, %s3900_s21  ;;  %325 = vrot.lane.b32.xlu0 %v3976_v3, %s3900_s21 }
  0x4a   :  { %351 = vperm.xlu2 %3865, %v3359_v18  }
  0x4d   :  { %327 = vrot.lane.b32.xlu1 %v3988_v6, %s3900_s21  ;;  %356 = vperm.xlu0 %3866, %v3360_v19  }
  0x52   :  { %366 = vperm.xlu2 %3865, %v3362_v20  }
  0x55   :  { %361 = vperm.xlu1 %3867, %v3361_v21   ;;  %412 = vperm.xlu0 %3866, %v3364_v22   ;;  %v3376_v22 = vld [vmem:[%s6458_s3 + $0xd8] sm:$0xff] }
  0x5a   :  { %422 = vperm.xlu2 %3865, %v3366_v23   ;;  %v3353_v23 = vld [vmem:[%s6460_s2 + $0x1] ss:$8 sm:$0xf] }
  0x5c   :  { %v4074_v26 = vpop.permute.xlu2 %84 }
  0x5d   :  { %417 = vperm.xlu1 %3867, %v3365_v24   ;;  %427 = vperm.xlu0 %3866, %v3367_v25   ;;  %v248_v24 = vperm.slane %v4167_v17, 0 }
  0x62   :  { %469 = vrot.lane.b32.xlu2 %v3990_v7, %s3901_s20 }
  0x64   :  { %v90_v27 = vpop.permute.xlu2 %89 }
  0x65   :  { %467 = vrot.lane.b32.xlu1 %v3978_v4, %s3901_s20  ;;  %471 = vrot.lane.b32.xlu0 %v3976_v3, %s3901_s20 }
  0x6a   :  { %497 = vperm.xlu2 %3865, %v3368_v28   ;;  %v159_v28 = vperm.slane %v3353_v23, 0 }
  0x6c   :  { %v4090_v30 = vpop.permute.xlu2 %143 }
  0x6d   :  { %473 = vrot.lane.b32.xlu1 %v3988_v6, %s3901_s20  ;;  %502 = vperm.xlu0 %3866, %v3369_v29  }
  0x72   :  { %512 = vperm.xlu2 %3865, %v3371_v31   ;;  %v162_v31 = vperm.slane %v3353_v23, 3 }
  0x74   :  { %v4098_v33 = vpop.permute.xlu2 %147 }
  0x75   :  { %507 = vperm.xlu1 %3867, %v3370_v32   ;;  %556 = vrot.lane.b32.xlu0 %v3978_v4, %s3902_s11 }
  0x77   :  { %v58_v35 = vpop.permute.xlu1 %57  ;;  %v54_v36 = vpop.permute.xlu0 %53 }
  0x7a   :  { %560 = vrot.lane.b32.xlu2 %v3976_v3, %s3902_s11 }
  0x7c   :  { %v4112_v40 = vpop.permute.xlu2 %178 }
  0x7d   :  { %558 = vrot.lane.b32.xlu1 %v3990_v7, %s3902_s11  ;;  %562 = vrot.lane.b32.xlu0 %v3988_v6, %s3902_s11 }
  0x7f   :  { %v60_v44 = vpop.permute.xlu1 %59  ;;  %v56_v45 = vpop.permute.xlu0 %55 }
  0x80   :  { %v64_v46 = vsel %vm63_vm0, %v58_v35, %v60_v44  ;;  %v67_v47 = vsel %vm63_vm0, %v60_v44, %v54_v36  ;;  %v65_v48 = vsel %vm63_vm0, %v56_v45, %v58_v35  ;;  %v66_v49 = vsel %vm63_vm0, %v54_v36, %v56_v45 }
  0x81   :  { %v78_v51 = vmul.f32 %v70_v39, %v67_v47  ;;  %v81_v52 = vmul.f32 %v73_v41, %v64_v46  ;;  %v79_v53 = vmul.f32 %v71_v42, %v66_v49  ;;  %v80_v54 = vmul.f32 %v72_v43, %v65_v48 }
  0x82   :  { %591 = vperm.xlu2 %3865, %v3374_v50  }
  0x83   :  { %v102_v56 = vperm.slane %v78_v51, 0  ;;  %v105_v57 = vperm.slane %v81_v52, 0  ;;  %v103_v58 = vperm.slane %v79_v53, 0  ;;  %v104_v59 = vperm.slane %v80_v54, 0 }
  0x84   :  { %v4142_v2 = vpop.permute.xlu2 %232 }
  0x85   :  { %v4134_v61 = vmul.f32 %v102_v56, %v90_v27  ;;  %v4136_v62 = vmul.f32 %v105_v57, %v90_v27  ;;  %v4138_v63 = vmul.f32 %v103_v58, %v90_v27  ;;  %v4140_v1 = vmul.f32 %v104_v59, %v90_v27  ;;  %586 = vperm.xlu1 %3867, %v3373_v55  }
  0x86   :  { %596 = vperm.xlu0 %3866, %v3375_v60   ;;  %v4145_v5 = vmul.f32 %v105_v57, %v4074_v26  ;;  %v4148_v8 = vmul.f32 %v102_v56, %v4074_v26  ;;  %v4151_v9 = vmul.f32 %v103_v58, %v4074_v26  ;;  %v4154_v10 = vmul.f32 %v104_v59, %v4074_v26 }
  0x87   :  { %v100_v11 = vpop.permute.xlu1 %99  ;;  %v95_v12 = vpop.permute.xlu0 %94  ;;  %v160_v26 = vperm.slane %v3353_v23, 1  ;;  %v161_v27 = vperm.slane %v3353_v23, 2 }
  0x88   :  { %v4156_v13 = vmul.f32 %v102_v56, %v100_v11  ;;  %v4158_v14 = vmul.f32 %v103_v58, %v100_v11  ;;  %v4160_v15 = vmul.f32 %v104_v59, %v100_v11  ;;  %v4162_v16 = vmul.f32 %v105_v57, %v100_v11 }
  0x89   :  { %v4169_v18 = vmul.f32 %v102_v56, %v95_v12  ;;  %v4171_v19 = vmul.f32 %v103_v58, %v95_v12  ;;  %v4173_v20 = vmul.f32 %v104_v59, %v95_v12  ;;  %v4175_v21 = vmul.f32 %v105_v57, %v95_v12 }
  0x8a   :  { %645 = vrot.lane.b32.xlu2 %v3978_v4, %s3903_s30 }
  0x8c   :  { %v4187_v25 = vpop.permute.xlu2 %238 }
  0x8d   :  { %601 = vperm.xlu1 %3867, %v3376_v22   ;;  %v244_v29 = vsel %vm240_vm1, %v4187_v25, %v4142_v2 }
  0x8e   :  { %647 = vrot.lane.b32.xlu0 %v3990_v7, %s3903_s30  ;;  %v256_v32 = vmul.f32 %v248_v24, %v244_v29 }
  0x8f   :  { %v146_v35 = vpop.permute.xlu1 %145  ;;  %v150_v36 = vpop.permute.xlu0 %149 }
  0x90   :  { %v153_v38 = vsel %vm151_vm2, %v146_v35, %v4098_v33  ;;  %v154_v39 = vsel %vm151_vm2, %v4090_v30, %v146_v35  ;;  %v152_v41 = vsel %vm151_vm2, %v4098_v33, %v150_v36  ;;  %v155_v42 = vsel %vm151_vm2, %v150_v36, %v4090_v30  ;;  %v3378_v33 = vld [vmem:[%s6458_s3 + $0xe0] sm:$0xff] }
  0x91   :  { %v168_v43 = vmul.f32 %v160_v26, %v154_v39  ;;  %v169_v44 = vmul.f32 %v161_v27, %v153_v38  ;;  %v167_v45 = vmul.f32 %v159_v28, %v155_v42  ;;  %v4208_v46 = vperm.slane %v256_v32, 0  ;;  %v3379_v32 = vld [vmem:[%s6458_s3 + $0xe8] sm:$0xff] }
  0x92   :  { %v170_v47 = vmul.f32 %v162_v31, %v152_v41  ;;  %651 = vrot.lane.b32.xlu2 %v3988_v6, %s3903_s30 }
  0x93   :  { %v192_v48 = vperm.slane %v168_v43, 0  ;;  %v193_v49 = vperm.slane %v169_v44, 0  ;;  %v191_v50 = vperm.slane %v167_v45, 0 }
  0x94   :  { %v194_v51 = vperm.slane %v170_v47, 0  ;;  %v4220_v54 = vpop.permute.xlu2 %272 }
  0x95   :  { %v200_v52 = vmul.f32 %v192_v48, %v4112_v40  ;;  %v201_v30 = vmul.f32 %v193_v49, %v4112_v40  ;;  %v199_v53 = vmul.f32 %v191_v50, %v4112_v40  ;;  %649 = vrot.lane.b32.xlu1 %v3976_v3, %s3903_s30  ;;  %v292_v56 = vmul.f32 %v4208_v46, %v4220_v54 }
  0x96   :  { %v202_v55 = vmul.f32 %v194_v51, %v4112_v40  ;;  %675 = vperm.xlu0 %3866, %v3378_v33   ;;  %v3380_v40 = vld [vmem:[%s6458_s3 + $0xf0] sm:$0xff] }
  0x97   :  { %v174_v57 = vpop.permute.xlu1 %173  ;;  %v184_v58 = vpop.permute.xlu0 %183  ;;  %v4226_v59 = vadd.f32 %v199_v53, %v4134_v61  ;;  %v4229_v60 = vadd.f32 %v200_v52, %v4138_v63  ;;  %v4232_v11 = vadd.f32 %v201_v30, %v4140_v1 }
  0x98   :  { %v195_v12 = vmul.f32 %v191_v50, %v174_v57  ;;  %v196_v22 = vmul.f32 %v192_v48, %v174_v57  ;;  %v197_v23 = vmul.f32 %v193_v49, %v174_v57  ;;  %v198_v24 = vmul.f32 %v194_v51, %v174_v57 }
  0x99   :  { %v203_v26 = vmul.f32 %v191_v50, %v184_v58  ;;  %v204_v27 = vmul.f32 %v192_v48, %v184_v58  ;;  %v205_v28 = vmul.f32 %v193_v49, %v184_v58  ;;  %v206_v29 = vmul.f32 %v194_v51, %v184_v58 }
  0x9a   :  { %v211_v61 = vadd.f32 %v195_v12, %v4148_v8  ;;  %v212_v63 = vadd.f32 %v196_v22, %v4151_v9  ;;  %v213_v31 = vadd.f32 %v197_v23, %v4154_v10  ;;  %v214_v1 = vadd.f32 %v198_v24, %v4145_v5  ;;  %685 = vperm.xlu2 %3865, %v3380_v40   ;;  %v3381_v8 = vld [vmem:[%s6458_s3 + $0xf8] sm:$0xff]  ;;  %v3384_v23 = vld [vmem:[%s6458_s3 + $0x108] sm:$0xff] }
  0x9b   :  { %v219_v35 = vadd.f32 %v203_v26, %v4169_v18  ;;  %v220_v36 = vadd.f32 %v204_v27, %v4171_v19  ;;  %v221_v38 = vadd.f32 %v205_v28, %v4173_v20  ;;  %v222_v39 = vadd.f32 %v206_v29, %v4175_v21 }
  0x9c   :  { %v4252_v9 = vadd.f32 %v202_v55, %v4136_v62  ;;  %v4254_v5 = vpop.permute.xlu2 %323  ;;  %v249_v19 = vperm.slane %v4167_v17, 1 }
  0x9d   :  { %680 = vperm.xlu1 %3867, %v3379_v32   ;;  %v4256_v10 = vadd.f32 %v292_v56, %v219_v35 }
  0x9e   :  { %690 = vperm.xlu0 %3866, %v3381_v8  }
  0x9f   :  { %v189_v18 = vpop.permute.xlu1 %188  ;;  %v235_v20 = vpop.permute.xlu0 %234 }
  0xa0   :  { %v207_v41 = vmul.f32 %v191_v50, %v189_v18  ;;  %v208_v21 = vmul.f32 %v192_v48, %v189_v18  ;;  %v209_v42 = vmul.f32 %v193_v49, %v189_v18  ;;  %v210_v43 = vmul.f32 %v194_v51, %v189_v18 }
  0xa1   :  { %v243_v44 = vsel %vm240_vm1, %v4142_v2, %v235_v20  ;;  %v250_v2 = vperm.slane %v4167_v17, 2 }
  0xa2   :  { %v223_v62 = vadd.f32 %v207_v41, %v4156_v13  ;;  %v224_v45 = vadd.f32 %v208_v21, %v4158_v14  ;;  %v225_v47 = vadd.f32 %v209_v42, %v4160_v15  ;;  %v226_v33 = vadd.f32 %v210_v43, %v4162_v16  ;;  %736 = vrot.lane.b32.xlu2 %v3990_v7, %s3904_s24 }
  0xa3   :  { %v257_v52 = vmul.f32 %v249_v19, %v243_v44  ;;  %v251_v13 = vperm.slane %v4167_v17, 3  ;;  %v3383_v17 = vld [vmem:[%s6458_s3 + $0x100] sm:$0xff]  ;;  %v3385_v44 = vld [vmem:[%s6458_s3 + $0x110] sm:$0xff] }
  0xa4   :  { %v4270_v49 = vpop.permute.xlu2 %351 }
  0xa5   :  { %v281_v48 = vperm.slane %v257_v52, 0  ;;  %734 = vrot.lane.b32.xlu1 %v3978_v4, %s3904_s24 }
  0xa6   :  { %738 = vrot.lane.b32.xlu0 %v3976_v3, %s3904_s24 }
  0xa7   :  { %v293_v14 = vmul.f32 %v281_v48, %v4220_v54  ;;  %v237_v15 = vpop.permute.xlu1 %236  ;;  %v263_v16 = vpop.permute.xlu0 %262 }
  0xa8   :  { %v241_v50 = vsel %vm240_vm1, %v237_v15, %v4187_v25  ;;  %v242_v51 = vsel %vm240_vm1, %v235_v20, %v237_v15  ;;  %v284_v30 = vmul.f32 %v4208_v46, %v263_v16  ;;  %v285_v53 = vmul.f32 %v281_v48, %v263_v16  ;;  %v3386_v20 = vld [vmem:[%s6458_s3 + $0x118] sm:$0xff] }
  0xa9   :  { %v258_v55 = vmul.f32 %v250_v2, %v242_v51  ;;  %v259_v56 = vmul.f32 %v251_v13, %v241_v50  ;;  %v4290_v12 = vadd.f32 %v293_v14, %v220_v36  ;;  %v819_v50 = vld [vmem:[%s6461_s4 + $0x8] sm:$0xff] }
  0xaa   :  { %v4286_v57 = vadd.f32 %v284_v30, %v211_v61  ;;  %v4288_v58 = vadd.f32 %v285_v53, %v212_v63  ;;  %764 = vperm.xlu2 %3865, %v3383_v17   ;;  %v821_v53 = vld [vmem:[%s6461_s4 + $0x18] sm:$0xff] }
  0xab   :  { %v282_v22 = vperm.slane %v258_v55, 0  ;;  %v283_v25 = vperm.slane %v259_v56, 0 }
  0xac   :  { %v4299_v28 = vpop.permute.xlu2 %366 }
  0xad   :  { %v294_v24 = vmul.f32 %v282_v22, %v4220_v54  ;;  %v295_v40 = vmul.f32 %v283_v25, %v4220_v54  ;;  %v286_v26 = vmul.f32 %v282_v22, %v263_v16  ;;  %v287_v27 = vmul.f32 %v283_v25, %v263_v16  ;;  %740 = vrot.lane.b32.xlu1 %v3988_v6, %s3904_s24 }
  0xae   :  { %769 = vperm.xlu0 %3866, %v3384_v23  }
  0xaf   :  { %v302_v29 = vadd.f32 %v286_v26, %v213_v31  ;;  %v4301_v61 = vadd.f32 %v287_v27, %v214_v1  ;;  %v268_v63 = vpop.permute.xlu1 %267  ;;  %v278_v32 = vpop.permute.xlu0 %277  ;;  %v4303_v35 = vadd.f32 %v294_v24, %v221_v38  ;;  %v4305_v36 = vadd.f32 %v295_v40, %v222_v39 }
  0xb0   :  { %v288_v8 = vmul.f32 %v4208_v46, %v268_v63  ;;  %v289_v54 = vmul.f32 %v281_v48, %v268_v63  ;;  %v290_v18 = vmul.f32 %v282_v22, %v268_v63  ;;  %v291_v19 = vmul.f32 %v283_v25, %v268_v63 }
  0xb1   :  { %v296_v41 = vmul.f32 %v4208_v46, %v278_v32  ;;  %v297_v31 = vmul.f32 %v281_v48, %v278_v32  ;;  %v298_v1 = vmul.f32 %v282_v22, %v278_v32  ;;  %v299_v21 = vmul.f32 %v283_v25, %v278_v32  ;;  %v3363_v46 = vld [vmem:[%s6460_s2 + $0x3] ss:$8 sm:$0xf] }
  0xb2   :  { %v4313_v42 = vadd.f32 %v288_v8, %v4226_v59  ;;  %v305_v38 = vadd.f32 %v289_v54, %v4229_v60  ;;  %v306_v39 = vadd.f32 %v290_v18, %v4232_v11  ;;  %v4318_v43 = vadd.f32 %v291_v19, %v4252_v9  ;;  %779 = vperm.xlu2 %3865, %v3386_v20   ;;  %v818_v60 = vld [vmem:[%s6461_s4] sm:$0xff] }
  0xb3   :  { %v4326_v52 = vadd.f32 %v296_v41, %v223_v62  ;;  %v313_v48 = vadd.f32 %v297_v31, %v224_v45  ;;  %v314_v59 = vadd.f32 %v298_v1, %v225_v47  ;;  %v4328_v2 = vadd.f32 %v299_v21, %v226_v33  ;;  %v820_v47 = vld [vmem:[%s6461_s4 + $0x10] sm:$0xff] }
  0xb4   :  { %v423_v11 = vpop.permute.xlu2 %422  ;;  %v338_v9 = vperm.slane %v3363_v46, 1  ;;  %v339_v13 = vperm.slane %v3363_v46, 2  ;;  %v337_v17 = vperm.slane %v3363_v46, 0  ;;  %v340_v55 = vperm.slane %v3363_v46, 3 }
  0xb5   :  { %774 = vperm.xlu1 %3867, %v3385_v44  }
  0xb6   :  { %824 = vperm.xlu0 %3866, %v818_v60   ;;  %v439_v60 = vmul.f32 %v423_v11, %v3990_v7 }
  0xb7   :  { %v322_v14 = vpop.permute.xlu1 %321  ;;  %v326_v15 = vpop.permute.xlu0 %325 }
  0xb8   :  { %v332_v62 = vsel %vm329_vm3, %v322_v14, %v4254_v5  ;;  %v331_v45 = vsel %vm329_vm3, %v4254_v5, %v326_v15  ;;  %v39_v5 = vld [vmem:[%s6462_s1] sm:$0xf] }
  0xb9   :  { %v346_v33 = vmul.f32 %v338_v9, %v332_v62  ;;  %v347_v16 = vmul.f32 %v339_v13, %v331_v45  ;;  %v4358_v40 = vperm.slane %v39_v5, 1  ;;  %v4369_v21 = vperm.slane %v39_v5, 0 }
  0xba   :  { %834 = vperm.xlu2 %3865, %v820_v47   ;;  %v4381_v9 = vperm.slane %v39_v5, 3  ;;  %v440_v62 = vmul.f32 %v423_v11, %v3976_v3  ;;  %v441_v45 = vmul.f32 %v423_v11, %v3988_v6 }
  0xbb   :  { %v370_v51 = vperm.slane %v346_v33, 0  ;;  %v371_v30 = vperm.slane %v347_v16, 0 }
  0xbc   :  { %v4356_v24 = vpop.permute.xlu2 %469 }
  0xbd   :  { %v374_v56 = vmul.f32 %v370_v51, %v4270_v49  ;;  %v386_v22 = vmul.f32 %v370_v51, %v4299_v28  ;;  %v375_v25 = vmul.f32 %v371_v30, %v4270_v49  ;;  %v387_v23 = vmul.f32 %v371_v30, %v4299_v28  ;;  %829 = vperm.xlu1 %3867, %v819_v50  }
  0xbe   :  { %839 = vperm.xlu0 %3866, %v821_v53  }
  0xbf   :  { %v328_v26 = vpop.permute.xlu1 %327  ;;  %v357_v27 = vpop.permute.xlu0 %356  ;;  %v390_v63 = vadd.f32 %v374_v56, %v4288_v58  ;;  %v391_v32 = vadd.f32 %v375_v25, %v302_v29  ;;  %v4361_v8 = vadd.f32 %v386_v22, %v313_v48  ;;  %v4363_v54 = vadd.f32 %v387_v23, %v314_v59  ;;  %v890_v22 = vld [vmem:[%s6463_s6] sm:$0xff] }
  0xc0   :  { %v330_v18 = vsel %vm329_vm3, %v326_v15, %v328_v26  ;;  %v333_v19 = vsel %vm329_vm3, %v328_v26, %v322_v14  ;;  %v378_v20 = vmul.f32 %v370_v51, %v357_v27  ;;  %v379_v41 = vmul.f32 %v371_v30, %v357_v27 }
  0xc1   :  { %v345_v31 = vmul.f32 %v337_v17, %v333_v19  ;;  %v348_v1 = vmul.f32 %v340_v55, %v330_v18  ;;  %v4375_v29 = vperm.slane %v39_v5, 2  ;;  %v438_v59 = vmul.f32 %v423_v11, %v3978_v4 }
  0xc2   :  { %v4371_v44 = vadd.f32 %v378_v20, %v305_v38  ;;  %v4373_v58 = vadd.f32 %v379_v41, %v306_v39  ;;  %905 = vrot.lane.b32.xlu2 %v4358_v40, %s3897_s17 }
  0xc3   :  { %v369_v46 = vperm.slane %v345_v31, 0  ;;  %v372_v48 = vperm.slane %v348_v1, 0 }
  0xc4   :  { %v4389_v15 = vpop.permute.xlu2 %497 }
  0xc5   :  { %v373_v13 = vmul.f32 %v369_v46, %v4270_v49  ;;  %v376_v38 = vmul.f32 %v372_v48, %v4270_v49  ;;  %v385_v39 = vmul.f32 %v369_v46, %v4299_v28  ;;  %v388_v14 = vmul.f32 %v372_v48, %v4299_v28  ;;  %903 = vrot.lane.b32.xlu1 %v4369_v21, %s3897_s17 }
  0xc6   :  { %v377_v47 = vmul.f32 %v369_v46, %v357_v27  ;;  %v380_v33 = vmul.f32 %v372_v48, %v357_v27  ;;  %907 = vrot.lane.b32.xlu0 %v4375_v29, %s3897_s17 }
  0xc7   :  { %v362_v16 = vpop.permute.xlu1 %361  ;;  %v389_v49 = vadd.f32 %v373_v13, %v4286_v57  ;;  %v392_v50 = vadd.f32 %v376_v38, %v4301_v61  ;;  %v413_v28 = vpop.permute.xlu0 %412  ;;  %v401_v53 = vadd.f32 %v385_v39, %v4326_v52  ;;  %v404_v5 = vadd.f32 %v388_v14, %v4328_v2 }
  0xc8   :  { %v393_v17 = vadd.f32 %v377_v47, %v4313_v42  ;;  %v396_v55 = vadd.f32 %v380_v33, %v4318_v43  ;;  %v381_v11 = vmul.f32 %v369_v46, %v362_v16  ;;  %v382_v56 = vmul.f32 %v370_v51, %v362_v16  ;;  %v892_v33 = vld [vmem:[%s6463_s6 + $0x10] sm:$0xff] }
  0xc9   :  { %v383_v25 = vmul.f32 %v371_v30, %v362_v16  ;;  %v384_v23 = vmul.f32 %v372_v48, %v362_v16  ;;  %v430_v57 = vmul.f32 %v413_v28, %v3978_v4  ;;  %v431_v61 = vmul.f32 %v413_v28, %v3990_v7  ;;  %v891_v30 = vld [vmem:[%s6463_s6 + $0x8] sm:$0xff] }
  0xca   :  { %v397_v52 = vadd.f32 %v381_v11, %v4256_v10  ;;  %v398_v2 = vadd.f32 %v382_v56, %v4290_v12  ;;  %v432_v42 = vmul.f32 %v413_v28, %v3976_v3  ;;  %v433_v43 = vmul.f32 %v413_v28, %v3988_v6  ;;  %931 = vperm.xlu2 %3865, %v890_v22  }
  0xcb   :  { %v399_v51 = vadd.f32 %v383_v25, %v4303_v35  ;;  %v400_v26 = vadd.f32 %v384_v23, %v4305_v36  ;;  %v446_v27 = vadd.f32 %v430_v57, %v389_v49  ;;  %v447_v18 = vadd.f32 %v431_v61, %v390_v63 }
  0xcc   :  { %v4415_v19 = vadd.f32 %v432_v42, %v391_v32  ;;  %v4417_v10 = vadd.f32 %v433_v43, %v392_v50  ;;  %v4419_v12 = vadd.f32 %v438_v59, %v397_v52  ;;  %v4421_v20 = vadd.f32 %v439_v60, %v398_v2  ;;  %v4425_v35 = vpop.permute.xlu2 %512  ;;  %v893_v59 = vld [vmem:[%s6463_s6 + $0x18] sm:$0xff] }
  0xcd   :  { %909 = vrot.lane.b32.xlu1 %v4381_v9, %s3897_s17  ;;  %v4427_v36 = vadd.f32 %v440_v62, %v399_v51  ;;  %v4429_v63 = vadd.f32 %v441_v45, %v400_v26 }
  0xce   :  { %936 = vperm.xlu0 %3866, %v891_v30  }
  0xcf   :  { %v418_v41 = vpop.permute.xlu1 %417  ;;  %v428_v31 = vpop.permute.xlu0 %427 }
  0xd0   :  { %v434_v32 = vmul.f32 %v418_v41, %v3978_v4  ;;  %v435_v1 = vmul.f32 %v418_v41, %v3990_v7  ;;  %v436_v46 = vmul.f32 %v418_v41, %v3976_v3  ;;  %v437_v48 = vmul.f32 %v418_v41, %v3988_v6 }
  0xd1   :  { %v442_v60 = vmul.f32 %v428_v31, %v3978_v4  ;;  %v443_v13 = vmul.f32 %v428_v31, %v3990_v7  ;;  %v444_v38 = vmul.f32 %v428_v31, %v3976_v3  ;;  %v445_v39 = vmul.f32 %v428_v31, %v3988_v6  ;;  %v3372_v4 = vld [vmem:[%s6460_s2 + $0x4] ss:$8 sm:$0xf] }
  0xd2   :  { %v450_v14 = vadd.f32 %v434_v32, %v393_v17  ;;  %v451_v62 = vadd.f32 %v435_v1, %v4371_v44  ;;  %v4444_v45 = vadd.f32 %v436_v46, %v4373_v58  ;;  %v4446_v47 = vadd.f32 %v437_v48, %v396_v55  ;;  %946 = vperm.xlu2 %3865, %v893_v59   ;;  %v3389_v32 = vld [vmem:[%s6463_s6 + $0x28] sm:$0xff]  ;;  %v3388_v48 = vld [vmem:[%s6463_s6 + $0x20] sm:$0xff] }
  0xd3   :  { %v458_v7 = vadd.f32 %v442_v60, %v401_v53  ;;  %v459_v3 = vadd.f32 %v443_v13, %v4361_v8  ;;  %v460_v6 = vadd.f32 %v444_v38, %v4363_v54  ;;  %v461_v16 = vadd.f32 %v445_v39, %v404_v5  ;;  %v3390_v13 = vld [vmem:[%s6463_s6 + $0x30] sm:$0xff] }
  0xd4   :  { %v4456_v44 = vpop.permute.xlu2 %560  ;;  %v483_v58 = vperm.slane %v3372_v4, 0  ;;  %v484_v49 = vperm.slane %v3372_v4, 1  ;;  %v485_v11 = vperm.slane %v3372_v4, 2  ;;  %v486_v56 = vperm.slane %v3372_v4, 3 }
  0xd5   :  { %941 = vperm.xlu1 %3867, %v892_v33  }
  0xd6   :  { %990 = vrot.lane.b32.xlu0 %v4369_v21, %s3898_s23 }
  0xd7   :  { %v468_v50 = vpop.permute.xlu1 %467  ;;  %v472_v28 = vpop.permute.xlu0 %471 }
  0xd8   :  { %v478_v8 = vsel %vm475_vm4, %v468_v50, %v4356_v24  ;;  %v477_v54 = vsel %vm475_vm4, %v4356_v24, %v472_v28 }
  0xd9   :  { %v491_v53 = vmul.f32 %v483_v58, %v478_v8  ;;  %v492_v5 = vmul.f32 %v484_v49, %v477_v54 }
  0xda   :  { %994 = vrot.lane.b32.xlu2 %v4375_v29, %s3898_s23 }
  0xdb   :  { %v515_v17 = vperm.slane %v491_v53, 0  ;;  %v516_v55 = vperm.slane %v492_v5, 0 }
  0xdc   :  { %v4475_v24 = vpop.permute.xlu2 %591 }
  0xdd   :  { %v519_v22 = vmul.f32 %v515_v17, %v4389_v15  ;;  %v531_v25 = vmul.f32 %v515_v17, %v4425_v35  ;;  %v520_v23 = vmul.f32 %v516_v55, %v4389_v15  ;;  %v532_v57 = vmul.f32 %v516_v55, %v4425_v35  ;;  %992 = vrot.lane.b32.xlu1 %v4358_v40, %s3898_s23 }
  0xde   :  { %996 = vrot.lane.b32.xlu0 %v4381_v9, %s3898_s23 }
  0xdf   :  { %v474_v61 = vpop.permute.xlu1 %473  ;;  %v503_v52 = vpop.permute.xlu0 %502  ;;  %v4479_v2 = vadd.f32 %v519_v22, %v446_v27  ;;  %v4481_v42 = vadd.f32 %v520_v23, %v447_v18  ;;  %v4483_v43 = vadd.f32 %v531_v25, %v458_v7  ;;  %v4485_v51 = vadd.f32 %v532_v57, %v459_v3  ;;  %v3394_v22 = vld [vmem:[%s6463_s6 + $0x48] sm:$0xff]  ;;  %v3396_v25 = vld [vmem:[%s6463_s6 + $0x58] sm:$0xff] }
  0xe0   :  { %v476_v26 = vsel %vm475_vm4, %v472_v28, %v474_v61  ;;  %v479_v30 = vsel %vm475_vm4, %v474_v61, %v468_v50  ;;  %v523_v41 = vmul.f32 %v515_v17, %v503_v52  ;;  %v524_v31 = vmul.f32 %v516_v55, %v503_v52  ;;  %v3382_v57 = vld [vmem:[%s6460_s2 + $0x6] ss:$8 sm:$0xf]  ;;  %v3377_v61 = vld [vmem:[%s6460_s2 + $0x5] ss:$8 sm:$0xf] }
  0xe1   :  { %v493_v27 = vmul.f32 %v485_v11, %v476_v26  ;;  %v494_v1 = vmul.f32 %v486_v56, %v479_v30  ;;  %v3395_v56 = vld [vmem:[%s6463_s6 + $0x50] sm:$0xff]  ;;  %v664_v30 = vperm.slane %v3382_v57, 3 }
  0xe2   :  { %v4494_v18 = vadd.f32 %v523_v41, %v450_v14  ;;  %v4496_v46 = vadd.f32 %v524_v31, %v451_v62  ;;  %1023 = vperm.xlu2 %3865, %v3389_v32   ;;  %v572_v41 = vperm.slane %v3377_v61, 0  ;;  %v573_v31 = vperm.slane %v3377_v61, 1 }
  0xe3   :  { %v517_v59 = vperm.slane %v493_v27, 0  ;;  %v518_v60 = vperm.slane %v494_v1, 0  ;;  %v574_v1 = vperm.slane %v3377_v61, 2 }
  0xe4   :  { %v4508_v33 = vpop.permute.xlu2 %645 }
  0xe5   :  { %v521_v38 = vmul.f32 %v517_v59, %v4389_v15  ;;  %v522_v39 = vmul.f32 %v518_v60, %v4389_v15  ;;  %v533_v14 = vmul.f32 %v517_v59, %v4425_v35  ;;  %v534_v62 = vmul.f32 %v518_v60, %v4425_v35  ;;  %1018 = vperm.xlu1 %3867, %v3388_v48  }
  0xe6   :  { %v525_v4 = vmul.f32 %v517_v59, %v503_v52  ;;  %v526_v7 = vmul.f32 %v518_v60, %v503_v52  ;;  %1028 = vperm.xlu0 %3866, %v3390_v13   ;;  %v575_v48 = vperm.slane %v3377_v61, 3 }
  0xe7   :  { %v508_v3 = vpop.permute.xlu1 %507  ;;  %v557_v58 = vpop.permute.xlu0 %556  ;;  %v4511_v49 = vadd.f32 %v521_v38, %v4415_v19  ;;  %v4514_v50 = vadd.f32 %v522_v39, %v4417_v10  ;;  %v4516_v28 = vadd.f32 %v533_v14, %v460_v6  ;;  %v4518_v15 = vadd.f32 %v534_v62, %v461_v16  ;;  %v3391_v6 = vld [vmem:[%s6463_s6 + $0x38] sm:$0xff] }
  0xe8   :  { %v4521_v35 = vadd.f32 %v525_v4, %v4444_v45  ;;  %v4524_v8 = vadd.f32 %v526_v7, %v4446_v47  ;;  %v527_v54 = vmul.f32 %v515_v17, %v508_v3  ;;  %v528_v53 = vmul.f32 %v516_v55, %v508_v3 }
  0xe9   :  { %v529_v5 = vmul.f32 %v517_v59, %v508_v3  ;;  %v530_v11 = vmul.f32 %v518_v60, %v508_v3 }
  0xea   :  { %v4527_v19 = vadd.f32 %v527_v54, %v4419_v12  ;;  %v4530_v10 = vadd.f32 %v528_v53, %v4421_v20  ;;  %1077 = vrot.lane.b32.xlu2 %v4369_v21, %s3899_s12 }
  0xeb   :  { %v4536_v45 = vadd.f32 %v529_v5, %v4427_v36  ;;  %v4539_v47 = vadd.f32 %v530_v11, %v4429_v63  ;;  %v3393_v36 = vld [vmem:[%s6463_s6 + $0x40] sm:$0xff] }
  0xec   :  { %v652_v16 = vpop.permute.xlu2 %651 }
  0xed   :  { %1033 = vperm.xlu1 %3867, %v3391_v6   ;;  %v657_v59 = vsel %vm653_vm6, %v652_v16, %v4508_v33 }
  0xee   :  { %1079 = vrot.lane.b32.xlu0 %v4358_v40, %s3899_s12  ;;  %v672_v62 = vmul.f32 %v664_v30, %v657_v59 }
  0xef   :  { %v559_v12 = vpop.permute.xlu1 %558  ;;  %v563_v20 = vpop.permute.xlu0 %562 }
  0xf0   :  { %v566_v32 = vsel %vm564_vm5, %v559_v12, %v4456_v44  ;;  %v567_v27 = vsel %vm564_vm5, %v557_v58, %v559_v12  ;;  %v565_v60 = vsel %vm564_vm5, %v4456_v44, %v563_v20  ;;  %v568_v13 = vsel %vm564_vm5, %v563_v20, %v557_v58  ;;  %v3398_v44 = vld [vmem:[%s6463_s6 + $0x60] sm:$0xff]  ;;  %v3399_v12 = vld [vmem:[%s6463_s6 + $0x68] sm:$0xff] }
  0xf1   :  { %v580_v39 = vmul.f32 %v572_v41, %v567_v27  ;;  %v581_v14 = vmul.f32 %v573_v31, %v566_v32  ;;  %v582_v4 = vmul.f32 %v574_v1, %v565_v60  ;;  %v583_v7 = vmul.f32 %v575_v48, %v568_v13  ;;  %v4641_v13 = vld [vmem:[%s6460_s2 + $0x7] ss:$8 sm:$0xf] }
  0xf2   :  { %1083 = vrot.lane.b32.xlu2 %v4381_v9, %s3899_s12  ;;  %v4605_v5 = vperm.slane %v672_v62, 0  ;;  %v661_v20 = vperm.slane %v3382_v57, 0 }
  0xf3   :  { %v604_v58 = vperm.slane %v580_v39, 0  ;;  %v605_v53 = vperm.slane %v581_v14, 0  ;;  %v606_v11 = vperm.slane %v582_v4, 0  ;;  %v607_v6 = vperm.slane %v583_v7, 0 }
  0xf4   :  { %v4552_v63 = vpop.permute.xlu2 %685 }
  0xf5   :  { %1081 = vrot.lane.b32.xlu1 %v4375_v29, %s3899_s12  ;;  %v612_v61 = vmul.f32 %v604_v58, %v4475_v24  ;;  %v613_v30 = vmul.f32 %v605_v53, %v4475_v24  ;;  %v708_v32 = vmul.f32 %v4605_v5, %v4552_v63 }
  0xf6   :  { %1105 = vperm.xlu0 %3866, %v3393_v36  }
  0xf7   :  { %v4554_v17 = vpop.permute.xlu1 %586 }
  0xf8   :  { %v4556_v55 = vpop.permute.xlu0 %596  ;;  %v608_v48 = vmul.f32 %v604_v58, %v4554_v17  ;;  %v609_v59 = vmul.f32 %v605_v53, %v4554_v17  ;;  %v611_v39 = vmul.f32 %v607_v6, %v4554_v17 }
  0xf9   :  { %v619_v27 = vmul.f32 %v607_v6, %v4556_v55  ;;  %v616_v14 = vmul.f32 %v604_v58, %v4556_v55  ;;  %v617_v7 = vmul.f32 %v605_v53, %v4556_v55 }
  0xfa   :  { %1115 = vperm.xlu2 %3865, %v3395_v56   ;;  %v662_v56 = vperm.slane %v3382_v57, 1 }
  0xfc   :  { %v4567_v23 = vpop.permute.xlu2 %736 }
  0xfd   :  { %1110 = vperm.xlu1 %3867, %v3394_v22   ;;  %v663_v22 = vperm.slane %v3382_v57, 2  ;;  %v615_v57 = vmul.f32 %v607_v6, %v4475_v24 }
  0xfe   :  { %1120 = vperm.xlu0 %3866, %v3396_v25  }
  0xff   :  { %v4575_v52 = vpop.permute.xlu1 %601 }
 0x100   :  { %v648_v26 = vpop.permute.xlu0 %647 }
 0x101   :  { %v656_v36 = vsel %vm653_vm6, %v4508_v33, %v648_v26  ;;  %v614_v33 = vmul.f32 %v606_v11, %v4475_v24  ;;  %v3401_v24 = vld [vmem:[%s6463_s6 + $0x78] sm:$0xff] }
 0x102   :  { %1166 = vrot.lane.b32.xlu2 %v4358_v40, %s3900_s21  ;;  %v669_v60 = vmul.f32 %v661_v20, %v656_v36  ;;  %v635_v20 = vadd.f32 %v619_v27, %v4539_v47 }
 0x103   :  { %v4659_v36 = vadd.f32 %v614_v33, %v4521_v35  ;;  %v633_v33 = vadd.f32 %v617_v7, %v4530_v10  ;;  %v753_v7 = vperm.slane %v4641_v13, 3 }
 0x104   :  { %v4596_v38 = vpop.permute.xlu2 %764  ;;  %v693_v47 = vperm.slane %v669_v60, 0 }
 0x105   :  { %1164 = vrot.lane.b32.xlu1 %v4369_v21, %s3900_s21 }
 0x106   :  { %1168 = vrot.lane.b32.xlu0 %v4375_v29, %s3900_s21  ;;  %v705_v10 = vmul.f32 %v693_v47, %v4552_v63 }
 0x107   :  { %v650_v3 = vpop.permute.xlu1 %649 }
 0x108   :  { %v4600_v54 = vpop.permute.xlu0 %675  ;;  %v654_v41 = vsel %vm653_vm6, %v650_v3, %v652_v16  ;;  %v655_v31 = vsel %vm653_vm6, %v648_v26, %v650_v3  ;;  %v610_v16 = vmul.f32 %v606_v11, %v4554_v17  ;;  %v618_v3 = vmul.f32 %v606_v11, %v4556_v55 }
 0x109   :  { %v670_v62 = vmul.f32 %v662_v56, %v655_v31  ;;  %v671_v4 = vmul.f32 %v663_v22, %v654_v41  ;;  %v4656_v17 = vadd.f32 %v613_v30, %v4496_v46  ;;  %v750_v55 = vperm.slane %v4641_v13, 0 }
 0x10a   :  { %1192 = vperm.xlu2 %3865, %v3398_v44   ;;  %v4648_v44 = vadd.f32 %v612_v61, %v4494_v18  ;;  %v3403_v18 = vld [vmem:[%s6463_s6 + $0x80] sm:$0xff]  ;;  %v624_v56 = vadd.f32 %v608_v48, %v4479_v2  ;;  %v625_v22 = vadd.f32 %v609_v59, %v4481_v42  ;;  %v626_v61 = vadd.f32 %v610_v16, %v4511_v49 }
 0x10b   :  { %v627_v46 = vadd.f32 %v611_v39, %v4514_v50  ;;  %v632_v30 = vadd.f32 %v616_v14, %v4527_v19  ;;  %v694_v35 = vperm.slane %v670_v62, 0  ;;  %v695_v41 = vperm.slane %v671_v4, 0  ;;  %v3404_v39 = vld [vmem:[%s6463_s6 + $0x88] sm:$0xff] }
 0x10c   :  { %v4615_v25 = vpop.permute.xlu2 %779  ;;  %v634_v27 = vadd.f32 %v618_v3, %v4536_v45  ;;  %v4675_v2 = vadd.f32 %v615_v57, %v4524_v8  ;;  %v751_v42 = vperm.slane %v4641_v13, 1  ;;  %v620_v49 = vmul.f32 %v604_v58, %v4575_v52  ;;  %v3405_v58 = vld [vmem:[%s6463_s6 + $0x90] sm:$0xff] }
 0x10d   :  { %1170 = vrot.lane.b32.xlu1 %v4381_v9, %s3900_s21  ;;  %v621_v50 = vmul.f32 %v605_v53, %v4575_v52  ;;  %v622_v19 = vmul.f32 %v606_v11, %v4575_v52  ;;  %v4681_v59 = vadd.f32 %v708_v32, %v635_v20  ;;  %v623_v16 = vmul.f32 %v607_v6, %v4575_v52 }
 0x10e   :  { %1197 = vperm.xlu0 %3866, %v3399_v12   ;;  %v3400_v12 = vld [vmem:[%s6463_s6 + $0x70] sm:$0xff]  ;;  %v697_v45 = vmul.f32 %v693_v47, %v4600_v54  ;;  %v698_v53 = vmul.f32 %v694_v35, %v4600_v54  ;;  %v699_v11 = vmul.f32 %v695_v41, %v4600_v54  ;;  %v700_v52 = vmul.f32 %v4605_v5, %v4600_v54 }
 0x10f   :  { %v4628_v1 = vpop.permute.xlu1 %680  ;;  %v706_v32 = vmul.f32 %v694_v35, %v4552_v63  ;;  %v752_v14 = vperm.slane %v4641_v13, 2  ;;  %v636_v62 = vadd.f32 %v620_v49, %v4483_v43  ;;  %v637_v4 = vadd.f32 %v621_v50, %v4485_v51 }
 0x110   :  { %v4633_v26 = vpop.permute.xlu0 %690  ;;  %v707_v54 = vmul.f32 %v695_v41, %v4552_v63  ;;  %v638_v3 = vadd.f32 %v622_v19, %v4516_v28  ;;  %v713_v20 = vadd.f32 %v697_v45, %v624_v56  ;;  %v715_v43 = vadd.f32 %v699_v11, %v626_v61 }
 0x111   :  { %v701_v51 = vmul.f32 %v693_v47, %v4628_v1  ;;  %v702_v49 = vmul.f32 %v694_v35, %v4628_v1  ;;  %v722_v13 = vadd.f32 %v706_v32, %v633_v33  ;;  %v703_v28 = vmul.f32 %v695_v41, %v4628_v1 }
 0x112   :  { %1207 = vperm.xlu2 %3865, %v3401_v24   ;;  %v709_v56 = vmul.f32 %v693_v47, %v4633_v26  ;;  %v723_v61 = vadd.f32 %v707_v54, %v634_v27 }
 0x113   :  { %v718_v27 = vadd.f32 %v702_v49, %v4656_v17 }
 0x114   :  { %v4670_v31 = vpop.permute.xlu2 %834 }
 0x115   :  { %1202 = vperm.xlu1 %3867, %v3400_v12   ;;  %v639_v12 = vadd.f32 %v623_v16, %v4518_v15  ;;  %v704_v15 = vmul.f32 %v4605_v5, %v4628_v1  ;;  %v712_v1 = vmul.f32 %v4605_v5, %v4633_v26  ;;  %v725_v5 = vadd.f32 %v709_v56, %v636_v62 }
 0x116   :  { %1253 = vperm.xlu0 %3866, %v3403_v18   ;;  %v4713_v18 = vadd.f32 %v705_v10, %v632_v30  ;;  %v711_v30 = vmul.f32 %v695_v41, %v4633_v26  ;;  %v717_v10 = vadd.f32 %v701_v51, %v4648_v44 }
 0x117   :  { %v735_v48 = vpop.permute.xlu1 %734  ;;  %v720_v44 = vadd.f32 %v704_v15, %v4675_v2  ;;  %v4741_v17 = vadd.f32 %v712_v1, %v639_v12 }
 0x118   :  { %v745_v8 = vsel %vm742_vm7, %v735_v48, %v4567_v23  ;;  %v739_v57 = vpop.permute.xlu0 %738 }
 0x119   :  { %v744_v6 = vsel %vm742_vm7, %v4567_v23, %v739_v57  ;;  %v758_v60 = vmul.f32 %v750_v55, %v745_v8  ;;  %v3406_v23 = vld [vmem:[%s6463_s6 + $0x98] sm:$0xff]  ;;  %v714_v55 = vadd.f32 %v698_v53, %v625_v22 }
 0x11a   :  { %v759_v24 = vmul.f32 %v751_v42, %v744_v6  ;;  %1263 = vperm.xlu2 %3865, %v3405_v58   ;;  %v716_v42 = vadd.f32 %v700_v52, %v627_v46  ;;  %v710_v46 = vmul.f32 %v694_v35, %v4633_v26  ;;  %v4739_v52 = vadd.f32 %v711_v30, %v638_v3 }
 0x11b   :  { %v782_v50 = vperm.slane %v758_v60, 0 }
 0x11c   :  { %v4716_v63 = vpop.permute.xlu2 %905  ;;  %v783_v8 = vperm.slane %v759_v24, 0  ;;  %v726_v26 = vadd.f32 %v710_v46, %v637_v4 }
 0x11d   :  { %1258 = vperm.xlu1 %3867, %v3404_v39   ;;  %v786_v35 = vmul.f32 %v782_v50, %v4596_v38  ;;  %v798_v60 = vmul.f32 %v782_v50, %v4615_v25 }
 0x11e   :  { %1268 = vperm.xlu0 %3866, %v3406_v23   ;;  %v787_v41 = vmul.f32 %v783_v8, %v4596_v38 }
 0x11f   :  { %v741_v22 = vpop.permute.xlu1 %740  ;;  %v802_v2 = vadd.f32 %v786_v35, %v713_v20 }
 0x120   :  { %v743_v19 = vsel %vm742_vm7, %v739_v57, %v741_v22  ;;  %v746_v16 = vsel %vm742_vm7, %v741_v22, %v735_v48  ;;  %v770_v33 = vpop.permute.xlu0 %769  ;;  %v719_v57 = vadd.f32 %v703_v28, %v4659_v36  ;;  %v803_v24 = vadd.f32 %v787_v41, %v714_v55  ;;  %v3407_v28 = vld [vmem:[%s6463_s6 + $0xa0] sm:$0xff] }
 0x121   :  { %v760_v45 = vmul.f32 %v752_v14, %v743_v19  ;;  %v761_v47 = vmul.f32 %v753_v7, %v746_v16  ;;  %v790_v58 = vmul.f32 %v782_v50, %v770_v33  ;;  %v791_v48 = vmul.f32 %v783_v8, %v770_v33  ;;  %v3408_v16 = vld [vmem:[%s6463_s6 + $0xa8] sm:$0xff] }
 0x122   :  { %1310 = vrot.lane.b32.xlu2 %v4358_v40, %s3901_s20  ;;  %v799_v14 = vmul.f32 %v783_v8, %v4615_v25 }
 0x123   :  { %v784_v53 = vperm.slane %v760_v45, 0  ;;  %v785_v11 = vperm.slane %v761_v47, 0  ;;  %v806_v39 = vadd.f32 %v790_v58, %v717_v10  ;;  %v807_v7 = vadd.f32 %v791_v48, %v718_v27 }
 0x124   :  { %v4745_v6 = vpop.permute.xlu2 %931 }
 0x125   :  { %1308 = vrot.lane.b32.xlu1 %v4369_v21, %s3901_s20  ;;  %v788_v36 = vmul.f32 %v784_v53, %v4596_v38  ;;  %v789_v32 = vmul.f32 %v785_v11, %v4596_v38  ;;  %v792_v62 = vmul.f32 %v784_v53, %v770_v33  ;;  %v793_v15 = vmul.f32 %v785_v11, %v770_v33 }
 0x126   :  { %1312 = vrot.lane.b32.xlu0 %v4375_v29, %s3901_s20  ;;  %v801_v45 = vmul.f32 %v785_v11, %v4615_v25 }
 0x127   :  { %v775_v4 = vpop.permute.xlu1 %774  ;;  %v804_v54 = vadd.f32 %v788_v36, %v715_v43  ;;  %v805_v23 = vadd.f32 %v789_v32, %v716_v42  ;;  %v809_v35 = vadd.f32 %v793_v15, %v720_v44  ;;  %v814_v36 = vadd.f32 %v798_v60, %v725_v5 }
 0x128   :  { %v794_v3 = vmul.f32 %v782_v50, %v775_v4  ;;  %v795_v12 = vmul.f32 %v783_v8, %v775_v4  ;;  %v796_v51 = vmul.f32 %v784_v53, %v775_v4  ;;  %v797_v49 = vmul.f32 %v785_v11, %v775_v4  ;;  %v825_v38 = vpop.permute.xlu0 %824  ;;  %v3409_v4 = vld [vmem:[%s6463_s6 + $0xb0] sm:$0xff] }
 0x129   :  { %v842_v20 = vadd.f32 %v825_v38, %v802_v2  ;;  %v843_v55 = vadd.f32 %v825_v38, %v803_v24  ;;  %v844_v56 = vadd.f32 %v825_v38, %v804_v54  ;;  %v845_v42 = vadd.f32 %v825_v38, %v805_v23 }
 0x12a   :  { %v810_v22 = vadd.f32 %v794_v3, %v4713_v18  ;;  %v811_v46 = vadd.f32 %v795_v12, %v722_v13  ;;  %v812_v30 = vadd.f32 %v796_v51, %v723_v61  ;;  %v813_v43 = vadd.f32 %v797_v49, %v4681_v59  ;;  %1336 = vperm.xlu2 %3865, %v3407_v28  }
 0x12b   :  { %v858_v50 = vmax.f32 %v842_v20, 0.0  ;;  %v859_v8 = vmax.f32 %v843_v55, 0.0  ;;  %v860_v19 = vmax.f32 %v844_v56, 0.0  ;;  %v808_v13 = vadd.f32 %v792_v62, %v719_v57 }
 0x12c   :  { %v850_v33 = vadd.f32 %v4670_v31, %v810_v22  ;;  %v851_v10 = vadd.f32 %v4670_v31, %v811_v46  ;;  %v852_v1 = vadd.f32 %v4670_v31, %v812_v30  ;;  %v853_v18 = vadd.f32 %v4670_v31, %v813_v43  ;;  %v4767_v59 = vpop.permute.xlu2 %946 }
 0x12d   :  { %874 = vst [vmem:[#allocation2 + $0x30] sm:$0xff] %v858_v50  ;;  %1314 = vrot.lane.b32.xlu1 %v4381_v9, %s3901_s20  ;;  %v800_v61 = vmul.f32 %v784_v53, %v4615_v25  ;;  %v861_v48 = vmax.f32 %v845_v42, 0.0  ;;  %v815_v32 = vadd.f32 %v799_v14, %v726_v26  ;;  %v3410_v25 = vld [vmem:[%s6463_s6 + $0xb8] sm:$0xff]  ;;  %v817_v60 = vadd.f32 %v801_v45, %v4741_v17 }
 0x12e   :  { %v866_v47 = vmax.f32 %v850_v33, 0.0  ;;  %v867_v27 = vmax.f32 %v851_v10, 0.0  ;;  %v868_v58 = vmax.f32 %v852_v1, 0.0  ;;  %875 = vst [vmem:[#allocation2] sm:$0xff] %v859_v8  ;;  %1341 = vperm.xlu0 %3866, %v3408_v16   ;;  %v869_v41 = vmax.f32 %v853_v18, 0.0 }
 0x12f   :  { %876 = vst [vmem:[#allocation2 + $0x58] sm:$0xff] %v860_v19  ;;  %v830_v31 = vpop.permute.xlu1 %829  ;;  %v816_v11 = vadd.f32 %v800_v61, %v4739_v52  ;;  %v915_v14 = vld [vmem:[%s6460_s2] ss:$8 sm:$0xf] }
 0x130   :  { %882 = vst [vmem:[#allocation2 + $0x40] sm:$0xff] %v866_v47  ;;  %v846_v2 = vadd.f32 %v830_v31, %v806_v39  ;;  %v847_v24 = vadd.f32 %v830_v31, %v807_v7  ;;  %v848_v57 = vadd.f32 %v830_v31, %v808_v13  ;;  %v849_v62 = vadd.f32 %v830_v31, %v809_v35  ;;  %v840_v53 = vpop.permute.xlu0 %839  ;;  %v3413_v61 = vld [vmem:[%s6463_s6 + $0xc8] sm:$0xff]  ;;  %v3412_v35 = vld [vmem:[%s6463_s6 + $0xc0] sm:$0xff]  ;;  %v3414_v31 = vld [vmem:[%s6463_s6 + $0xd0] sm:$0xff] }
 0x131   :  { %883 = vst [vmem:[#allocation2 + $0x20] sm:$0xff] %v867_v27  ;;  %v854_v44 = vadd.f32 %v840_v53, %v814_v36  ;;  %v855_v39 = vadd.f32 %v840_v53, %v815_v32  ;;  %v856_v23 = vadd.f32 %v840_v53, %v816_v11  ;;  %v857_v7 = vadd.f32 %v840_v53, %v817_v60  ;;  %v4846_v60 = vld [vmem:[%s6460_s2 + $0x2] ss:$8 sm:$0xf] }
 0x132   :  { %884 = vst [vmem:[#allocation2 + $0x10] sm:$0xff] %v868_v58  ;;  %v862_v5 = vmax.f32 %v846_v2, 0.0  ;;  %v863_v26 = vmax.f32 %v847_v24, 0.0  ;;  %v864_v54 = vmax.f32 %v848_v57, 0.0  ;;  %1351 = vperm.xlu2 %3865, %v3410_v25   ;;  %v865_v52 = vmax.f32 %v849_v62, 0.0 }
 0x133   :  { %885 = vst [vmem:[#allocation2 + $0x38] sm:$0xff] %v869_v41  ;;  %v870_v3 = vmax.f32 %v854_v44, 0.0  ;;  %v918_v51 = vperm.slane %v915_v14, 1  ;;  %v871_v17 = vmax.f32 %v855_v39, 0.0  ;;  %v919_v49 = vperm.slane %v915_v14, 2 }
 0x134   :  { %877 = vst [vmem:[#allocation2 + $0x18] sm:$0xff] %v861_v48  ;;  %v4782_v12 = vpop.permute.xlu2 %994  ;;  %v872_v38 = vmax.f32 %v856_v23, 0.0  ;;  %v873_v15 = vmax.f32 %v857_v7, 0.0  ;;  %v917_v50 = vperm.slane %v915_v14, 0  ;;  %v920_v8 = vperm.slane %v915_v14, 3 }
 0x135   :  { %878 = vst [vmem:[#allocation2 + $0x50] sm:$0xff] %v862_v5  ;;  %1346 = vperm.xlu1 %3867, %v3409_v4   ;;  %v1091_v39 = vperm.slane %v4846_v60, 0 }
 0x136   :  { %879 = vst [vmem:[#allocation2 + $0x68] sm:$0xff] %v863_v26  ;;  %1395 = vrot.lane.b32.xlu0 %v4369_v21, %s3902_s11 }
 0x137   :  { %880 = vst [vmem:[#allocation2 + $0x8] sm:$0xff] %v864_v54  ;;  %v904_v28 = vpop.permute.xlu1 %903 }
 0x138   :  { %881 = vst [vmem:[#allocation2 + $0x48] sm:$0xff] %v865_v52  ;;  %v913_v20 = vsel %vm63_vm0, %v904_v28, %v4716_v63  ;;  %v908_v55 = vpop.permute.xlu0 %907 }
 0x139   :  { %886 = vst [vmem:[#allocation2 + $0x60] sm:$0xff] %v870_v3  ;;  %v926_v56 = vmul.f32 %v918_v51, %v913_v20  ;;  %v912_v22 = vsel %vm63_vm0, %v4716_v63, %v908_v55 }
 0x13a   :  { %887 = vst [vmem:[#allocation2 + $0x70] sm:$0xff] %v871_v17  ;;  %v927_v46 = vmul.f32 %v919_v49, %v912_v22  ;;  %1399 = vrot.lane.b32.xlu2 %v4375_v29, %s3902_s11 }
 0x13b   :  { %888 = vst [vmem:[#allocation2 + $0x78] sm:$0xff] %v872_v38  ;;  %v950_v30 = vperm.slane %v926_v56, 0 }
 0x13c   :  { %889 = vst [vmem:[#allocation2 + $0x28] sm:$0xff] %v873_v15  ;;  %v951_v43 = vperm.slane %v927_v46, 0  ;;  %v4796_v42 = vpop.permute.xlu2 %1023 }
 0x13d   :  { %1397 = vrot.lane.b32.xlu1 %v4358_v40, %s3902_s11  ;;  %v4799_v19 = vmul.f32 %v950_v30, %v4745_v6  ;;  %v4802_v63 = vmul.f32 %v950_v30, %v4767_v59 }
 0x13e   :  { %1401 = vrot.lane.b32.xlu0 %v4381_v9, %s3902_s11  ;;  %v4807_v16 = vmul.f32 %v951_v43, %v4745_v6  ;;  %v4810_v33 = vmul.f32 %v951_v43, %v4767_v59 }
 0x13f   :  { %v910_v10 = vpop.permute.xlu1 %909 }
 0x140   :  { %v911_v1 = vsel %vm63_vm0, %v908_v55, %v910_v10  ;;  %v914_v18 = vsel %vm63_vm0, %v910_v10, %v904_v28  ;;  %v937_v13 = vpop.permute.xlu0 %936 }
 0x141   :  { %v925_v45 = vmul.f32 %v917_v50, %v914_v18  ;;  %v928_v47 = vmul.f32 %v920_v8, %v911_v1  ;;  %v958_v27 = vmul.f32 %v950_v30, %v937_v13  ;;  %v959_v58 = vmul.f32 %v951_v43, %v937_v13  ;;  %v3417_v8 = vld [vmem:[%s6463_s6 + $0xe0] sm:$0xff] }
 0x142   :  { %1428 = vperm.xlu2 %3865, %v3413_v61  }
 0x143   :  { %v949_v41 = vperm.slane %v925_v45, 0  ;;  %v952_v48 = vperm.slane %v928_v47, 0 }
 0x144   :  { %v4829_v2 = vpop.permute.xlu2 %1077 }
 0x145   :  { %v4825_v36 = vmul.f32 %v949_v41, %v937_v13  ;;  %v4827_v32 = vmul.f32 %v952_v48, %v937_v13  ;;  %1423 = vperm.xlu1 %3867, %v3412_v35   ;;  %v4832_v24 = vmul.f32 %v949_v41, %v4745_v6  ;;  %v4835_v57 = vmul.f32 %v952_v48, %v4745_v6  ;;  %v3415_v6 = vld [vmem:[%s6463_s6 + $0xd8] sm:$0xff] }
 0x146   :  { %1433 = vperm.xlu0 %3866, %v3414_v31   ;;  %v4838_v62 = vmul.f32 %v949_v41, %v4767_v59  ;;  %v4841_v53 = vmul.f32 %v952_v48, %v4767_v59  ;;  %v3392_v59 = vld [vmem:[%s6460_s2 + $0x1] ss:$8 sm:$0xf] }
 0x147   :  { %v942_v25 = vpop.permute.xlu1 %941  ;;  %v1005_v54 = vperm.slane %v3392_v59, 1  ;;  %v1006_v23 = vperm.slane %v3392_v59, 2  ;;  %v1007_v7 = vperm.slane %v3392_v59, 3  ;;  %v1004_v17 = vperm.slane %v3392_v59, 0 }
 0x148   :  { %v961_v11 = vmul.f32 %v949_v41, %v942_v25  ;;  %v962_v44 = vmul.f32 %v950_v30, %v942_v25  ;;  %v963_v4 = vmul.f32 %v951_v43, %v942_v25  ;;  %v964_v5 = vmul.f32 %v952_v48, %v942_v25  ;;  %v991_v26 = vpop.permute.xlu0 %990 }
 0x14a   :  { %1482 = vrot.lane.b32.xlu2 %v4369_v21, %s3903_s30 }
 0x14c   :  { %v4857_v14 = vpop.permute.xlu2 %1083 }
 0x14d   :  { %1438 = vperm.xlu1 %3867, %v3415_v6   ;;  %v1088_v52 = vsel %vm240_vm1, %v4857_v14, %v4829_v2 }
 0x14e   :  { %1484 = vrot.lane.b32.xlu0 %v4358_v40, %s3903_s30  ;;  %v1099_v3 = vmul.f32 %v1091_v39, %v1088_v52  ;;  %v3419_v39 = vld [vmem:[%s6463_s6 + $0xf0] sm:$0xff] }
 0x14f   :  { %v993_v51 = vpop.permute.xlu1 %992 }
 0x150   :  { %v999_v49 = vsel %vm151_vm2, %v993_v51, %v4782_v12  ;;  %v1000_v38 = vsel %vm151_vm2, %v991_v26, %v993_v51  ;;  %v997_v28 = vpop.permute.xlu0 %996  ;;  %v4873_v56 = vperm.slane %v1099_v3, 0  ;;  %v3418_v51 = vld [vmem:[%s6463_s6 + $0xe8] sm:$0xff] }
 0x151   :  { %v1013_v15 = vmul.f32 %v1005_v54, %v1000_v38  ;;  %v1014_v20 = vmul.f32 %v1006_v23, %v999_v49  ;;  %v998_v55 = vsel %vm151_vm2, %v4782_v12, %v997_v28  ;;  %v1001_v22 = vsel %vm151_vm2, %v997_v28, %v991_v26 }
 0x152   :  { %v1015_v46 = vmul.f32 %v1007_v7, %v998_v55  ;;  %v1012_v50 = vmul.f32 %v1004_v17, %v1001_v22  ;;  %1488 = vrot.lane.b32.xlu2 %v4381_v9, %s3903_s30 }
 0x153   :  { %v1037_v30 = vperm.slane %v1013_v15, 0  ;;  %v1038_v43 = vperm.slane %v1014_v20, 0  ;;  %v3420_v15 = vld [vmem:[%s6463_s6 + $0xf8] sm:$0xff] }
 0x154   :  { %v1039_v10 = vperm.slane %v1015_v46, 0  ;;  %v1036_v18 = vperm.slane %v1012_v50, 0  ;;  %v4886_v13 = vpop.permute.xlu2 %1115 }
 0x155   :  { %v1045_v1 = vmul.f32 %v1037_v30, %v4796_v42  ;;  %v1046_v12 = vmul.f32 %v1038_v43, %v4796_v42  ;;  %1486 = vrot.lane.b32.xlu1 %v4375_v29, %s3903_s30  ;;  %v1135_v45 = vmul.f32 %v4873_v56, %v4886_v13 }
 0x156   :  { %v1047_v61 = vmul.f32 %v1039_v10, %v4796_v42  ;;  %1510 = vperm.xlu0 %3866, %v3417_v8   ;;  %v1044_v47 = vmul.f32 %v1036_v18, %v4796_v42 }
 0x157   :  { %v1019_v35 = vpop.permute.xlu1 %1018  ;;  %v4892_v41 = vadd.f32 %v1045_v1, %v958_v27  ;;  %v4894_v48 = vadd.f32 %v1046_v12, %v959_v58 }
 0x158   :  { %v1040_v31 = vmul.f32 %v1036_v18, %v1019_v35  ;;  %v1041_v25 = vmul.f32 %v1037_v30, %v1019_v35  ;;  %v1042_v26 = vmul.f32 %v1038_v43, %v1019_v35  ;;  %v1043_v6 = vmul.f32 %v1039_v10, %v1019_v35  ;;  %v1029_v59 = vpop.permute.xlu0 %1028 }
 0x159   :  { %v1048_v54 = vmul.f32 %v1036_v18, %v1029_v59  ;;  %v1049_v23 = vmul.f32 %v1037_v30, %v1029_v59  ;;  %v1050_v52 = vmul.f32 %v1038_v43, %v1029_v59  ;;  %v1051_v7 = vmul.f32 %v1039_v10, %v1029_v59 }
 0x15a   :  { %v1056_v42 = vadd.f32 %v1040_v31, %v4832_v24  ;;  %v1057_v27 = vadd.f32 %v1041_v25, %v4799_v19  ;;  %v1058_v58 = vadd.f32 %v1042_v26, %v4807_v16  ;;  %v1059_v3 = vadd.f32 %v1043_v6, %v4835_v57  ;;  %1520 = vperm.xlu2 %3865, %v3419_v39   ;;  %v3423_v6 = vld [vmem:[%s6463_s6 + $0x108] sm:$0xff] }
 0x15b   :  { %v1064_v17 = vadd.f32 %v1048_v54, %v961_v11  ;;  %v1065_v49 = vadd.f32 %v1049_v23, %v962_v44  ;;  %v1066_v38 = vadd.f32 %v1050_v52, %v963_v4  ;;  %v1067_v28 = vadd.f32 %v1051_v7, %v964_v5 }
 0x15c   :  { %v4910_v24 = vadd.f32 %v1044_v47, %v4825_v36  ;;  %v4913_v19 = vadd.f32 %v1047_v61, %v4827_v32  ;;  %v4915_v16 = vpop.permute.xlu2 %1166  ;;  %v1092_v44 = vperm.slane %v4846_v60, 1 }
 0x15d   :  { %1515 = vperm.xlu1 %3867, %v3418_v51   ;;  %v4917_v57 = vadd.f32 %v1135_v45, %v1064_v17 }
 0x15e   :  { %1525 = vperm.xlu0 %3866, %v3420_v15  }
 0x15f   :  { %v1034_v11 = vpop.permute.xlu1 %1033 }
 0x160   :  { %v1052_v4 = vmul.f32 %v1036_v18, %v1034_v11  ;;  %v1053_v5 = vmul.f32 %v1037_v30, %v1034_v11  ;;  %v1054_v20 = vmul.f32 %v1038_v43, %v1034_v11  ;;  %v1055_v55 = vmul.f32 %v1039_v10, %v1034_v11  ;;  %v1080_v22 = vpop.permute.xlu0 %1079  ;;  %v3422_v18 = vld [vmem:[%s6463_s6 + $0x100] sm:$0xff] }
 0x161   :  { %v1087_v36 = vsel %vm240_vm1, %v4829_v2, %v1080_v22  ;;  %v1093_v2 = vperm.slane %v4846_v60, 2 }
 0x162   :  { %v1068_v32 = vadd.f32 %v1052_v4, %v4838_v62  ;;  %v1069_v46 = vadd.f32 %v1053_v5, %v4802_v63  ;;  %v1070_v50 = vadd.f32 %v1054_v20, %v4810_v33  ;;  %v1071_v8 = vadd.f32 %v1055_v55, %v4841_v53  ;;  %1571 = vrot.lane.b32.xlu2 %v4358_v40, %s3904_s24  ;;  %v3425_v4 = vld [vmem:[%s6463_s6 + $0x118] sm:$0xff] }
 0x163   :  { %v1100_v1 = vmul.f32 %v1092_v44, %v1087_v36  ;;  %v1094_v62 = vperm.slane %v4846_v60, 3  ;;  %v3424_v36 = vld [vmem:[%s6463_s6 + $0x110] sm:$0xff] }
 0x164   :  { %v4931_v43 = vpop.permute.xlu2 %1192 }
 0x165   :  { %v1124_v30 = vperm.slane %v1100_v1, 0  ;;  %1569 = vrot.lane.b32.xlu1 %v4369_v21, %s3904_s24 }
 0x166   :  { %1573 = vrot.lane.b32.xlu0 %v4375_v29, %s3904_s24 }
 0x167   :  { %v1136_v63 = vmul.f32 %v1124_v30, %v4886_v13  ;;  %v1082_v33 = vpop.permute.xlu1 %1081 }
 0x168   :  { %v1085_v53 = vsel %vm240_vm1, %v1082_v33, %v4857_v14  ;;  %v1086_v10 = vsel %vm240_vm1, %v1080_v22, %v1082_v33  ;;  %v1106_v12 = vpop.permute.xlu0 %1105 }
 0x169   :  { %v1101_v61 = vmul.f32 %v1093_v2, %v1086_v10  ;;  %v1102_v60 = vmul.f32 %v1094_v62, %v1085_v53  ;;  %v1127_v45 = vmul.f32 %v4873_v56, %v1106_v12  ;;  %v1128_v47 = vmul.f32 %v1124_v30, %v1106_v12  ;;  %v1652_v10 = vld [vmem:[%s6464_s7 + $0x8] sm:$0xff] }
 0x16a   :  { %v4947_v35 = vadd.f32 %v1136_v63, %v1065_v49  ;;  %1597 = vperm.xlu2 %3865, %v3422_v18   ;;  %v1654_v18 = vld [vmem:[%s6464_s7 + $0x18] sm:$0xff] }
 0x16b   :  { %v1125_v31 = vperm.slane %v1101_v61, 0  ;;  %v1126_v25 = vperm.slane %v1102_v60, 0  ;;  %v4949_v26 = vadd.f32 %v1127_v45, %v1056_v42  ;;  %v4951_v14 = vadd.f32 %v1128_v47, %v1057_v27 }
 0x16c   :  { %v4960_v52 = vpop.permute.xlu2 %1207 }
 0x16d   :  { %v1137_v59 = vmul.f32 %v1125_v31, %v4886_v13  ;;  %v1138_v39 = vmul.f32 %v1126_v25, %v4886_v13  ;;  %v1129_v54 = vmul.f32 %v1125_v31, %v1106_v12  ;;  %v1130_v23 = vmul.f32 %v1126_v25, %v1106_v12  ;;  %1575 = vrot.lane.b32.xlu1 %v4381_v9, %s3904_s24 }
 0x16e   :  { %1602 = vperm.xlu0 %3866, %v3423_v6  }
 0x16f   :  { %v4962_v7 = vadd.f32 %v1129_v54, %v1058_v58  ;;  %v4964_v42 = vadd.f32 %v1130_v23, %v1059_v3  ;;  %v1111_v27 = vpop.permute.xlu1 %1110  ;;  %v4966_v51 = vadd.f32 %v1137_v59, %v1066_v38  ;;  %v4968_v17 = vadd.f32 %v1138_v39, %v1067_v28 }
 0x170   :  { %v1131_v49 = vmul.f32 %v4873_v56, %v1111_v27  ;;  %v1132_v13 = vmul.f32 %v1124_v30, %v1111_v27  ;;  %v1133_v15 = vmul.f32 %v1125_v31, %v1111_v27  ;;  %v1134_v11 = vmul.f32 %v1126_v25, %v1111_v27  ;;  %v1121_v44 = vpop.permute.xlu0 %1120 }
 0x171   :  { %v1139_v58 = vmul.f32 %v4873_v56, %v1121_v44  ;;  %v1140_v5 = vmul.f32 %v1124_v30, %v1121_v44  ;;  %v1141_v3 = vmul.f32 %v1125_v31, %v1121_v44  ;;  %v1142_v20 = vmul.f32 %v1126_v25, %v1121_v44  ;;  %v3402_v56 = vld [vmem:[%s6460_s2 + $0x3] ss:$8 sm:$0xf] }
 0x172   :  { %v4976_v38 = vadd.f32 %v1131_v49, %v4910_v24  ;;  %v1148_v28 = vadd.f32 %v1132_v13, %v4892_v41  ;;  %v1149_v55 = vadd.f32 %v1133_v15, %v4894_v48  ;;  %v4981_v22 = vadd.f32 %v1134_v11, %v4913_v19  ;;  %1612 = vperm.xlu2 %3865, %v3425_v4   ;;  %v1651_v41 = vld [vmem:[%s6464_s7] sm:$0xff] }
 0x173   :  { %v4989_v1 = vadd.f32 %v1139_v58, %v1068_v32  ;;  %v1156_v30 = vadd.f32 %v1140_v5, %v1069_v46  ;;  %v1157_v24 = vadd.f32 %v1141_v3, %v1070_v50  ;;  %v4991_v2 = vadd.f32 %v1142_v20, %v1071_v8  ;;  %v1653_v46 = vld [vmem:[%s6464_s7 + $0x10] sm:$0xff] }
 0x174   :  { %v1264_v48 = vpop.permute.xlu2 %1263  ;;  %v1179_v19 = vperm.slane %v3402_v56, 1  ;;  %v1180_v62 = vperm.slane %v3402_v56, 2  ;;  %v1181_v31 = vperm.slane %v3402_v56, 3 }
 0x175   :  { %1607 = vperm.xlu1 %3867, %v3424_v36   ;;  %v1279_v36 = vmul.f32 %v1264_v48, %v4369_v21 }
 0x176   :  { %1657 = vperm.xlu0 %3866, %v1651_v41  }
 0x177   :  { %v1165_v63 = vpop.permute.xlu1 %1164 }
 0x178   :  { %v1174_v32 = vsel %vm329_vm3, %v1165_v63, %v4915_v16  ;;  %v1169_v33 = vpop.permute.xlu0 %1168 }
 0x179   :  { %v1187_v50 = vmul.f32 %v1179_v19, %v1174_v32  ;;  %v1173_v8 = vsel %vm329_vm3, %v4915_v16, %v1169_v33  ;;  %v1178_v16 = vperm.slane %v3402_v56, 0  ;;  %v1280_v56 = vmul.f32 %v1264_v48, %v4358_v40 }
 0x17a   :  { %v1188_v53 = vmul.f32 %v1180_v62, %v1173_v8  ;;  %1667 = vperm.xlu2 %3865, %v1653_v46   ;;  %v1281_v19 = vmul.f32 %v1264_v48, %v4375_v29  ;;  %v1282_v62 = vmul.f32 %v1264_v48, %v4381_v9 }
 0x17b   :  { %v1211_v12 = vperm.slane %v1187_v50, 0 }
 0x17c   :  { %v1212_v61 = vperm.slane %v1188_v53, 0  ;;  %v5013_v47 = vpop.permute.xlu2 %1310 }
 0x17d   :  { %v1215_v60 = vmul.f32 %v1211_v12, %v4931_v43  ;;  %v1227_v45 = vmul.f32 %v1211_v12, %v4960_v52  ;;  %1662 = vperm.xlu1 %3867, %v1652_v10  }
 0x17e   :  { %v1216_v25 = vmul.f32 %v1212_v61, %v4931_v43  ;;  %v1228_v6 = vmul.f32 %v1212_v61, %v4960_v52  ;;  %1672 = vperm.xlu0 %3866, %v1654_v18  }
 0x17f   :  { %v1171_v59 = vpop.permute.xlu1 %1170  ;;  %v1231_v39 = vadd.f32 %v1215_v60, %v4951_v14  ;;  %v5018_v54 = vadd.f32 %v1227_v45, %v1156_v30 }
 0x180   :  { %v1172_v23 = vsel %vm329_vm3, %v1169_v33, %v1171_v59  ;;  %v1175_v27 = vsel %vm329_vm3, %v1171_v59, %v1165_v63  ;;  %v1198_v49 = vpop.permute.xlu0 %1197  ;;  %v1232_v13 = vadd.f32 %v1216_v25, %v4962_v7  ;;  %v5025_v15 = vadd.f32 %v1228_v6, %v1157_v24 }
 0x181   :  { %v1186_v11 = vmul.f32 %v1178_v16, %v1175_v27  ;;  %v1189_v44 = vmul.f32 %v1181_v31, %v1172_v23  ;;  %v1219_v4 = vmul.f32 %v1211_v12, %v1198_v49  ;;  %v1220_v58 = vmul.f32 %v1212_v61, %v1198_v49 }
 0x183   :  { %v1210_v5 = vperm.slane %v1186_v11, 0  ;;  %v1213_v3 = vperm.slane %v1189_v44, 0  ;;  %v1235_v14 = vadd.f32 %v1219_v4, %v1148_v28  ;;  %v1236_v20 = vadd.f32 %v1220_v58, %v1149_v55 }
 0x184   :  { %v5035_v28 = vpop.permute.xlu2 %1336 }
 0x185   :  { %v1214_v30 = vmul.f32 %v1210_v5, %v4931_v43  ;;  %v1217_v41 = vmul.f32 %v1213_v3, %v4931_v43  ;;  %v1226_v7 = vmul.f32 %v1210_v5, %v4960_v52  ;;  %v1229_v24 = vmul.f32 %v1213_v3, %v4960_v52 }
 0x186   :  { %v1218_v63 = vmul.f32 %v1210_v5, %v1198_v49  ;;  %v1221_v32 = vmul.f32 %v1213_v3, %v1198_v49 }
 0x187   :  { %v1203_v55 = vpop.permute.xlu1 %1202  ;;  %v1230_v33 = vadd.f32 %v1214_v30, %v4949_v26  ;;  %v1233_v46 = vadd.f32 %v1217_v41, %v4964_v42  ;;  %v1242_v50 = vadd.f32 %v1226_v7, %v4989_v1  ;;  %v1245_v43 = vadd.f32 %v1229_v24, %v4991_v2  ;;  %v3411_v30 = vld [vmem:[%s6460_s2 + $0x4] ss:$8 sm:$0xf] }
 0x188   :  { %v1234_v8 = vadd.f32 %v1218_v63, %v4976_v38  ;;  %v1237_v52 = vadd.f32 %v1221_v32, %v4981_v22  ;;  %v1222_v53 = vmul.f32 %v1210_v5, %v1203_v55  ;;  %v1223_v10 = vmul.f32 %v1211_v12, %v1203_v55  ;;  %v1254_v48 = vpop.permute.xlu0 %1253 }
 0x189   :  { %v1224_v18 = vmul.f32 %v1212_v61, %v1203_v55  ;;  %v1225_v60 = vmul.f32 %v1213_v3, %v1203_v55  ;;  %v1271_v45 = vmul.f32 %v1254_v48, %v4369_v21  ;;  %v1272_v16 = vmul.f32 %v1254_v48, %v4358_v40 }
 0x18a   :  { %v1238_v26 = vadd.f32 %v1222_v53, %v4917_v57  ;;  %v1239_v42 = vadd.f32 %v1223_v10, %v4947_v35  ;;  %v1273_v1 = vmul.f32 %v1254_v48, %v4375_v29  ;;  %v1274_v2 = vmul.f32 %v1254_v48, %v4381_v9 }
 0x18b   :  { %v1240_v38 = vadd.f32 %v1224_v18, %v4966_v51  ;;  %v1241_v22 = vadd.f32 %v1225_v60, %v4968_v17  ;;  %v1287_v12 = vadd.f32 %v1271_v45, %v1230_v33  ;;  %v1288_v31 = vadd.f32 %v1272_v16, %v1231_v39 }
 0x18c   :  { %v5051_v61 = vadd.f32 %v1273_v1, %v1232_v13  ;;  %v5053_v25 = vadd.f32 %v1274_v2, %v1233_v46  ;;  %v5055_v6 = vadd.f32 %v1279_v36, %v1238_v26  ;;  %v5057_v59 = vadd.f32 %v1280_v56, %v1239_v42  ;;  %v1352_v13 = vpop.permute.xlu2 %1351 }
 0x18d   :  { %v5059_v57 = vadd.f32 %v1281_v19, %v1240_v38  ;;  %v5061_v35 = vadd.f32 %v1282_v62, %v1241_v22  ;;  %v1322_v19 = vperm.slane %v3411_v30, 0  ;;  %v1324_v46 = vperm.slane %v3411_v30, 2 }
 0x18f   :  { %v1259_v23 = vpop.permute.xlu1 %1258 }
 0x190   :  { %v1275_v27 = vmul.f32 %v1259_v23, %v4369_v21  ;;  %v1276_v51 = vmul.f32 %v1259_v23, %v4358_v40  ;;  %v1277_v17 = vmul.f32 %v1259_v23, %v4375_v29  ;;  %v1278_v39 = vmul.f32 %v1259_v23, %v4381_v9  ;;  %v1269_v49 = vpop.permute.xlu0 %1268 }
 0x191   :  { %v1283_v11 = vmul.f32 %v1269_v49, %v4369_v21  ;;  %v1284_v44 = vmul.f32 %v1269_v49, %v4358_v40  ;;  %v1285_v4 = vmul.f32 %v1269_v49, %v4375_v29  ;;  %v1286_v58 = vmul.f32 %v1269_v49, %v4381_v9 }
 0x192   :  { %v1291_v5 = vadd.f32 %v1275_v27, %v1234_v8  ;;  %v1292_v3 = vadd.f32 %v1276_v51, %v1235_v14  ;;  %v1293_v36 = vadd.f32 %v1277_v17, %v1236_v20  ;;  %v1294_v56 = vadd.f32 %v1278_v39, %v1237_v52 }
 0x193   :  { %v1299_v41 = vadd.f32 %v1283_v11, %v1242_v50  ;;  %v1300_v7 = vadd.f32 %v1284_v44, %v5018_v54  ;;  %v1301_v24 = vadd.f32 %v1285_v4, %v5025_v15  ;;  %v1302_v21 = vadd.f32 %v1286_v58, %v1245_v43 }
 0x194   :  { %v1323_v40 = vperm.slane %v3411_v30, 1  ;;  %v5082_v32 = vpop.permute.xlu2 %1399  ;;  %v1325_v50 = vperm.slane %v3411_v30, 3 }
 0x197   :  { %v1309_v62 = vpop.permute.xlu1 %1308 }
 0x198   :  { %v1318_v29 = vsel %vm475_vm4, %v1309_v62, %v5013_v47  ;;  %v1313_v9 = vpop.permute.xlu0 %1312 }
 0x199   :  { %v1330_v14 = vmul.f32 %v1322_v19, %v1318_v29  ;;  %v1317_v20 = vsel %vm475_vm4, %v5013_v47, %v1313_v9 }
 0x19a   :  { %v1331_v63 = vmul.f32 %v1323_v40, %v1317_v20 }
 0x19b   :  { %v1354_v54 = vperm.slane %v1330_v14, 0 }
 0x19c   :  { %v1355_v55 = vperm.slane %v1331_v63, 0  ;;  %v5102_v23 = vpop.permute.xlu2 %1428 }
 0x19d   :  { %v1358_v15 = vmul.f32 %v1354_v54, %v5035_v28  ;;  %v1370_v33 = vmul.f32 %v1354_v54, %v1352_v13 }
 0x19e   :  { %v1359_v43 = vmul.f32 %v1355_v55, %v5035_v28  ;;  %v1371_v8 = vmul.f32 %v1355_v55, %v1352_v13 }
 0x19f   :  { %v1315_v52 = vpop.permute.xlu1 %1314  ;;  %v5086_v53 = vadd.f32 %v1358_v15, %v1287_v12  ;;  %v5088_v10 = vadd.f32 %v1370_v33, %v1299_v41 }
 0x1a0   :  { %v1316_v47 = vsel %vm475_vm4, %v1313_v9, %v1315_v52  ;;  %v1319_v48 = vsel %vm475_vm4, %v1315_v52, %v1309_v62  ;;  %v1342_v18 = vpop.permute.xlu0 %1341  ;;  %v5094_v60 = vadd.f32 %v1359_v43, %v1288_v31  ;;  %v5096_v45 = vadd.f32 %v1371_v8, %v1300_v7 }
 0x1a1   :  { %v1332_v16 = vmul.f32 %v1324_v46, %v1316_v47  ;;  %v1333_v26 = vmul.f32 %v1325_v50, %v1319_v48  ;;  %v1362_v42 = vmul.f32 %v1354_v54, %v1342_v18  ;;  %v1363_v1 = vmul.f32 %v1355_v55, %v1342_v18 }
 0x1a3   :  { %v1356_v2 = vperm.slane %v1332_v16, 0  ;;  %v1357_v38 = vperm.slane %v1333_v26, 0  ;;  %v5098_v22 = vadd.f32 %v1362_v42, %v1291_v5  ;;  %v5100_v12 = vadd.f32 %v1363_v1, %v1292_v3 }
 0x1a5   :  { %v1360_v27 = vmul.f32 %v1356_v2, %v5035_v28  ;;  %v1361_v51 = vmul.f32 %v1357_v38, %v5035_v28  ;;  %v1372_v31 = vmul.f32 %v1356_v2, %v1352_v13  ;;  %v1373_v17 = vmul.f32 %v1357_v38, %v1352_v13 }
 0x1a6   :  { %v1364_v39 = vmul.f32 %v1356_v2, %v1342_v18  ;;  %v1365_v49 = vmul.f32 %v1357_v38, %v1342_v18 }
 0x1a7   :  { %v1347_v11 = vpop.permute.xlu1 %1346  ;;  %v5107_v44 = vadd.f32 %v1360_v27, %v5051_v61  ;;  %v5110_v4 = vadd.f32 %v1361_v51, %v5053_v25  ;;  %v5112_v58 = vadd.f32 %v1372_v31, %v1301_v24  ;;  %v5114_v5 = vadd.f32 %v1373_v17, %v1302_v21 }
 0x1a8   :  { %v5116_v3 = vadd.f32 %v1364_v39, %v1293_v36  ;;  %v5118_v30 = vadd.f32 %v1365_v49, %v1294_v56  ;;  %v1366_v28 = vmul.f32 %v1354_v54, %v1347_v11  ;;  %v1367_v41 = vmul.f32 %v1355_v55, %v1347_v11  ;;  %v1396_v13 = vpop.permute.xlu0 %1395  ;;  %v1483_v36 = vpop.permute.xlu2 %1482  ;;  %v5165_v49 = vld [vmem:[%s6460_s2 + $0x7] ss:$8 sm:$0xf] }
 0x1a9   :  { %v1368_v7 = vmul.f32 %v1356_v2, %v1347_v11  ;;  %v1369_v19 = vmul.f32 %v1357_v38, %v1347_v11 }
 0x1aa   :  { %v5121_v40 = vadd.f32 %v1366_v28, %v5055_v6  ;;  %v5124_v61 = vadd.f32 %v1367_v41, %v5057_v59  ;;  %v3416_v6 = vld [vmem:[%s6460_s2 + $0x5] ss:$8 sm:$0xf]  ;;  %v3421_v59 = vld [vmem:[%s6460_s2 + $0x6] ss:$8 sm:$0xf] }
 0x1ab   :  { %v5127_v25 = vadd.f32 %v1368_v7, %v5059_v57  ;;  %v5130_v24 = vadd.f32 %v1369_v19, %v5061_v35  ;;  %v1409_v35 = vperm.slane %v3416_v6, 0  ;;  %v1410_v63 = vperm.slane %v3416_v6, 1 }
 0x1ac   :  { %v1499_v54 = vperm.slane %v3421_v59, 3  ;;  %v1411_v33 = vperm.slane %v3416_v6, 2  ;;  %v1412_v48 = vperm.slane %v3416_v6, 3  ;;  %v1497_v17 = vperm.slane %v3421_v59, 1 }
 0x1af   :  { %v1398_v56 = vpop.permute.xlu1 %1397 }
 0x1b0   :  { %v1402_v21 = vpop.permute.xlu0 %1401  ;;  %v1489_v9 = vpop.permute.xlu2 %1488  ;;  %v1404_v55 = vsel %vm564_vm5, %v1398_v56, %v5082_v32  ;;  %v1405_v15 = vsel %vm564_vm5, %v1396_v13, %v1398_v56 }
 0x1b1   :  { %v1493_v46 = vsel %vm653_vm6, %v1489_v9, %v1483_v36  ;;  %v1403_v50 = vsel %vm564_vm5, %v5082_v32, %v1402_v21  ;;  %v1417_v52 = vmul.f32 %v1409_v35, %v1405_v15  ;;  %v1418_v47 = vmul.f32 %v1410_v63, %v1404_v55 }
 0x1b2   :  { %v1507_v18 = vmul.f32 %v1499_v54, %v1493_v46  ;;  %v1406_v16 = vsel %vm564_vm5, %v1402_v21, %v1396_v13  ;;  %v1419_v26 = vmul.f32 %v1411_v33, %v1403_v50  ;;  %v1496_v32 = vperm.slane %v3421_v59, 0 }
 0x1b3   :  { %v1441_v42 = vperm.slane %v1417_v52, 0  ;;  %v1442_v1 = vperm.slane %v1418_v47, 0  ;;  %v1420_v2 = vmul.f32 %v1412_v48, %v1406_v16  ;;  %v1498_v13 = vperm.slane %v3421_v59, 2 }
 0x1b4   :  { %v5156_v27 = vperm.slane %v1507_v18, 0  ;;  %v1443_v51 = vperm.slane %v1419_v26, 0  ;;  %v1583_v54 = vperm.slane %v5165_v49, 0 }
 0x1b5   :  { %v1449_v11 = vmul.f32 %v1441_v42, %v5102_v23  ;;  %v1450_v28 = vmul.f32 %v1442_v1, %v5102_v23  ;;  %v1444_v41 = vperm.slane %v1420_v2, 0 }
 0x1b6   :  { %v1451_v7 = vmul.f32 %v1443_v51, %v5102_v23 }
 0x1b7   :  { %v1424_v62 = vpop.permute.xlu1 %1423  ;;  %v1452_v46 = vmul.f32 %v1444_v41, %v5102_v23  ;;  %v5181_v52 = vadd.f32 %v1449_v11, %v5098_v22 }
 0x1b8   :  { %v1434_v29 = vpop.permute.xlu0 %1433  ;;  %v5140_v57 = vpop.permute.xlu2 %1520  ;;  %v1445_v56 = vmul.f32 %v1441_v42, %v1424_v62  ;;  %v1446_v6 = vmul.f32 %v1442_v1, %v1424_v62  ;;  %v1447_v35 = vmul.f32 %v1443_v51, %v1424_v62  ;;  %v1448_v55 = vmul.f32 %v1444_v41, %v1424_v62 }
 0x1b9   :  { %v1543_v19 = vmul.f32 %v5156_v27, %v5140_v57  ;;  %v1453_v15 = vmul.f32 %v1441_v42, %v1434_v29  ;;  %v1456_v33 = vmul.f32 %v1444_v41, %v1434_v29  ;;  %v1455_v48 = vmul.f32 %v1443_v51, %v1434_v29 }
 0x1ba   :  { %v1461_v47 = vadd.f32 %v1445_v56, %v5086_v53  ;;  %v1462_v62 = vadd.f32 %v1446_v6, %v5094_v60  ;;  %v1463_v16 = vadd.f32 %v1447_v35, %v5107_v44  ;;  %v1464_v22 = vadd.f32 %v1448_v55, %v5110_v4 }
 0x1bb   :  { %v1472_v2 = vadd.f32 %v1456_v33, %v5130_v24  ;;  %v5210_v35 = vadd.f32 %v1451_v7, %v5116_v3 }
 0x1bd   :  { %v1559_v6 = vadd.f32 %v1543_v19, %v1472_v2 }
 0x1bf   :  { %v5132_v14 = vpop.permute.xlu1 %1438 }
 0x1c0   :  { %v1485_v20 = vpop.permute.xlu0 %1484  ;;  %v1572_v38 = vpop.permute.xlu2 %1571  ;;  %v1457_v60 = vmul.f32 %v1441_v42, %v5132_v14 }
 0x1c1   :  { %v1492_v21 = vsel %vm653_vm6, %v1483_v36, %v1485_v20  ;;  %v5184_v36 = vadd.f32 %v1450_v28, %v5100_v12  ;;  %v1469_v12 = vadd.f32 %v1453_v15, %v5121_v40  ;;  %v1471_v40 = vadd.f32 %v1455_v48, %v5127_v25 }
 0x1c2   :  { %v1504_v50 = vmul.f32 %v1496_v32, %v1492_v21  ;;  %v1458_v28 = vmul.f32 %v1442_v1, %v5132_v14  ;;  %v1585_v21 = vperm.slane %v5165_v49, 2  ;;  %v5214_v25 = vadd.f32 %v1457_v60, %v5088_v10 }
 0x1c4   :  { %v1528_v32 = vperm.slane %v1504_v50, 0  ;;  %v5227_v3 = vadd.f32 %v1458_v28, %v5096_v45 }
 0x1c7   :  { %v1487_v43 = vpop.permute.xlu1 %1486 }
 0x1c8   :  { %v5152_v8 = vpop.permute.xlu0 %1510  ;;  %v1491_v63 = vsel %vm653_vm6, %v1485_v20, %v1487_v43  ;;  %v1490_v59 = vsel %vm653_vm6, %v1487_v43, %v1489_v9  ;;  %v1454_v20 = vmul.f32 %v1442_v1, %v1434_v29  ;;  %v5189_v26 = vpop.permute.xlu2 %1597  ;;  %v1584_v43 = vperm.slane %v5165_v49, 1 }
 0x1c9   :  { %v1505_v18 = vmul.f32 %v1497_v17, %v1491_v63  ;;  %v1506_v9 = vmul.f32 %v1498_v13, %v1490_v59  ;;  %v15_v17 = vstv %s6468_s9  ;;  %v1459_v13 = vmul.f32 %v1443_v51, %v5132_v14  ;;  %s5286_s9 = smov 0  }
 0x1ca   :  { %v1470_v4 = vadd.f32 %v1454_v20, %v5124_v61  ;;  %16 = vst [vmem:[#allocation5] sm:$0x1] %v15_v17  ;;  %v1460_v61 = vmul.f32 %v1444_v41, %v5132_v14  ;;  %v1540_v63 = vmul.f32 %v1528_v32, %v5140_v57  ;;  %v5218_v1 = vadd.f32 %v1452_v46, %v5118_v30 }
 0x1cb   :  { %v1529_v11 = vperm.slane %v1505_v18, 0  ;;  %v1530_v42 = vperm.slane %v1506_v9, 0  ;;  %v1532_v51 = vmul.f32 %v1528_v32, %v5152_v8  ;;  %v5230_v10 = vadd.f32 %v1459_v13, %v5112_v58 }
 0x1cc   :  { %v5242_v59 = vadd.f32 %v1460_v61, %v5114_v5  ;;  %v1556_v50 = vadd.f32 %v1540_v63, %v1469_v12 }
 0x1cd   :  { %v1534_v14 = vmul.f32 %v1530_v42, %v5152_v8  ;;  %v1541_v7 = vmul.f32 %v1529_v11, %v5140_v57  ;;  %v1542_v55 = vmul.f32 %v1530_v42, %v5140_v57  ;;  %v1548_v20 = vadd.f32 %v1532_v51, %v1461_v47 }
 0x1cf   :  { %v5158_v31 = vpop.permute.xlu1 %1515  ;;  %v1550_v9 = vadd.f32 %v1534_v14, %v1463_v16  ;;  %v1558_v60 = vadd.f32 %v1542_v55, %v1471_v40 }
 0x1d0   :  { %v5160_v39 = vpop.permute.xlu0 %1525  ;;  %v5244_v58 = vpop.permute.xlu2 %1612  ;;  %v1536_v5 = vmul.f32 %v1528_v32, %v5158_v31  ;;  %v1538_v47 = vmul.f32 %v1530_v42, %v5158_v31 }
 0x1d1   :  { %v1544_v12 = vmul.f32 %v1528_v32, %v5160_v39  ;;  %v1546_v17 = vmul.f32 %v1530_v42, %v5160_v39 }
 0x1d7   :  { %v1570_v23 = vpop.permute.xlu1 %1569 }
 0x1d8   :  { %v1579_v53 = vsel %vm742_vm7, %v1570_v23, %v1572_v38  ;;  %v1574_v29 = vpop.permute.xlu0 %1573 }
 0x1d9   :  { %v1578_v44 = vsel %vm742_vm7, %v1572_v38, %v1574_v29  ;;  %v1591_v24 = vmul.f32 %v1583_v54, %v1579_v53  ;;  %v1586_v38 = vperm.slane %v5165_v49, 3  ;;  %v1533_v54 = vmul.f32 %v1529_v11, %v5152_v8 }
 0x1da   :  { %v1592_v56 = vmul.f32 %v1584_v43, %v1578_v44  ;;  %v1535_v49 = vmul.f32 %v5156_v27, %v5152_v8  ;;  %v1537_v53 = vmul.f32 %v1529_v11, %v5158_v31  ;;  %v1545_v44 = vmul.f32 %v1529_v11, %v5160_v39 }
 0x1db   :  { %v5224_v19 = vperm.slane %v1591_v24, 0  ;;  %v1549_v48 = vadd.f32 %v1533_v54, %v1462_v62  ;;  %v1539_v62 = vmul.f32 %v5156_v27, %v5158_v31 }
 0x1dc   :  { %v5233_v41 = vperm.slane %v1592_v56, 0  ;;  %v1551_v18 = vadd.f32 %v1535_v49, %v1464_v22 }
 0x1dd   :  { %v1619_v57 = vmul.f32 %v5224_v19, %v5189_v26 }
 0x1df   :  { %v1576_v30 = vpop.permute.xlu1 %1575  ;;  %v1635_v24 = vadd.f32 %v1619_v57, %v1548_v20 }
 0x1e0   :  { %v1577_v15 = vsel %vm742_vm7, %v1574_v29, %v1576_v30  ;;  %v1580_v33 = vsel %vm742_vm7, %v1576_v30, %v1570_v23  ;;  %v1603_v45 = vpop.permute.xlu0 %1602  ;;  %v1620_v23 = vmul.f32 %v5233_v41, %v5189_v26  ;;  %v1557_v29 = vadd.f32 %v1541_v7, %v1470_v4  ;;  %v1668_v7 = vpop.permute.xlu2 %1667 }
 0x1e1   :  { %v1593_v8 = vmul.f32 %v1585_v21, %v1577_v15  ;;  %v1594_v46 = vmul.f32 %v1586_v38, %v1580_v33  ;;  %v1623_v4 = vmul.f32 %v5224_v19, %v1603_v45  ;;  %v1624_v40 = vmul.f32 %v5233_v41, %v1603_v45 }
 0x1e2   :  { %v1636_v13 = vadd.f32 %v1620_v23, %v1549_v48  ;;  %v1547_v30 = vmul.f32 %v5156_v27, %v5160_v39  ;;  %v1552_v15 = vadd.f32 %v1536_v5, %v5181_v52  ;;  %v1553_v33 = vadd.f32 %v1537_v53, %v5184_v36 }
 0x1e3   :  { %v1617_v43 = vperm.slane %v1593_v8, 0  ;;  %v5248_v2 = vperm.slane %v1594_v46, 0  ;;  %v1631_v27 = vmul.f32 %v5224_v19, %v5244_v58  ;;  %v1632_v36 = vmul.f32 %v5233_v41, %v5244_v58 }
 0x1e4   :  { %v1639_v52 = vadd.f32 %v1623_v4, %v1552_v15  ;;  %v1640_v57 = vadd.f32 %v1624_v40, %v1553_v33  ;;  %v1560_v23 = vadd.f32 %v1544_v12, %v5214_v25  ;;  %v1561_v5 = vadd.f32 %v1545_v44, %v5227_v3 }
 0x1e5   :  { %v1621_v22 = vmul.f32 %v1617_v43, %v5189_v26  ;;  %v1622_v16 = vmul.f32 %v5248_v2, %v5189_v26  ;;  %v1625_v55 = vmul.f32 %v1617_v43, %v1603_v45  ;;  %v1626_v8 = vmul.f32 %v5248_v2, %v1603_v45 }
 0x1e6   :  { %v1563_v25 = vadd.f32 %v1547_v30, %v5242_v59  ;;  %v1648_v3 = vadd.f32 %v1632_v36, %v1561_v5 }
 0x1e7   :  { %v1608_v28 = vpop.permute.xlu1 %1607  ;;  %v1637_v56 = vadd.f32 %v1621_v22, %v1550_v9  ;;  %v1638_v61 = vadd.f32 %v1622_v16, %v1551_v18  ;;  %v1555_v18 = vadd.f32 %v1539_v62, %v5218_v1  ;;  %v1647_v62 = vadd.f32 %v1631_v27, %v1560_v23 }
 0x1e8   :  { %v1627_v31 = vmul.f32 %v5224_v19, %v1608_v28  ;;  %v1628_v21 = vmul.f32 %v5233_v41, %v1608_v28  ;;  %v1629_v38 = vmul.f32 %v1617_v43, %v1608_v28  ;;  %v1630_v26 = vmul.f32 %v5248_v2, %v1608_v28  ;;  %v1658_v32 = vpop.permute.xlu0 %1657 }
 0x1e9   :  { %v1675_v11 = vadd.f32 %v1658_v32, %v1635_v24  ;;  %v1676_v63 = vadd.f32 %v1658_v32, %v1636_v13  ;;  %v1677_v42 = vadd.f32 %v1658_v32, %v1637_v56  ;;  %v1678_v39 = vadd.f32 %v1658_v32, %v1638_v61 }
 0x1ea   :  { %v1643_v51 = vadd.f32 %v1627_v31, %v1556_v50  ;;  %v1644_v54 = vadd.f32 %v1628_v21, %v1557_v29  ;;  %v1645_v49 = vadd.f32 %v1629_v38, %v1558_v60  ;;  %v1646_v14 = vadd.f32 %v1630_v26, %v1559_v6 }
 0x1eb   :  { %1691 = vst [vmem:[#allocation3 + $0x28] sm:$0xff] %v1675_v11  ;;  %v1554_v6 = vadd.f32 %v1538_v47, %v5210_v35  ;;  %v1633_v35 = vmul.f32 %v1617_v43, %v5244_v58  ;;  %v1642_v1 = vadd.f32 %v1626_v8, %v1555_v18  ;;  %v1634_v29 = vmul.f32 %v5248_v2, %v5244_v58 }
 0x1ec   :  { %v1683_v46 = vadd.f32 %v1668_v7, %v1643_v51  ;;  %v1684_v20 = vadd.f32 %v1668_v7, %v1644_v54  ;;  %v1685_v48 = vadd.f32 %v1668_v7, %v1645_v49  ;;  %1692 = vst [vmem:[#allocation3 + $0x68] sm:$0xff] %v1676_v63  ;;  %v1686_v50 = vadd.f32 %v1668_v7, %v1646_v14 }
 0x1ed   :  { %1693 = vst [vmem:[#allocation3 + $0x10] sm:$0xff] %v1677_v42  ;;  %v1641_v9 = vadd.f32 %v1625_v55, %v1554_v6  ;;  %v1562_v41 = vadd.f32 %v1546_v17, %v5230_v10  ;;  %v1650_v12 = vadd.f32 %v1634_v29, %v1563_v25 }
 0x1ee   :  { %1699 = vst [vmem:[#allocation3 + $0x20] sm:$0xff] %v1683_v46 }
 0x1ef   :  { %1700 = vst [vmem:[#allocation3 + $0x78] sm:$0xff] %v1684_v20  ;;  %v1663_v45 = vpop.permute.xlu1 %1662  ;;  %v1649_v43 = vadd.f32 %v1633_v35, %v1562_v41 }
 0x1f0   :  { %1701 = vst [vmem:[#allocation3 + $0x18] sm:$0xff] %v1685_v48  ;;  %v1679_v53 = vadd.f32 %v1663_v45, %v1639_v52  ;;  %v1680_v19 = vadd.f32 %v1663_v45, %v1640_v57  ;;  %v1673_v60 = vpop.permute.xlu0 %1672  ;;  %v1681_v47 = vadd.f32 %v1663_v45, %v1641_v9  ;;  %v1682_v22 = vadd.f32 %v1663_v45, %v1642_v1 }
 0x1f1   :  { %1702 = vst [vmem:[#allocation3 + $0x58] sm:$0xff] %v1686_v50  ;;  %v1687_v16 = vadd.f32 %v1673_v60, %v1647_v62  ;;  %v1688_v44 = vadd.f32 %v1673_v60, %v1648_v3  ;;  %v1689_v24 = vadd.f32 %v1673_v60, %v1649_v43  ;;  %v1690_v58 = vadd.f32 %v1673_v60, %v1650_v12 }
 0x1f2   :  { %1694 = vst [vmem:[#allocation3 + $0x40] sm:$0xff] %v1678_v39 }
 0x1f3   :  { %1695 = vst [vmem:[#allocation3 + $0x48] sm:$0xff] %v1679_v53 }
 0x1f4   :  { %1696 = vst [vmem:[#allocation3 + $0x30] sm:$0xff] %v1680_v19 }
 0x1f5   :  { %1697 = vst [vmem:[#allocation3 + $0x70] sm:$0xff] %v1681_v47 }
 0x1f6   :  { %1698 = vst [vmem:[#allocation3 + $0x38] sm:$0xff] %v1682_v22 }
 0x1f7   :  { %1703 = vst [vmem:[#allocation3] sm:$0xff] %v1687_v16 }
 0x1f8   :  { %1704 = vst [vmem:[#allocation3 + $0x8] sm:$0xff] %v1688_v44 }
 0x1f9   :  { %1705 = vst [vmem:[#allocation3 + $0x60] sm:$0xff] %v1689_v24 }
 0x1fa   :  { %1706 = vst [vmem:[#allocation3 + $0x50] sm:$0xff] %v1690_v58 }
 0x1fb LB: > { %v5291_v10 = vld [vmem:[#allocation2 + $0x40] sm:$0xff]  ;;  %v5295_v2 = vld [vmem:[#allocation2 + $0x30] sm:$0xff]  ;;  %s3905_s29 = smov 17   ;;  %v5305_v4 = vld [vmem:[#allocation2 + $0x68] sm:$0xff]  ;;  %s3906_s13 = smov 16   ;;  %vm2951_vm8 = vcmask 261120   ;;  %s3894_s9 = sphi %s5286_s9, %s1712_s9  }
 0x1fc   : > { %v5293_v59 = vld [vmem:[#allocation2] sm:$0xff]  ;;  %1733 = vrot.lane.b32.xlu1 %v5291_v10, %s3905_s29  ;;  %1729 = vrot.lane.b32.xlu0 %v5295_v2, %s3905_s29  ;;  %v5307_v40 = vld [vmem:[#allocation2 + $0x50] sm:$0xff]  ;;  %v5317_v13 = vld [vmem:[#allocation2 + $0x58] sm:$0xff]  ;;  %s3907_s1 = smov 1   ;;  %s3908_s24 = smov 112  }
 0x1fd   : > { %1737 = vrot.lane.b32.xlu2 %v5293_v59, %s3905_s29  ;;  %v5303_v17 = vld [vmem:[#allocation2 + $0x60] sm:$0xff]  ;;  %v5315_v28 = vld [vmem:[#allocation2 + $0x70] sm:$0xff]  ;;  %v5329_v21 = vld [vmem:[#allocation2 + $0x78] sm:$0xff]  ;;  %s3909_s11 = smov 111   ;;  %s3910_s15 = smov 15  }
 0x1fe   : > { %v5319_v56 = vld [vmem:[#allocation2 + $0x20] sm:$0xff]  ;;  %v5327_v31 = vld [vmem:[#allocation2 + $0x10] sm:$0xff]  ;;  %v5331_v38 = vld [vmem:[#allocation2 + $0x8] sm:$0xff]  ;;  %s3911_s6 = smov 113   ;;  %s3912_s3 = smov 127  }
 0x1ff   : > { %v5339_v26 = vld [vmem:[#allocation2 + $0x48] sm:$0xff]  ;;  %v5341_v32 = vld [vmem:[#allocation2 + $0x38] sm:$0xff]  ;;  %s1712_s9 = sadd.s32 1, %s3894_s9  }
 0x200   : > { %v5343_v61 = vld [vmem:[#allocation2 + $0x18] sm:$0xff]  ;;  %v5351_v11 = vld [vmem:[#allocation2 + $0x28] sm:$0xff]  ;;  %p1709_p0 = scmp.ge.s32.totalorder %s1712_s9, 8  }
 0x201   : > { %v1777_v15 = vld [vmem:[%s6460_s2] ss:$8 sm:$0xf]  ;;  %vm3328_vm9 = vcmask (%p1709_p0), 1040384   ;;  %vm3330_vm10 = vcmask (%p1709_p0), 1042434   ;;  %vm3332_vm11 = vcmask (%p1709_p0), 1041408  }
 0x202   : > { %v5430_v33 = vperm.slane %v1777_v15, 0  ;;  %v1780_v48 = vperm.slane %v1777_v15, 1  ;;  %v1782_v52 = vperm.slane %v1777_v15, 3  ;;  %v1781_v57 = vperm.slane %v1777_v15, 2  ;;  %v3237_v37 = vld [vmem:[%s6466_s8 + $0x18] sm:$0xff] (%p1709_p0) }
 0x204   : > { %1735 = vrot.lane.b32.xlu1 %v5303_v17, %s3905_s29  ;;  %1731 = vrot.lane.b32.xlu0 %v5307_v40, %s3905_s29 }
 0x205   : > { %1739 = vrot.lane.b32.xlu2 %v5305_v4, %s3905_s29 }
 0x20c   : > { %1743 = vrot.lane.b32.xlu1 %v5315_v28, %s3905_s29  ;;  %1741 = vrot.lane.b32.xlu0 %v5319_v56, %s3905_s29 }
 0x20d   : > { %1745 = vrot.lane.b32.xlu2 %v5317_v13, %s3905_s29 }
 0x214   : > { %1749 = vrot.lane.b32.xlu1 %v5327_v31, %s3905_s29  ;;  %1747 = vrot.lane.b32.xlu0 %v5331_v38, %s3905_s29 }
 0x215   : > { %1751 = vrot.lane.b32.xlu2 %v5329_v21, %s3905_s29 }
 0x21c   : > { %1755 = vrot.lane.b32.xlu1 %v5339_v26, %s3905_s29  ;;  %1753 = vrot.lane.b32.xlu0 %v5343_v61, %s3905_s29 }
 0x21d   : > { %1757 = vrot.lane.b32.xlu2 %v5341_v32, %s3905_s29 }
 0x224   : > { %1819 = vrot.lane.b32.xlu1 %v5295_v2, %s3906_s13  ;;  %1759 = vrot.lane.b32.xlu0 %v5351_v11, %s3905_s29 }
 0x225   : > { %1821 = vrot.lane.b32.xlu2 %v5307_v40, %s3906_s13 }
 0x22c   : > { %1825 = vrot.lane.b32.xlu1 %v5303_v17, %s3906_s13  ;;  %1823 = vrot.lane.b32.xlu0 %v5291_v10, %s3906_s13 }
 0x22d   : > { %1827 = vrot.lane.b32.xlu2 %v5293_v59, %s3906_s13 }
 0x234   : > { %1831 = vrot.lane.b32.xlu1 %v5319_v56, %s3906_s13  ;;  %1829 = vrot.lane.b32.xlu0 %v5305_v4, %s3906_s13 }
 0x235   : > { %1833 = vrot.lane.b32.xlu2 %v5315_v28, %s3906_s13 }
 0x23c   : > { %2003 = vrot.lane.b32.xlu1 %v5291_v10, %s3907_s1  ;;  %1835 = vrot.lane.b32.xlu0 %v5317_v13, %s3906_s13 }
 0x23d   : > { %2005 = vrot.lane.b32.xlu2 %v5303_v17, %s3907_s1 }
 0x244   : > { %2013 = vrot.lane.b32.xlu1 %v5315_v28, %s3907_s1  ;;  %2011 = vrot.lane.b32.xlu0 %v5319_v56, %s3907_s1 }
 0x245   : > { %2027 = vrot.lane.b32.xlu2 %v5341_v32, %s3907_s1 }
 0x24c   : > { %1999 = vrot.lane.b32.xlu1 %v5295_v2, %s3907_s1  ;;  %2029 = vrot.lane.b32.xlu0 %v5351_v11, %s3907_s1 }
 0x24d   : > { %2001 = vrot.lane.b32.xlu2 %v5307_v40, %s3907_s1 }
 0x254   : > { %2009 = vrot.lane.b32.xlu1 %v5305_v4, %s3907_s1  ;;  %2007 = vrot.lane.b32.xlu0 %v5293_v59, %s3907_s1 }
 0x255   : > { %2023 = vrot.lane.b32.xlu2 %v5343_v61, %s3907_s1 }
 0x257   : > { %v1738_v63 = vpop.permute.xlu2 %1737 }
 0x25c   : > { %2289 = vrot.lane.b32.xlu1 %v5291_v10, %s3908_s24  ;;  %2025 = vrot.lane.b32.xlu0 %v5339_v26, %s3907_s1 }
 0x25d   : > { %2291 = vrot.lane.b32.xlu2 %v5303_v17, %s3908_s24 }
 0x25f   : > { %v1740_v42 = vpop.permute.xlu2 %1739 }
 0x264   : > { %2299 = vrot.lane.b32.xlu1 %v5315_v28, %s3908_s24  ;;  %2297 = vrot.lane.b32.xlu0 %v5319_v56, %s3908_s24 }
 0x265   : > { %2305 = vrot.lane.b32.xlu2 %v5327_v31, %s3908_s24 }
 0x267   : > { %v1746_v51 = vpop.permute.xlu2 %1745 }
 0x268   : > { %v1765_v60 = vsel %vm63_vm0, %v1738_v63, %v1746_v51 }
 0x26c   : > { %2379 = vrot.lane.b32.xlu1 %v5291_v10, %s3909_s11  ;;  %2307 = vrot.lane.b32.xlu0 %v5329_v21, %s3908_s24 }
 0x26d   : > { %2381 = vrot.lane.b32.xlu2 %v5303_v17, %s3909_s11 }
 0x26e   : > { %v1734_v54 = vpop.permute.xlu1 %1733  ;;  %v1730_v14 = vpop.permute.xlu0 %1729 }
 0x26f   : > { %v5413_v49 = vpop.permute.xlu2 %1751  ;;  %v1769_v47 = vsel %vm63_vm0, %v1730_v14, %v1738_v63  ;;  %v1789_v63 = vmul.f32 %v1781_v57, %v1765_v60  ;;  %v5537_v60 = vld [vmem:[%s6460_s2 + $0x3] ss:$8 sm:$0xf] }
 0x274   : > { %2389 = vrot.lane.b32.xlu1 %v5315_v28, %s3909_s11  ;;  %2387 = vrot.lane.b32.xlu0 %v5319_v56, %s3909_s11 }
 0x275   : > { %2395 = vrot.lane.b32.xlu2 %v5327_v31, %s3909_s11 }
 0x276   : > { %v5421_v30 = vpop.permute.xlu1 %1735  ;;  %v1732_v55 = vpop.permute.xlu0 %1731 }
 0x277   : > { %v1758_v7 = vpop.permute.xlu2 %1757  ;;  %v1770_v19 = vsel %vm63_vm0, %v1732_v55, %v1740_v42 }
 0x278   : > { %v1775_v8 = vsel %vm63_vm0, %v1758_v7, %v1734_v54  ;;  %v1792_v22 = vmul.f32 %v1780_v48, %v1770_v19 }
 0x279   : > { %v1795_v18 = vmul.f32 %v5430_v33, %v1775_v8 }
 0x27c   : > { %1913 = vrot.lane.b32.xlu1 %v5291_v10, %s3910_s15  ;;  %2397 = vrot.lane.b32.xlu0 %v5329_v21, %s3909_s11 }
 0x27d   : > { %1915 = vrot.lane.b32.xlu2 %v5303_v17, %s3910_s15 }
 0x27e   : > { %v1744_v46 = vpop.permute.xlu1 %1743  ;;  %v1742_v50 = vpop.permute.xlu0 %1741 }
 0x27f   : > { %v5436_v20 = vpop.permute.xlu2 %1821  ;;  %v1771_v6 = vsel %vm63_vm0, %v1734_v54, %v1742_v50 }
 0x280   : > { %v1796_v27 = vmul.f32 %v1780_v48, %v1771_v6 }
 0x282   : > { %v1807_v39 = vpack.c.bf16 %v1796_v27, %v1795_v18 }
 0x284   : > { %1923 = vrot.lane.b32.xlu1 %v5315_v28, %s3910_s15  ;;  %1815 = vst [vmem:[#allocation4 + $0x20] sm:$0xff] %v1807_v39  ;;  %1921 = vrot.lane.b32.xlu0 %v5319_v56, %s3910_s15 }
 0x285   : > { %1937 = vrot.lane.b32.xlu2 %v5341_v32, %s3910_s15 }
 0x286   : > { %v1750_v36 = vpop.permute.xlu1 %1749  ;;  %v1748_v5 = vpop.permute.xlu0 %1747 }
 0x287   : > { %v5447_v45 = vpop.permute.xlu2 %1827  ;;  %v1763_v9 = vsel %vm63_vm0, %v1750_v36, %v1758_v7  ;;  %v1767_v23 = vsel %vm63_vm0, %v1742_v50, %v1750_v36  ;;  %v1766_v29 = vsel %vm63_vm0, %v1740_v42, %v1748_v5  ;;  %v1788_v42 = vmul.f32 %v1780_v48, %v1769_v47 }
 0x288   : > { %v1797_v35 = vmul.f32 %v1781_v57, %v1767_v23  ;;  %v1798_v1 = vmul.f32 %v1782_v52, %v1763_v9  ;;  %v1793_v25 = vmul.f32 %v1781_v57, %v1766_v29  ;;  %v2049_v47 = vperm.slane %v5537_v60, 0 }
 0x28a   : > { %v1808_v53 = vpack.c.bf16 %v1798_v1, %v1797_v35 }
 0x28c   : > { %1816 = vst [vmem:[#allocation4 + $0x28] sm:$0xff] %v1808_v53  ;;  %2285 = vrot.lane.b32.xlu1 %v5295_v2, %s3908_s24  ;;  %1939 = vrot.lane.b32.xlu0 %v5351_v11, %s3910_s15 }
 0x28d   : > { %2287 = vrot.lane.b32.xlu2 %v5307_v40, %s3908_s24 }
 0x28e   : > { %v1756_v41 = vpop.permute.xlu1 %1755  ;;  %v1754_v16 = vpop.permute.xlu0 %1753 }
 0x28f   : > { %v5467_v62 = vpop.permute.xlu2 %1833  ;;  %v1762_v3 = vsel %vm63_vm0, %v1748_v5, %v1756_v41  ;;  %v1774_v43 = vsel %vm63_vm0, %v1756_v41, %v1732_v55  ;;  %v1761_v24 = vsel %vm63_vm0, %v1746_v51, %v1754_v16  ;;  %v1773_v58 = vsel %vm63_vm0, %v1754_v16, %v1730_v14 }
 0x290   : > { %6492 = vst [vmem:[#allocation6_spill] sm:$0xff] %v5467_v62  ;;  %v1791_v12 = vmul.f32 %v5430_v33, %v1774_v43  ;;  %v1794_v44 = vmul.f32 %v1782_v52, %v1762_v3  ;;  %v1787_v54 = vmul.f32 %v5430_v33, %v1773_v58  ;;  %v1790_v7 = vmul.f32 %v1782_v52, %v1761_v24 }
 0x291   : > { %v1768_v51 = vsel %vm63_vm0, %v1744_v46, %v5413_v49  ;;  %v1772_v14 = vsel %vm63_vm0, %v5421_v30, %v1744_v46  ;;  %v2050_v41 = vperm.slane %v5537_v60, 1 }
 0x292   : > { %v1805_v15 = vpack.c.bf16 %v1792_v22, %v1791_v12  ;;  %v1806_v8 = vpack.c.bf16 %v1794_v44, %v1793_v25  ;;  %v1803_v50 = vpack.c.bf16 %v1788_v42, %v1787_v54  ;;  %v1804_v6 = vpack.c.bf16 %v1790_v7, %v1789_v63 }
 0x293   : > { %v1800_v9 = vmul.f32 %v1780_v48, %v1772_v14  ;;  %v1801_v23 = vmul.f32 %v1781_v57, %v1768_v51 }
 0x294   : > { %1813 = vst [vmem:[#allocation4 + $0x10] sm:$0xff] %v1805_v15  ;;  %2295 = vrot.lane.b32.xlu1 %v5305_v4, %s3908_s24  ;;  %2293 = vrot.lane.b32.xlu0 %v5293_v59, %s3908_s24 }
 0x295   : > { %2301 = vrot.lane.b32.xlu2 %v5317_v13, %s3908_s24  ;;  %1814 = vst [vmem:[#allocation4 + $0x18] sm:$0xff] %v1806_v8 }
 0x296   : > { %1811 = vst [vmem:[#allocation4] sm:$0xff] %v1803_v50  ;;  %v5491_v18 = vpop.permute.xlu1 %1819  ;;  %v1760_v27 = vpop.permute.xlu0 %1759 }
 0x297   : > { %v2006_v55 = vpop.permute.xlu2 %2005  ;;  %1812 = vst [vmem:[#allocation4 + $0x8] sm:$0xff] %v1804_v6  ;;  %v1764_v39 = vsel %vm63_vm0, %v5413_v49, %v1760_v27  ;;  %v1776_v36 = vsel %vm63_vm0, %v1760_v27, %v5421_v30 }
 0x298   : > { %v1799_v5 = vmul.f32 %v5430_v33, %v1776_v36  ;;  %v1802_v35 = vmul.f32 %v1782_v52, %v1764_v39 }
 0x29a   : > { %v1809_v46 = vpack.c.bf16 %v1800_v9, %v1799_v5  ;;  %v1810_v1 = vpack.c.bf16 %v1802_v35, %v1801_v23 }
 0x29c   : > { %2375 = vrot.lane.b32.xlu1 %v5295_v2, %s3909_s11  ;;  %1817 = vst [vmem:[#allocation4 + $0x30] sm:$0xff] %v1809_v46  ;;  %2303 = vrot.lane.b32.xlu0 %v5331_v38, %s3908_s24 }
 0x29d   : > { %2377 = vrot.lane.b32.xlu2 %v5307_v40, %s3909_s11  ;;  %1818 = vst [vmem:[#allocation4 + $0x38] sm:$0xff] %v1810_v1 }
 0x29e   : > { %v5508_v30 = vpop.permute.xlu1 %1825  ;;  %v5510_v48 = vpop.permute.xlu0 %1823 }
 0x29f   : > { %v5506_v49 = vpop.permute.xlu2 %2027 }
 0x2a4   : > { %2385 = vrot.lane.b32.xlu1 %v5305_v4, %s3909_s11  ;;  %2383 = vrot.lane.b32.xlu0 %v5293_v59, %s3909_s11 }
 0x2a5   : > { %2391 = vrot.lane.b32.xlu2 %v5317_v13, %s3909_s11 }
 0x2a6   : > { %v5520_v52 = vpop.permute.xlu1 %1831  ;;  %v5522_v57 = vpop.permute.xlu0 %1829 }
 0x2a7   : > { %v5518_v33 = vpop.permute.xlu2 %2001  ;;  %6493 = vst [vmem:[#allocation7_spill] sm:$0xff] %v5522_v57 }
 0x2ac   : > { %1909 = vrot.lane.b32.xlu1 %v5295_v2, %s3910_s15  ;;  %2393 = vrot.lane.b32.xlu0 %v5331_v38, %s3909_s11 }
 0x2ad   : > { %1911 = vrot.lane.b32.xlu2 %v5307_v40, %s3910_s15 }
 0x2ae   : > { %v2004_v19 = vpop.permute.xlu1 %2003  ;;  %v5532_v29 = vpop.permute.xlu0 %1835 }
 0x2af   : > { %v5530_v53 = vpop.permute.xlu2 %2023  ;;  %v2045_v22 = vsel %vm329_vm3, %v5506_v49, %v2004_v19 }
 0x2b0   : > { %v2065_v12 = vmul.f32 %v2049_v47, %v2045_v22 }
 0x2b4   : > { %1919 = vrot.lane.b32.xlu1 %v5305_v4, %s3910_s15  ;;  %1917 = vrot.lane.b32.xlu0 %v5293_v59, %s3910_s15 }
 0x2b5   : > { %1933 = vrot.lane.b32.xlu2 %v5343_v61, %s3910_s15 }
 0x2b6   : > { %v5552_v3 = vpop.permute.xlu1 %2013  ;;  %v5554_v43 = vpop.permute.xlu0 %2011 }
 0x2b7   : > { %v5550_v25 = vpop.permute.xlu2 %2291  ;;  %v2041_v16 = vsel %vm329_vm3, %v2004_v19, %v5554_v43  ;;  %v2042_v58 = vsel %vm329_vm3, %v2006_v55, %v5552_v3 }
 0x2b8   : > { %v2066_v44 = vmul.f32 %v2050_v41, %v2041_v16  ;;  %v2070_v15 = vmul.f32 %v2050_v41, %v2042_v58 }
 0x2ba   : > { %v2077_v24 = vpack.c.bf16 %v2066_v44, %v2065_v12 }
 0x2bc   : > { %2199 = vrot.lane.b32.xlu1 %v5291_v10, %s3911_s6  ;;  %2085 = vst [vmem:[#allocation4 + $0xe0] sm:$0xff] %v2077_v24  ;;  %1935 = vrot.lane.b32.xlu0 %v5339_v26, %s3910_s15 }
 0x2bd   : > { %2201 = vrot.lane.b32.xlu2 %v5303_v17, %s3911_s6 }
 0x2be   : > { %v2000_v42 = vpop.permute.xlu1 %1999  ;;  %v5570_v54 = vpop.permute.xlu0 %2029 }
 0x2bf   : > { %v5568_v63 = vpop.permute.xlu2 %2305  ;;  %v2046_v7 = vsel %vm329_vm3, %v5570_v54, %v2006_v55  ;;  %v2043_v6 = vsel %vm329_vm3, %v5530_v53, %v2000_v42 }
 0x2c0   : > { %v2069_v8 = vmul.f32 %v2049_v47, %v2046_v7  ;;  %v2057_v39 = vmul.f32 %v2049_v47, %v2043_v6  ;;  %v5616_v7 = vld [vmem:[%s6460_s2 + $0x6] ss:$8 sm:$0xf] }
 0x2c2   : > { %v2079_v50 = vpack.c.bf16 %v2070_v15, %v2069_v8 }
 0x2c3   : > { %v3572_v23 = vld [vmem:[#allocation4 + $0xe0] sm:$0xf]  ;;  %v3788_v35 = vld [vmem:[#allocation4 + $0xe4] sm:$0xf] }
 0x2c4   : > { %2209 = vrot.lane.b32.xlu1 %v5315_v28, %s3911_s6  ;;  %2087 = vst [vmem:[#allocation4 + $0xf0] sm:$0xff] %v2079_v50  ;;  %2207 = vrot.lane.b32.xlu0 %v5319_v56, %s3911_s6 }
 0x2c5   : > { %2215 = vrot.lane.b32.xlu2 %v5327_v31, %s3911_s6 }
 0x2c6   : > { %v5586_v14 = vpop.permute.xlu1 %2009  ;;  %v5588_v55 = vpop.permute.xlu0 %2007 }
 0x2c7   : > { %v5584_v51 = vpop.permute.xlu2 %2381  ;;  %v2039_v27 = vsel %vm329_vm3, %v2000_v42, %v5588_v55  ;;  %v2040_v22 = vsel %vm329_vm3, %v5518_v33, %v5586_v14 }
 0x2c8   : > { %6494 = vst [vmem:[#allocation8_spill] sm:$0xff] %v5584_v51  ;;  %v2058_v36 = vmul.f32 %v2050_v41, %v2039_v27  ;;  %v2062_v58 = vmul.f32 %v2050_v41, %v2040_v22 }
 0x2ca   : > { %v2073_v9 = vpack.c.bf16 %v2058_v36, %v2057_v39 }
 0x2cb   : > { %v3790_v5 = vld [vmem:[#allocation4 + $0xec] sm:$0xf0]  ;;  %v3574_v46 = vld [vmem:[#allocation4 + $0xf0] sm:$0xf0] }
 0x2cc   : > { %1847 = vrot.lane.b32.xlu1 %v5341_v32, %s3906_s13  ;;  %2081 = vst [vmem:[#allocation4 + $0xc0] sm:$0xff] %v2073_v9  ;;  %2217 = vrot.lane.b32.xlu0 %v5329_v21, %s3911_s6  ;;  %v3573_v1 = vor.u32 %v3790_v5, %v3572_v23  ;;  %v3577_v19 = vor.u32 %v3788_v35, %v3574_v46 }
 0x2cd   : > { %1849 = vrot.lane.b32.xlu2 %v5351_v11, %s3906_s13 }
 0x2ce   : > { %v5605_v12 = vpop.permute.xlu1 %2289  ;;  %2958 = vmatpush.bf16.msra.mxu0 %v3573_v1  ;;  %3015 = vmatpush.bf16.msra.mxu3 %v3577_v19  ;;  %v5607_v44 = vpop.permute.xlu0 %2025 }
 0x2cf   : > { %v5603_v16 = vpop.permute.xlu2 %2395  ;;  %v2044_v24 = vsel %vm329_vm3, %v5607_v44, %v5518_v33  ;;  %v5625_v33 = vperm.slane %v5616_v7, 0 }
 0x2d0   : > { %6495 = vst [vmem:[#allocation9_spill] sm:$0xff] %v5603_v16  ;;  %v2061_v42 = vmul.f32 %v2049_v47, %v2044_v24  ;;  %v5628_v47 = vperm.slane %v5616_v7, 1 }
 0x2d2   : > { %v2075_v15 = vpack.c.bf16 %v2062_v58, %v2061_v42 }
 0x2d3   : > { %v3556_v23 = vld [vmem:[#allocation4 + $0xc0] sm:$0xf]  ;;  %v3784_v35 = vld [vmem:[#allocation4 + $0xc4] sm:$0xf] }
 0x2d4   : > { %2197 = vrot.lane.b32.xlu1 %v5307_v40, %s3911_s6  ;;  %2083 = vst [vmem:[#allocation4 + $0xd0] sm:$0xff] %v2075_v15  ;;  %2195 = vrot.lane.b32.xlu0 %v5295_v2, %s3911_s6 }
 0x2d5   : > { %2203 = vrot.lane.b32.xlu2 %v5293_v59, %s3911_s6 }
 0x2d6   : > { %v2300_v8 = vpop.permute.xlu1 %2299  ;;  %v2298_v50 = vpop.permute.xlu0 %2297 }
 0x2d7   : > { %v5630_v41 = vpop.permute.xlu2 %1915  ;;  %v2323_v6 = vsel %vm653_vm6, %v2298_v50, %v5568_v63  ;;  %v2327_v27 = vsel %vm653_vm6, %v5605_v12, %v2298_v50  ;;  %v2328_v22 = vsel %vm653_vm6, %v5550_v25, %v2300_v8 }
 0x2d8   : > { %v2351_v39 = vmul.f32 %v5625_v33, %v2327_v27  ;;  %v2352_v36 = vmul.f32 %v5628_v47, %v2323_v6  ;;  %v2355_v50 = vmul.f32 %v5625_v33, %v2328_v22  ;;  %v3433_v27 = vld [vmem:[%s6460_s2 + $0x7] ss:$8 sm:$0xf] }
 0x2da   : > { %v2363_v9 = vpack.c.bf16 %v2352_v36, %v2351_v39  ;;  %v5671_v36 = vperm.slane %v3433_v27, 1 }
 0x2db   : > { %v3786_v5 = vld [vmem:[#allocation4 + $0xcc] sm:$0xf0]  ;;  %v3558_v46 = vld [vmem:[#allocation4 + $0xd0] sm:$0xf0] }
 0x2dc   : > { %2211 = vrot.lane.b32.xlu1 %v5317_v13, %s3911_s6  ;;  %2371 = vst [vmem:[#allocation4 + $0x1e0] sm:$0xff] %v2363_v9  ;;  %2205 = vrot.lane.b32.xlu0 %v5305_v4, %s3911_s6  ;;  %v3557_v1 = vor.u32 %v3786_v5, %v3556_v23  ;;  %v3561_v19 = vor.u32 %v3784_v35, %v3558_v46 }
 0x2dd   : > { %2213 = vrot.lane.b32.xlu2 %v5331_v38, %s3911_s6 }
 0x2de   : > { %v5651_v58 = vpop.permute.xlu1 %2379  ;;  %2959 = vmatpush.bf16.msra.mxu0 %v3557_v1  ;;  %3016 = vmatpush.bf16.msra.mxu3 %v3561_v19  ;;  %v5653_v42 = vpop.permute.xlu0 %2307 }
 0x2df   : > { %v5649_v24 = vpop.permute.xlu2 %1937  ;;  %6497 = vst [vmem:[#allocation11_spill] sm:$0xff] %v5651_v58  ;;  %v2324_v15 = vsel %vm653_vm6, %v2300_v8, %v5653_v42  ;;  %v5669_v8 = vperm.slane %v3433_v27, 0 }
 0x2e0   : > { %6496 = vst [vmem:[#allocation10_spill] sm:$0xff] %v5649_v24  ;;  %v2356_v6 = vmul.f32 %v5628_v47, %v2324_v15 }
 0x2e2   : > { %v2365_v39 = vpack.c.bf16 %v2356_v6, %v2355_v50 }
 0x2e3   : > { %v3700_v22 = vld [vmem:[#allocation4 + $0x1e0] sm:$0xf] }
 0x2e4   : > { %1845 = vrot.lane.b32.xlu1 %v5339_v26, %s3906_s13  ;;  %2373 = vst [vmem:[#allocation4 + $0x1f0] sm:$0xff] %v2365_v39  ;;  %1843 = vrot.lane.b32.xlu0 %v5343_v61, %s3906_s13 }
 0x2e5   : > { %2109 = vrot.lane.b32.xlu2 %v5291_v10, %s3912_s3 }
 0x2e6   : > { %v2390_v23 = vpop.permute.xlu1 %2389  ;;  %v2388_v5 = vpop.permute.xlu0 %2387 }
 0x2e7   : > { %v5673_v9 = vpop.permute.xlu2 %2287  ;;  %v2413_v35 = vsel %vm742_vm7, %v2388_v5, %v5603_v16  ;;  %v2417_v10 = vsel %vm742_vm7, %v5651_v58, %v2388_v5  ;;  %v2418_v6 = vsel %vm742_vm7, %v5584_v51, %v2390_v23 }
 0x2e8   : > { %v2441_v46 = vmul.f32 %v5669_v8, %v2417_v10  ;;  %v2442_v1 = vmul.f32 %v5671_v36, %v2413_v35 }
 0x2ea   : > { %v2453_v19 = vpack.c.bf16 %v2442_v1, %v2441_v46 }
 0x2eb   : > { %v3822_v15 = vld [vmem:[#allocation4 + $0x1ec] sm:$0xf0]  ;;  %v3702_v51 = vld [vmem:[#allocation4 + $0x1f0] sm:$0xf0] }
 0x2ec   : > { %2117 = vrot.lane.b32.xlu1 %v5319_v56, %s3912_s3  ;;  %2461 = vst [vmem:[#allocation4 + $0x220] sm:$0xff] %v2453_v19  ;;  %2111 = vrot.lane.b32.xlu0 %v5303_v17, %s3912_s3  ;;  %v3701_v50 = vor.u32 %v3822_v15, %v3700_v22  ;;  %v2445_v56 = vmul.f32 %v5669_v8, %v2418_v6  ;;  %v5704_v17 = vld [vmem:[%s6460_s2 + $0x2] ss:$8 sm:$0xf] }
 0x2ed   : > { %2119 = vrot.lane.b32.xlu2 %v5315_v28, %s3912_s3  ;;  %v5711_v46 = vperm.slane %v5704_v17, 0 }
 0x2ee   : > { %v1914_v39 = vpop.permute.xlu1 %1913  ;;  %2977 = vmatpush.bf16.msra.mxu1 %v3701_v50  ;;  %v5694_v5 = vpop.permute.xlu0 %2397 }
 0x2ef   : > { %v5692_v27 = vpop.permute.xlu2 %2301  ;;  %6498 = vst [vmem:[#allocation12_spill] sm:$0xff] %v5694_v5  ;;  %v2414_v28 = vsel %vm742_vm7, %v2390_v23, %v5694_v5  ;;  %v5716_v23 = vperm.slane %v5704_v17, 1  ;;  %v1955_v1 = vsel %vm240_vm1, %v5649_v24, %v1914_v39 }
 0x2f0   : > { %v2446_v35 = vmul.f32 %v5671_v36, %v2414_v28  ;;  %v1975_v50 = vmul.f32 %v5711_v46, %v1955_v1 }
 0x2f2   : > { %v2455_v10 = vpack.c.bf16 %v2446_v35, %v2445_v56 }
 0x2f3   : > { %v3732_v56 = vld [vmem:[#allocation4 + $0x220] sm:$0xf] }
 0x2f4   : > { %2127 = vrot.lane.b32.xlu1 %v5329_v21, %s3912_s3  ;;  %2463 = vst [vmem:[#allocation4 + $0x230] sm:$0xff] %v2455_v10  ;;  %2125 = vrot.lane.b32.xlu0 %v5327_v31, %s3912_s3 }
 0x2f5   : > { %2105 = vrot.lane.b32.xlu2 %v5295_v2, %s3912_s3 }
 0x2f6   : > { %v5723_v2 = vpop.permute.xlu1 %1923  ;;  %v5725_v22 = vpop.permute.xlu0 %1921 }
 0x2f7   : > { %v5721_v19 = vpop.permute.xlu2 %2377  ;;  %6500 = vst [vmem:[#allocation14_spill] sm:$0xff] %v5723_v2  ;;  %v1951_v15 = vsel %vm240_vm1, %v1914_v39, %v5725_v22  ;;  %v1952_v39 = vsel %vm240_vm1, %v5630_v41, %v5723_v2 }
 0x2f8   : > { %6499 = vst [vmem:[#allocation13_spill] sm:$0xff] %v5721_v19  ;;  %v1976_v6 = vmul.f32 %v5716_v23, %v1951_v15 }
 0x2f9   : > { %6501 = vst [vmem:[#allocation15_spill] sm:$0xff] %v5725_v22 }
 0x2fa   : > { %v1987_v28 = vpack.c.bf16 %v1976_v6, %v1975_v50 }
 0x2fb   : > { %v3830_v35 = vld [vmem:[#allocation4 + $0x22c] sm:$0xf0] }
 0x2fc   : > { %2113 = vrot.lane.b32.xlu1 %v5293_v59, %s3912_s3  ;;  %1995 = vst [vmem:[#allocation4 + $0xa0] sm:$0xff] %v1987_v28  ;;  %2107 = vrot.lane.b32.xlu0 %v5307_v40, %s3912_s3  ;;  %v3733_v10 = vor.u32 %v3830_v35, %v3732_v56  ;;  %v1980_v40 = vmul.f32 %v5716_v23, %v1952_v39 }
 0x2fd   : > { %2115 = vrot.lane.b32.xlu2 %v5305_v4, %s3912_s3 }
 0x2fe   : > { %v5744_v15 = vpop.permute.xlu1 %2285  ;;  %3002 = vmatpush.bf16.msra.mxu2 %v3733_v10  ;;  %v5746_v4 = vpop.permute.xlu0 %1939 }
 0x2ff   : > { %v5742_v1 = vpop.permute.xlu2 %2391  ;;  %v1956_v59 = vsel %vm240_vm1, %v5746_v4, %v5630_v41 }
 0x300   : > { %6502 = vst [vmem:[#allocation16_spill] sm:$0xff] %v5742_v1  ;;  %v1979_v50 = vmul.f32 %v5711_v46, %v1956_v59 }
 0x302   : > { %v1989_v6 = vpack.c.bf16 %v1980_v40, %v1979_v50 }
 0x303   : > { %v3540_v50 = vld [vmem:[#allocation4 + $0xa0] sm:$0xf]  ;;  %v3780_v34 = vld [vmem:[#allocation4 + $0xa4] sm:$0xf] }
 0x304   : > { %2123 = vrot.lane.b32.xlu1 %v5331_v38, %s3912_s3  ;;  %1997 = vst [vmem:[#allocation4 + $0xb0] sm:$0xff] %v1989_v6  ;;  %2121 = vrot.lane.b32.xlu0 %v5317_v13, %s3912_s3 }
 0x305   : > { %2313 = vrot.lane.b32.xlu2 %v5341_v32, %s3908_s24 }
 0x306   : > { %v2296_v56 = vpop.permute.xlu1 %2295  ;;  %v2294_v35 = vpop.permute.xlu0 %2293 }
 0x307   : > { %v5760_v28 = vpop.permute.xlu2 %1911  ;;  %v2321_v41 = vsel %vm653_vm6, %v2294_v35, %v5692_v27  ;;  %v2325_v10 = vsel %vm653_vm6, %v5744_v15, %v2294_v35 }
 0x308   : > { %v2343_v39 = vmul.f32 %v5625_v33, %v2325_v10  ;;  %v2344_v59 = vmul.f32 %v5628_v47, %v2321_v41  ;;  %v2326_v41 = vsel %vm653_vm6, %v5673_v9, %v2296_v56 }
 0x309   : > { %v2347_v16 = vmul.f32 %v5625_v33, %v2326_v41 }
 0x30a   : > { %v2359_v40 = vpack.c.bf16 %v2344_v59, %v2343_v39 }
 0x30b   : > { %v3782_v6 = vld [vmem:[#allocation4 + $0xac] sm:$0xf0]  ;;  %v3542_v0 = vld [vmem:[#allocation4 + $0xb0] sm:$0xf0] }
 0x30c   : > { %2019 = vrot.lane.b32.xlu1 %v5327_v31, %s3907_s1  ;;  %2367 = vst [vmem:[#allocation4 + $0x1c0] sm:$0xff] %v2359_v40  ;;  %2315 = vrot.lane.b32.xlu0 %v5351_v11, %s3908_s24  ;;  %v3541_v35 = vor.u32 %v3782_v6, %v3540_v50  ;;  %v3545_v58 = vor.u32 %v3780_v34, %v3542_v0 }
 0x30d   : > { %2021 = vrot.lane.b32.xlu2 %v5329_v21, %s3907_s1 }
 0x30e   : > { %v5781_v39 = vpop.permute.xlu1 %2375  ;;  %2960 = vmatpush.bf16.msra.mxu0 %v3541_v35  ;;  %3017 = vmatpush.bf16.msra.mxu3 %v3545_v58  ;;  %v5783_v59 = vpop.permute.xlu0 %2303 }
 0x30f   : > { %v5779_v10 = vpop.permute.xlu2 %1933  ;;  %6504 = vst [vmem:[#allocation18_spill] sm:$0xff] %v5781_v39  ;;  %v2322_v40 = vsel %vm653_vm6, %v2296_v56, %v5783_v59 }
 0x310   : > { %6503 = vst [vmem:[#allocation17_spill] sm:$0xff] %v5779_v10  ;;  %v2348_v0 = vmul.f32 %v5628_v47, %v2322_v40 }
 0x312   : > { %v2361_v34 = vpack.c.bf16 %v2348_v0, %v2347_v16 }
 0x313   : > { %v3684_v41 = vld [vmem:[#allocation4 + $0x1c0] sm:$0xf] }
 0x314   : > { %2311 = vrot.lane.b32.xlu1 %v5339_v26, %s3908_s24  ;;  %2369 = vst [vmem:[#allocation4 + $0x1d0] sm:$0xff] %v2361_v34  ;;  %2309 = vrot.lane.b32.xlu0 %v5343_v61, %s3908_s24 }
 0x315   : > { %2015 = vrot.lane.b32.xlu2 %v5317_v13, %s3907_s1 }
 0x316   : > { %v2386_v50 = vpop.permute.xlu1 %2385  ;;  %v2384_v6 = vpop.permute.xlu0 %2383 }
 0x317   : > { %v5796_v58 = vpop.permute.xlu2 %2201  ;;  %v2411_v33 = vsel %vm742_vm7, %v2384_v6, %v5742_v1  ;;  %v2415_v16 = vsel %vm742_vm7, %v5781_v39, %v2384_v6  ;;  %v2416_v34 = vsel %vm742_vm7, %v5721_v19, %v2386_v50 }
 0x318   : > { %v2433_v47 = vmul.f32 %v5669_v8, %v2415_v16  ;;  %v2434_v56 = vmul.f32 %v5671_v36, %v2411_v33 }
 0x31a   : > { %v2449_v35 = vpack.c.bf16 %v2434_v56, %v2433_v47  ;;  %v2437_v56 = vmul.f32 %v5669_v8, %v2416_v34  ;;  %v1862_v8 = vsel %vm151_vm2, %v5508_v30, %v5467_v62 }
 0x31b   : > { %v3818_v40 = vld [vmem:[#allocation4 + $0x1cc] sm:$0xf0] }
 0x31c   : > { %2223 = vrot.lane.b32.xlu1 %v5341_v32, %s3911_s6  ;;  %2457 = vst [vmem:[#allocation4 + $0x200] sm:$0xff] %v2449_v35  ;;  %2017 = vrot.lane.b32.xlu0 %v5331_v38, %s3907_s1  ;;  %v3685_v0 = vor.u32 %v3818_v40, %v3684_v41  ;;  %v5827_v41 = vld [vmem:[%s6460_s2 + $0x1] ss:$8 sm:$0xf] }
 0x31d   : > { %2225 = vrot.lane.b32.xlu2 %v5351_v11, %s3911_s6 }
 0x31e   : > { %v1910_v33 = vpop.permute.xlu1 %1909  ;;  %2978 = vmatpush.bf16.msra.mxu1 %v3685_v0  ;;  %v5817_v16 = vpop.permute.xlu0 %2393  ;;  %v5834_v0 = vperm.slane %v5827_v41, 0 }
 0x31f   : > { %v5815_v6 = vpop.permute.xlu2 %2215  ;;  %6505 = vst [vmem:[#allocation19_spill] sm:$0xff] %v5817_v16  ;;  %v2412_v47 = vsel %vm742_vm7, %v2386_v50, %v5817_v16  ;;  %v1953_v50 = vsel %vm240_vm1, %v5779_v10, %v1910_v33 }
 0x320   : > { %v2438_v35 = vmul.f32 %v5671_v36, %v2412_v47  ;;  %v5843_v36 = vperm.slane %v5827_v41, 1  ;;  %v1967_v19 = vmul.f32 %v5711_v46, %v1953_v50  ;;  %v3820_v50 = vld [vmem:[#allocation4 + $0x1e4] sm:$0xf] }
 0x322   : > { %v2451_v40 = vpack.c.bf16 %v2438_v35, %v2437_v56 }
 0x324   : > { %1931 = vrot.lane.b32.xlu1 %v5329_v21, %s3910_s15  ;;  %2459 = vst [vmem:[#allocation4 + $0x210] sm:$0xff] %v2451_v40  ;;  %1929 = vrot.lane.b32.xlu0 %v5327_v31, %s3910_s15  ;;  %v1890_v40 = vmul.f32 %v5843_v36, %v1862_v8 }
 0x325   : > { %2219 = vrot.lane.b32.xlu2 %v5343_v61, %s3911_s6 }
 0x326   : > { %v5850_v47 = vpop.permute.xlu1 %1919  ;;  %v5856_v35 = vpop.permute.xlu0 %1917 }
 0x327   : > { %v5848_v34 = vpop.permute.xlu2 %1849  ;;  %6507 = vst [vmem:[#allocation21_spill] sm:$0xff] %v5856_v35  ;;  %v1949_v1 = vsel %vm240_vm1, %v1910_v33, %v5856_v35 }
 0x328   : > { %6506 = vst [vmem:[#allocation20_spill] sm:$0xff] %v5848_v34  ;;  %v1866_v56 = vsel %vm151_vm2, %v5848_v34, %v5508_v30  ;;  %v1968_v16 = vmul.f32 %v5716_v23, %v1949_v1  ;;  %v3716_v30 = vld [vmem:[#allocation4 + $0x200] sm:$0xf]  ;;  %v1861_v34 = vsel %vm151_vm2, %v5510_v48, %v5520_v52 }
 0x329   : > { %v1889_v39 = vmul.f32 %v5834_v0, %v1866_v56 }
 0x32a   : > { %v1983_v10 = vpack.c.bf16 %v1968_v16, %v1967_v19  ;;  %v1950_v19 = vsel %vm240_vm1, %v5760_v28, %v5850_v47  ;;  %v3686_v16 = vld [vmem:[#allocation4 + $0x1d0] sm:$0xf0] }
 0x32b   : > { %v1899_v62 = vpack.c.bf16 %v1890_v40, %v1889_v39  ;;  %v3826_v8 = vld [vmem:[#allocation4 + $0x20c] sm:$0xf0]  ;;  %v3705_v39 = vor.u32 %v3820_v50, %v3702_v51  ;;  %v1972_v56 = vmul.f32 %v5716_v23, %v1950_v19  ;;  %v5890_v51 = vld [vmem:[%s6460_s2 + $0x5] ss:$8 sm:$0xf] }
 0x32c   : > { %1925 = vrot.lane.b32.xlu1 %v5317_v13, %s3910_s15  ;;  %1991 = vst [vmem:[#allocation4 + $0x80] sm:$0xff] %v1983_v10  ;;  %2221 = vrot.lane.b32.xlu0 %v5339_v26, %s3911_s6  ;;  %v3717_v33 = vor.u32 %v3826_v8, %v3716_v30  ;;  %v3816_v30 = vld [vmem:[#allocation4 + $0x1c4] sm:$0xf]  ;;  %v5902_v23 = vperm.slane %v5890_v51, 1 }
 0x32d   : > { %1907 = vst [vmem:[#allocation4 + $0x70] sm:$0xff] %v1899_v62  ;;  %1927 = vrot.lane.b32.xlu2 %v5331_v38, %s3910_s15  ;;  %v3689_v8 = vor.u32 %v3816_v30, %v3686_v16 }
 0x32e   : > { %v5877_v1 = vpop.permute.xlu1 %2199  ;;  %3003 = vmatpush.bf16.msra.mxu2 %v3717_v33  ;;  %v5879_v13 = vpop.permute.xlu0 %1935 }
 0x32f   : > { %v5875_v62 = vpop.permute.xlu2 %2203  ;;  %v1954_v10 = vsel %vm240_vm1, %v5879_v13, %v5760_v28 }
 0x330   : > { %v1971_v40 = vmul.f32 %v5711_v46, %v1954_v10  ;;  %v5899_v46 = vperm.slane %v5890_v51, 0 }
 0x332   : > { %3034 = vmatpush.bf16.msrb.mxu2 %v3705_v39  ;;  %v1985_v33 = vpack.c.bf16 %v1972_v56, %v1971_v40 }
 0x333   : > { %v3524_v40 = vld [vmem:[#allocation4 + $0x80] sm:$0xf] }
 0x334   : > { %1993 = vst [vmem:[#allocation4 + $0x90] sm:$0xff] %v1985_v33  ;;  %2135 = vrot.lane.b32.xlu1 %v5351_v11, %s3912_s3  ;;  %2133 = vrot.lane.b32.xlu0 %v5341_v32, %s3912_s3 }
 0x335   : > { %1839 = vrot.lane.b32.xlu2 %v5327_v31, %s3906_s13 }
 0x336   : > { %3035 = vmatpush.bf16.msrb.mxu2 %v3689_v8  ;;  %v2210_v50 = vpop.permute.xlu1 %2209  ;;  %v2208_v19 = vpop.permute.xlu0 %2207  ;;  %v3776_v8 = vld [vmem:[#allocation4 + $0x84] sm:$0xf] }
 0x337   : > { %v5904_v28 = vpop.permute.xlu2 %2213  ;;  %v2233_v31 = vsel %vm564_vm5, %v2208_v19, %v5815_v6  ;;  %v2237_v39 = vsel %vm564_vm5, %v5877_v1, %v2208_v19 }
 0x338   : > { %6508 = vst [vmem:[#allocation22_spill] sm:$0xff] %v5904_v28  ;;  %v2261_v16 = vmul.f32 %v5899_v46, %v2237_v39  ;;  %v2262_v10 = vmul.f32 %v5902_v23, %v2233_v31  ;;  %v2238_v39 = vsel %vm564_vm5, %v5796_v58, %v2210_v50 }
 0x33a   : > { %v2273_v56 = vpack.c.bf16 %v2262_v10, %v2261_v16 }
 0x33b   : > { %v3778_v30 = vld [vmem:[#allocation4 + $0x8c] sm:$0xf0]  ;;  %v3526_v33 = vld [vmem:[#allocation4 + $0x90] sm:$0xf0] }
 0x33c   : > { %2281 = vst [vmem:[#allocation4 + $0x1a0] sm:$0xff] %v2273_v56  ;;  %2129 = vrot.lane.b32.xlu1 %v5343_v61, %s3912_s3  ;;  %1841 = vrot.lane.b32.xlu0 %v5329_v21, %s3906_s13  ;;  %v3525_v19 = vor.u32 %v3778_v30, %v3524_v40  ;;  %v3529_v31 = vor.u32 %v3776_v8, %v3526_v33 }
 0x33d   : > { %2131 = vrot.lane.b32.xlu2 %v5339_v26, %s3912_s3  ;;  %v1886_v21 = vmul.f32 %v5843_v36, %v1861_v34  ;;  %v2265_v8 = vmul.f32 %v5899_v46, %v2238_v39 }
 0x33e   : > { %v5929_v10 = vpop.permute.xlu1 %1847  ;;  %2961 = vmatpush.bf16.msra.mxu0 %v3525_v19  ;;  %3018 = vmatpush.bf16.msra.mxu3 %v3529_v31  ;;  %v5935_v35 = vpop.permute.xlu0 %2217  ;;  %v3774_v19 = vld [vmem:[#allocation4 + $0x6c] sm:$0xf0]  ;;  %v3510_v31 = vld [vmem:[#allocation4 + $0x70] sm:$0xf0] }
 0x33f   : > { %v5927_v16 = vpop.permute.xlu2 %2109  ;;  %v1865_v56 = vsel %vm151_vm2, %v5929_v10, %v5510_v48  ;;  %v2234_v30 = vsel %vm564_vm5, %v2210_v50, %v5935_v35 }
 0x340   : > { %v1885_v40 = vmul.f32 %v5834_v0, %v1865_v56  ;;  %v2266_v33 = vmul.f32 %v5902_v23, %v2234_v30 }
 0x342   : > { %v1897_v5 = vpack.c.bf16 %v1886_v21, %v1885_v40  ;;  %v2275_v22 = vpack.c.bf16 %v2266_v33, %v2265_v8 }
 0x343   : > { %v3812_v40 = vld [vmem:[#allocation4 + $0x1a4] sm:$0xf] }
 0x344   : > { %1905 = vst [vmem:[#allocation4 + $0x60] sm:$0xff] %v1897_v5  ;;  %2403 = vrot.lane.b32.xlu1 %v5341_v32, %s3909_s11  ;;  %1837 = vrot.lane.b32.xlu0 %v5331_v38, %s3906_s13  ;;  %v3668_v5 = vld [vmem:[#allocation4 + $0x1a0] sm:$0xf] }
 0x345   : > { %2405 = vrot.lane.b32.xlu2 %v5351_v11, %s3909_s11  ;;  %2283 = vst [vmem:[#allocation4 + $0x1b0] sm:$0xff] %v2275_v22 }
 0x346   : > { %v5952_v34 = vpop.permute.xlu1 %2197  ;;  %v5954_v50 = vpop.permute.xlu0 %2195 }
 0x347   : > { %v5950_v48 = vpop.permute.xlu2 %2119  ;;  %6509 = vst [vmem:[#allocation23_spill] sm:$0xff] %v5952_v34  ;;  %v2235_v38 = vsel %vm564_vm5, %v5954_v50, %v5875_v62 }
 0x34b   : > { %v3508_v39 = vld [vmem:[#allocation4 + $0x60] sm:$0xf]  ;;  %v3772_v56 = vld [vmem:[#allocation4 + $0x64] sm:$0xf] }
 0x34c   : > { %v3509_v21 = vor.u32 %v3774_v19, %v3508_v39  ;;  %v3814_v11 = vld [vmem:[#allocation4 + $0x1ac] sm:$0xf0]  ;;  %v3513_v22 = vor.u32 %v3772_v56, %v3510_v31  ;;  %v3670_v30 = vld [vmem:[#allocation4 + $0x1b0] sm:$0xf0]  ;;  %2401 = vrot.lane.b32.xlu1 %v5339_v26, %s3909_s11  ;;  %2399 = vrot.lane.b32.xlu0 %v5343_v61, %s3909_s11  ;;  %v2253_v26 = vmul.f32 %v5899_v46, %v2235_v38  ;;  %v5990_v38 = vperm.slane %v5827_v41, 3 }
 0x34d   : > { %v3669_v32 = vor.u32 %v3814_v11, %v3668_v5  ;;  %v3673_v8 = vor.u32 %v3812_v40, %v3670_v30  ;;  %v1860_v40 = vsel %vm151_vm2, %v5436_v20, %v5522_v57  ;;  %v5987_v30 = vperm.slane %v5827_v41, 2 }
 0x34e   : > { %v5966_v19 = vpop.permute.xlu1 %2211  ;;  %2962 = vmatpush.bf16.msra.mxu0 %v3509_v21  ;;  %3019 = vmatpush.bf16.msra.mxu3 %v3513_v22  ;;  %v2206_v39 = vpop.permute.xlu0 %2205  ;;  %v6024_v57 = vperm.slane %v5616_v7, 3 }
 0x34f   : > { %v5964_v33 = vpop.permute.xlu2 %2105  ;;  %v2231_v31 = vsel %vm564_vm5, %v5875_v62, %v5966_v19  ;;  %2979 = vmatpush.bf16.msra.mxu1 %v3669_v32  ;;  %3036 = vmatpush.bf16.msrb.mxu2 %v3673_v8  ;;  %v2232_v5 = vsel %vm564_vm5, %v2206_v39, %v5904_v28  ;;  %v2236_v56 = vsel %vm564_vm5, %v5952_v34, %v2206_v39  ;;  %v3874_v34 = vld [vmem:[#allocation2 + $0x68] sm:$0xff] }
 0x350   : > { %v2254_v61 = vmul.f32 %v5902_v23, %v2231_v31  ;;  %v2257_v21 = vmul.f32 %v5899_v46, %v2236_v56  ;;  %v2258_v11 = vmul.f32 %v5902_v23, %v2232_v5  ;;  %v1859_v46 = vsel %vm151_vm2, %v5491_v18, %v5447_v45 }
 0x351   : > { %v1855_v23 = vsel %vm151_vm2, %v5447_v45, %v5532_v29  ;;  %v1882_v39 = vmul.f32 %v5843_v36, %v1860_v40  ;;  %v1878_v5 = vmul.f32 %v5843_v36, %v1859_v46  ;;  %v6021_v40 = vperm.slane %v5616_v7, 2  ;;  %v6035_v7 = vld [vmem:[%s6460_s2 + $0x4] ss:$8 sm:$0xf] }
 0x352   : > { %v2269_v62 = vpack.c.bf16 %v2254_v61, %v2253_v26  ;;  %v2271_v22 = vpack.c.bf16 %v2258_v11, %v2257_v21  ;;  %v1879_v56 = vmul.f32 %v5987_v30, %v1855_v23 }
 0x354   : > { %2277 = vst [vmem:[#allocation4 + $0x180] sm:$0xff] %v2269_v62 }
 0x355   : > { %2279 = vst [vmem:[#allocation4 + $0x190] sm:$0xff] %v2271_v22 }
 0x356   : > { %v6002_v8 = vpop.permute.xlu1 %1845  ;;  %v1844_v31 = vpop.permute.xlu0 %1843 }
 0x357   : > { %v6000_v32 = vpop.permute.xlu2 %2115  ;;  %6510 = vst [vmem:[#allocation24_spill] sm:$0xff] %v6002_v8  ;;  %v1864_v41 = vsel %vm151_vm2, %v6002_v8, %v5436_v20  ;;  %v1851_v61 = vsel %vm151_vm2, %v5532_v29, %v1844_v31  ;;  %v1863_v45 = vsel %vm151_vm2, %v1844_v31, %v5491_v18  ;;  %v3873_v8 = vld [vmem:[#allocation2 + $0x30] sm:$0xff] }
 0x358   : > { %v1881_v26 = vmul.f32 %v5834_v0, %v1864_v41  ;;  %v1877_v21 = vmul.f32 %v5834_v0, %v1863_v45  ;;  %v1880_v20 = vmul.f32 %v5990_v38, %v1851_v61 }
 0x35a   : > { %v1895_v11 = vpack.c.bf16 %v1882_v39, %v1881_v26  ;;  %v1893_v62 = vpack.c.bf16 %v1878_v5, %v1877_v21  ;;  %v1894_v22 = vpack.c.bf16 %v1880_v20, %v1879_v56  ;;  %v3868_v56 = vld [vmem:[#allocation2 + $0x40] sm:$0xff] }
 0x35b   : > { %v3652_v41 = vld [vmem:[#allocation4 + $0x180] sm:$0xf]  ;;  %v3808_v29 = vld [vmem:[#allocation4 + $0x184] sm:$0xf] }
 0x35c   : > { %1903 = vst [vmem:[#allocation4 + $0x50] sm:$0xff] %v1895_v11  ;;  %v3810_v18 = vld [vmem:[#allocation4 + $0x18c] sm:$0xf0]  ;;  %v3654_v36 = vld [vmem:[#allocation4 + $0x190] sm:$0xf0]  ;;  %v3869_v21 = vld [vmem:[#allocation2 + $0x20] sm:$0xff] }
 0x35d   : > { %1901 = vst [vmem:[#allocation4 + $0x40] sm:$0xff] %v1893_v62  ;;  %v3653_v46 = vor.u32 %v3810_v18, %v3652_v41  ;;  %v3657_v23 = vor.u32 %v3808_v29, %v3654_v36  ;;  %v3870_v20 = vld [vmem:[#allocation2 + $0x60] sm:$0xff]  ;;  %v3871_v11 = vld [vmem:[#allocation2 + $0x70] sm:$0xff]  ;;  %v6045_v41 = vperm.slane %v5537_v60, 2 }
 0x35e   : > { %1902 = vst [vmem:[#allocation4 + $0x48] sm:$0xff] %v1894_v22  ;;  %v2118_v31 = vpop.permute.xlu1 %2117  ;;  %v6037_v61 = vpop.permute.xlu0 %2111  ;;  %v2095_v62 = vpack.c.bf16 %v3871_v11, %v3870_v20  ;;  %v6042_v22 = vperm.slane %v6035_v7, 0  ;;  %v3766_v29 = vld [vmem:[#allocation4 + $0x2c] sm:$0xf0]  ;;  %v3478_v18 = vld [vmem:[#allocation4 + $0x30] sm:$0xf0] }
 0x35f   : > { %v2314_v0 = vpop.permute.xlu2 %2313  ;;  %2980 = vmatpush.bf16.msra.mxu1 %v3653_v46  ;;  %3037 = vmatpush.bf16.msrb.mxu2 %v3657_v23  ;;  %6511 = vst [vmem:[#allocation25_spill] sm:$0xff] %v6037_v61  ;;  %v2148_v36 = vsel %vm475_vm4, %v6037_v61, %v5950_v48  ;;  %v6052_v46 = vperm.slane %v5537_v60, 3  ;;  %v3764_v20 = vld [vmem:[#allocation4 + $0x24] sm:$0xf]  ;;  %v3875_v60 = vld [vmem:[#allocation2 + $0x50] sm:$0xff] }
 0x360   : > { %v2319_v39 = vsel %vm653_vm6, %v5568_v63, %v2314_v0  ;;  %v2331_v26 = vsel %vm653_vm6, %v2314_v0, %v5605_v12  ;;  %v2093_v63 = vpack.c.bf16 %v3869_v21, %v3868_v56  ;;  %v3476_v21 = vld [vmem:[#allocation4 + $0x20] sm:$0xf]  ;;  %2103 = vst [vmem:[#allocation4 + $0x130] sm:$0xff] %v2095_v62  ;;  %v2091_v28 = vpack.c.bf16 %v3874_v34, %v3875_v60  ;;  %v3462_v60 = vld [vmem:[#allocation4 + $0x10] sm:$0xf0] }
 0x361   : > { %v2353_v45 = vmul.f32 %v6021_v40, %v2319_v39  ;;  %v2354_v5 = vmul.f32 %v6024_v57, %v2331_v26  ;;  %v6055_v39 = vperm.slane %v6035_v7, 1  ;;  %v3872_v11 = vld [vmem:[#allocation2] sm:$0xff] }
 0x362   : > { %2101 = vst [vmem:[#allocation4 + $0x120] sm:$0xff] %v2093_v63  ;;  %v2089_v61 = vpack.c.bf16 %v3872_v11, %v3873_v8  ;;  %v2147_v63 = vsel %vm475_vm4, %v5927_v16, %v2118_v31  ;;  %v3760_v11 = vld [vmem:[#allocation4 + $0x4] sm:$0xf] }
 0x363   : > { %v2364_v12 = vpack.c.bf16 %v2354_v5, %v2353_v45  ;;  %v3770_v23 = vld [vmem:[#allocation4 + $0x4c] sm:$0xf0]  ;;  %v3494_v0 = vld [vmem:[#allocation4 + $0x50] sm:$0xf0]  ;;  %2099 = vst [vmem:[#allocation4 + $0x110] sm:$0xff] %v2091_v28 }
 0x364   : > { %v3492_v26 = vld [vmem:[#allocation4 + $0x40] sm:$0xf]  ;;  %v3768_v45 = vld [vmem:[#allocation4 + $0x44] sm:$0xf]  ;;  %2097 = vst [vmem:[#allocation4 + $0x100] sm:$0xff] %v2089_v61  ;;  %v2171_v61 = vmul.f32 %v6042_v22, %v2147_v63 }
 0x365   : > { %2372 = vst [vmem:[#allocation4 + $0x1e8] sm:$0xff] %v2364_v12  ;;  %v3493_v5 = vor.u32 %v3770_v23, %v3492_v26  ;;  %v3497_v56 = vor.u32 %v3768_v45, %v3494_v0  ;;  %v2175_v12 = vmul.f32 %v6042_v22, %v2148_v36  ;;  %v3477_v23 = vor.u32 %v3766_v29, %v3476_v21  ;;  %v3444_v29 = vld [vmem:[%s6465_s5 + $0x8] sm:$0xf]  ;;  %v3762_v45 = vld [vmem:[#allocation4 + $0xc] sm:$0xf0] }
 0x366   : > { %v6061_v2 = vpop.permute.xlu1 %2127  ;;  %v3481_v0 = vor.u32 %v3764_v20, %v3478_v18  ;;  %v6073_v36 = vpop.permute.xlu0 %2125  ;;  %v3460_v20 = vld [vmem:[#allocation4] sm:$0xf]  ;;  %v3828_v63 = vld [vmem:[#allocation4 + $0x224] sm:$0xf] }
 0x367   : > { %v2022_v24 = vpop.permute.xlu2 %2021  ;;  %v2144_v34 = vsel %vm475_vm4, %v5950_v48, %v6061_v2  ;;  %2963 = vmatpush.bf16.msra.mxu0 %v3493_v5  ;;  %3020 = vmatpush.bf16.msra.mxu3 %v3497_v56  ;;  %v2143_v48 = vsel %vm475_vm4, %v2118_v31, %v6073_v36  ;;  %v3461_v28 = vor.u32 %v3762_v45, %v3460_v20  ;;  %v6121_v20 = vperm.slane %v5890_v51, 3 }
 0x368   : > { %v2034_v62 = vsel %vm329_vm3, %v2022_v24, %v5570_v54  ;;  %v2038_v8 = vsel %vm329_vm3, %v5552_v3, %v2022_v24  ;;  %v3756_v54 = vld [vmem:[%s6465_s5 + $0x10] sm:$0xf0]  ;;  %v2176_v18 = vmul.f32 %v6055_v39, %v2144_v34  ;;  %v2172_v26 = vmul.f32 %v6055_v39, %v2143_v48 }
 0x369   : > { %v2071_v3 = vmul.f32 %v6045_v41, %v2038_v8  ;;  %v2072_v24 = vmul.f32 %v6052_v46, %v2034_v62  ;;  %v6089_v5 = vor.u32 %v3756_v54, %v3444_v29  ;;  %v3734_v8 = vld [vmem:[#allocation4 + $0x230] sm:$0xf0]  ;;  %v3465_v31 = vor.u32 %v3760_v11, %v3462_v60 }
 0x36a   : > { %v2185_v21 = vpack.c.bf16 %v2176_v18, %v2175_v12  ;;  %v2183_v62 = vpack.c.bf16 %v2172_v26, %v2171_v61  ;;  %v3737_v54 = vor.u32 %v3828_v63, %v3734_v8  ;;  %v3436_v12 = vld [vmem:[%s6465_s5] sm:$0xf]  ;;  %v3718_v18 = vld [vmem:[#allocation4 + $0x210] sm:$0xf0]  ;;  %v3824_v26 = vld [vmem:[#allocation4 + $0x204] sm:$0xf] }
 0x36b   : > { %v2080_v56 = vpack.c.bf16 %v2072_v24, %v2071_v3  ;;  %2964 = vmatpush.bf16.msra.mxu0 %v3477_v23  ;;  %3021 = vmatpush.bf16.msra.mxu3 %v3481_v0  ;;  %v3755_v23 = vld [vmem:[%s6465_s5 + $0x8] sm:$0xf0] }
 0x36c   : > { %3746 = vmatmul.msk.bf16.vlgmr.msra.gmra.mxu2 %vm2951_vm8, %v6089_v5  ;;  %2193 = vst [vmem:[#allocation4 + $0x170] sm:$0xff] %v2185_v21  ;;  %v6109_v45 = vor.u32 %v3755_v23, %v3436_v12  ;;  %v3721_v21 = vor.u32 %v3824_v26, %v3718_v18  ;;  %v3456_v18 = vld [vmem:[%s6465_s5 + $0x20] sm:$0xf] }
 0x36d   : > { %2088 = vst [vmem:[#allocation4 + $0xf8] sm:$0xff] %v2080_v56 }
 0x36e   : > { %2191 = vst [vmem:[#allocation4 + $0x160] sm:$0xff] %v2183_v62  ;;  %v2114_v29 = vpop.permute.xlu1 %2113  ;;  %v6105_v24 = vpop.permute.xlu0 %2107 }
 0x36f   : > { %v2016_v34 = vpop.permute.xlu2 %2015  ;;  %2965 = vmatpush.bf16.msra.mxu0 %v3461_v28  ;;  %3022 = vmatpush.bf16.msra.mxu3 %v3465_v31  ;;  %v2145_v28 = vsel %vm475_vm4, %v5964_v33, %v2114_v29 }
 0x370   : > { %v2031_v0 = vsel %vm329_vm3, %v2016_v34, %v5530_v53  ;;  %v2035_v3 = vsel %vm329_vm3, %v5588_v55, %v2016_v34  ;;  %v6112_v53 = vperm.slane %v5890_v51, 2  ;;  %v2146_v55 = vsel %vm475_vm4, %v6105_v24, %v6000_v32 }
 0x371   : > { %v2059_v48 = vmul.f32 %v6045_v41, %v2035_v3  ;;  %v2060_v61 = vmul.f32 %v6052_v46, %v2031_v0  ;;  %v2167_v12 = vmul.f32 %v6042_v22, %v2146_v55 }
 0x372   : > { %2966 = vmatmul.bf16.vlgmr.msra.gmra.mxu0 %v6109_v45  ;;  %3023 = vmatmul.bf16.vlgmr.msra.gmra.mxu3 %v6109_v45 }
 0x373   : > { %3059 = vmatpush.bf16.msrb.mxu0 %v3737_v54  ;;  %v2074_v56 = vpack.c.bf16 %v2060_v61, %v2059_v48  ;;  %v3806_v11 = vld [vmem:[#allocation4 + $0x16c] sm:$0xf0]  ;;  %v3638_v60 = vld [vmem:[#allocation4 + $0x170] sm:$0xf0]  ;;  %v3759_v48 = vld [vmem:[%s6465_s5 + $0x28] sm:$0xf0] }
 0x374   : > { %v6153_v26 = vor.u32 %v3759_v48, %v3456_v18 }
 0x375   : > { %2082 = vst [vmem:[#allocation4 + $0xc8] sm:$0xff] %v2074_v56  ;;  %v3636_v62 = vld [vmem:[#allocation4 + $0x160] sm:$0xf]  ;;  %v3804_v8 = vld [vmem:[#allocation4 + $0x164] sm:$0xf]  ;;  %v2163_v56 = vmul.f32 %v6042_v22, %v2145_v28 }
 0x376   : > { %v6126_v63 = vpop.permute.xlu1 %2123  ;;  %v3637_v34 = vor.u32 %v3806_v11, %v3636_v62  ;;  %v3641_v54 = vor.u32 %v3804_v8, %v3638_v60  ;;  %v6139_v3 = vpop.permute.xlu0 %2121 }
 0x377   : > { %3060 = vmatpush.bf16.msrb.mxu0 %v3721_v21  ;;  %v2226_v31 = vpop.permute.xlu2 %2225  ;;  %v2142_v0 = vsel %vm475_vm4, %v6000_v32, %v6126_v63  ;;  %v2141_v32 = vsel %vm475_vm4, %v2114_v29, %v6139_v3 }
 0x378   : > { %v2230_v51 = vsel %vm564_vm5, %v5935_v35, %v2226_v31  ;;  %v2242_v23 = vsel %vm564_vm5, %v2226_v31, %v5796_v58  ;;  %v2168_v58 = vmul.f32 %v6055_v39, %v2142_v0  ;;  %2981 = vmatpush.bf16.msra.mxu1 %v3637_v34  ;;  %3038 = vmatpush.bf16.msrb.mxu2 %v3641_v54  ;;  %v3448_v34 = vld [vmem:[%s6465_s5 + $0x18] sm:$0xf] }
 0x379   : > { %v2267_v35 = vmul.f32 %v6112_v53, %v2230_v51  ;;  %v2268_v61 = vmul.f32 %v6121_v20, %v2242_v23  ;;  %v2164_v11 = vmul.f32 %v6055_v39, %v2141_v32  ;;  %v3798_v32 = vld [vmem:[#allocation4 + $0x12c] sm:$0xf0] }
 0x37a   : > { %v2181_v55 = vpack.c.bf16 %v2168_v58, %v2167_v12  ;;  %v3604_v58 = vld [vmem:[#allocation4 + $0x120] sm:$0xf] }
 0x37b   : > { %v2276_v21 = vpack.c.bf16 %v2268_v61, %v2267_v35  ;;  %v2179_v60 = vpack.c.bf16 %v2164_v11, %v2163_v56  ;;  %v6192_v61 = vperm.slane %v5704_v17, 2 }
 0x37c   : > { %3747 = vmatmul.msk.bf16.gmra.mxu2 %vm2951_vm8, %v6153_v26  ;;  %2189 = vst [vmem:[#allocation4 + $0x150] sm:$0xff] %v2181_v55 }
 0x37d   : > { %2284 = vst [vmem:[#allocation4 + $0x1b8] sm:$0xff] %v2276_v21 }
 0x37e   : > { %2187 = vst [vmem:[#allocation4 + $0x140] sm:$0xff] %v2179_v60  ;;  %v2020_v8 = vpop.permute.xlu1 %2019  ;;  %v2316_v31 = vpop.permute.xlu0 %2315 }
 0x37f   : > { %v2220_v62 = vpop.permute.xlu2 %2219  ;;  %v2033_v39 = vsel %vm329_vm3, %v2020_v8, %v5506_v49  ;;  %v2037_v28 = vsel %vm329_vm3, %v5554_v43, %v2020_v8  ;;  %v2320_v43 = vsel %vm653_vm6, %v5653_v42, %v2316_v31  ;;  %v2332_v51 = vsel %vm653_vm6, %v2316_v31, %v5550_v25 }
 0x380   : > { %v2227_v29 = vsel %vm564_vm5, %v5966_v19, %v2220_v62  ;;  %v2239_v22 = vsel %vm564_vm5, %v2220_v62, %v5954_v50  ;;  %v3758_v19 = vld [vmem:[%s6465_s5 + $0x20] sm:$0xf0]  ;;  %v2067_v12 = vmul.f32 %v6045_v41, %v2037_v28  ;;  %v2068_v49 = vmul.f32 %v6052_v46, %v2033_v39  ;;  %v3606_v28 = vld [vmem:[#allocation4 + $0x130] sm:$0xf0] }
 0x381   : > { %v2255_v54 = vmul.f32 %v6112_v53, %v2227_v29  ;;  %v2256_v50 = vmul.f32 %v6121_v20, %v2239_v22  ;;  %v6187_v23 = vor.u32 %v3758_v19, %v3448_v34  ;;  %v2357_v48 = vmul.f32 %v6021_v40, %v2320_v43  ;;  %v3796_v39 = vld [vmem:[#allocation4 + $0x124] sm:$0xf] }
 0x382   : > { %v2078_v18 = vpack.c.bf16 %v2068_v49, %v2067_v12  ;;  %v2358_v35 = vmul.f32 %v6024_v57, %v2332_v51  ;;  %v6197_v25 = vperm.slane %v5704_v17, 3  ;;  %v3605_v22 = vor.u32 %v3798_v32, %v3604_v58  ;;  %v3792_v58 = vld [vmem:[#allocation4 + $0x104] sm:$0xf]  ;;  %v3590_v32 = vld [vmem:[#allocation4 + $0x110] sm:$0xf0] }
 0x383   : > { %v2270_v0 = vpack.c.bf16 %v2256_v50, %v2255_v54  ;;  %2971 = vmatmul.bf16.gmra.mxu0 %v6187_v23  ;;  %3028 = vmatmul.bf16.gmra.mxu3 %v6187_v23  ;;  %v3802_v56 = vld [vmem:[#allocation4 + $0x14c] sm:$0xf0]  ;;  %v3622_v21 = vld [vmem:[#allocation4 + $0x150] sm:$0xf0]  ;;  %v3609_v43 = vor.u32 %v3796_v39, %v3606_v28 }
 0x384   : > { %v2366_v42 = vpack.c.bf16 %v2358_v35, %v2357_v48  ;;  %2086 = vst [vmem:[#allocation4 + $0xe8] sm:$0xff] %v2078_v18  ;;  %v3794_v35 = vld [vmem:[#allocation4 + $0x10c] sm:$0xf0] }
 0x385   : > { %2278 = vst [vmem:[#allocation4 + $0x188] sm:$0xff] %v2270_v0  ;;  %v3620_v55 = vld [vmem:[#allocation4 + $0x140] sm:$0xf]  ;;  %v3800_v11 = vld [vmem:[#allocation4 + $0x144] sm:$0xf] }
 0x386   : > { %2374 = vst [vmem:[#allocation4 + $0x1f8] sm:$0xff] %v2366_v42  ;;  %v2312_v62 = vpop.permute.xlu1 %2311  ;;  %v3621_v8 = vor.u32 %v3802_v56, %v3620_v55  ;;  %v3625_v29 = vor.u32 %v3800_v11, %v3622_v21  ;;  %v2310_v54 = vpop.permute.xlu0 %2309  ;;  %v3708_v42 = vld [vmem:[#allocation4 + $0x1e8] sm:$0xf]  ;;  %v3582_v56 = vld [vmem:[#allocation4 + $0xf8] sm:$0xf0] }
 0x387   : > { %v1928_v60 = vpop.permute.xlu2 %1927  ;;  %v2318_v34 = vsel %vm653_vm6, %v5783_v59, %v2312_v62  ;;  %v2330_v19 = vsel %vm653_vm6, %v2312_v62, %v5673_v9  ;;  %v2329_v59 = vsel %vm653_vm6, %v2310_v54, %v5744_v15  ;;  %v3588_v9 = vld [vmem:[#allocation4 + $0x100] sm:$0xf]  ;;  %v3438_v15 = vld [vmem:[%s6465_s5 + $0xc] sm:$0xf0]  ;;  %v3791_v62 = vld [vmem:[#allocation4 + $0xf4] sm:$0xf0] }
 0x388   : > { %v1942_v31 = vsel %vm240_vm1, %v1928_v60, %v5879_v13  ;;  %v1946_v17 = vsel %vm240_vm1, %v5850_v47, %v1928_v60  ;;  %v2349_v49 = vmul.f32 %v6021_v40, %v2318_v34  ;;  %v2350_v13 = vmul.f32 %v6024_v57, %v2330_v19  ;;  %2982 = vmatpush.bf16.msra.mxu1 %v3621_v8 }
 0x389   : > { %v1973_v50 = vmul.f32 %v6192_v61, %v1946_v17  ;;  %v1974_v12 = vmul.f32 %v6197_v25, %v1942_v31  ;;  %3039 = vmatpush.bf16.msrb.mxu2 %v3625_v29  ;;  %v2317_v47 = vsel %vm653_vm6, %v5692_v27, %v2310_v54  ;;  %v2346_v48 = vmul.f32 %v6024_v57, %v2329_v59  ;;  %v3754_v27 = vld [vmem:[%s6465_s5 + $0x4] sm:$0xf] }
 0x38a   : > { %v2362_v0 = vpack.c.bf16 %v2350_v13, %v2349_v49  ;;  %v2345_v18 = vmul.f32 %v6021_v40, %v2317_v47  ;;  %v3589_v60 = vor.u32 %v3794_v35, %v3588_v9  ;;  %v3593_v8 = vor.u32 %v3792_v58, %v3590_v32  ;;  %v6512_v58 = vld [vmem:[#allocation14_spill] sm:$0xff] }
 0x38b   : > { %v1986_v51 = vpack.c.bf16 %v1974_v12, %v1973_v50  ;;  %v3789_v55 = vld [vmem:[#allocation4 + $0xec] sm:$0xf]  ;;  %v3580_v40 = vld [vmem:[#allocation4 + $0xe8] sm:$0xf]  ;;  %v6231_v17 = vor.u32 %v3754_v27, %v3438_v15 }
 0x38c   : > { %v2360_v21 = vpack.c.bf16 %v2346_v48, %v2345_v18  ;;  %2983 = vmatpush.bf16.msra.mxu1 %v3605_v22  ;;  %2370 = vst [vmem:[#allocation4 + $0x1d8] sm:$0xff] %v2362_v0  ;;  %v6229_v11 = vor.u32 %v3789_v55, %v3582_v56  ;;  %v3581_v31 = vor.u32 %v3791_v62, %v3580_v40  ;;  %v6514_v55 = vld [vmem:[#allocation15_spill] sm:$0xff] }
 0x38d   : > { %1994 = vst [vmem:[#allocation4 + $0x98] sm:$0xff] %v1986_v51  ;;  %v3823_v57 = vld [vmem:[#allocation4 + $0x1f4] sm:$0xf0]  ;;  %3040 = vmatpush.bf16.msrb.mxu2 %v3609_v43  ;;  %v6264_v51 = vperm.slane %v6035_v7, 3  ;;  %v3876_v40 = vld [vmem:[#allocation2 + $0x10] sm:$0xff] }
 0x38e   : > { %2368 = vst [vmem:[#allocation4 + $0x1c8] sm:$0xff] %v2360_v21  ;;  %v2224_v39 = vpop.permute.xlu1 %2223  ;;  %v3709_v28 = vor.u32 %v3823_v57, %v3708_v42  ;;  %3129 = vmatpush.bf16.msra.mxu0 %v6229_v11  ;;  %v2018_v50 = vpop.permute.xlu0 %2017  ;;  %v6513_v21 = vld [vmem:[#allocation10_spill] sm:$0xff]  ;;  %v3877_v57 = vld [vmem:[#allocation2 + $0x38] sm:$0xff] }
 0x38f   : > { %v1840_v29 = vpop.permute.xlu2 %1839  ;;  %v2229_v19 = vsel %vm564_vm5, %v5815_v6, %v2224_v39  ;;  %v2241_v54 = vsel %vm564_vm5, %v2224_v39, %v5877_v1  ;;  %v2036_v6 = vsel %vm329_vm3, %v5586_v14, %v2018_v50 }
 0x390   : > { %v1853_v22 = vsel %vm151_vm2, %v1840_v29, %v5929_v10  ;;  %v1857_v34 = vsel %vm151_vm2, %v5520_v52, %v1840_v29  ;;  %v2263_v10 = vmul.f32 %v6112_v53, %v2229_v19  ;;  %v2264_v13 = vmul.f32 %v6121_v20, %v2241_v54  ;;  %3091 = vmatpush.bf16.msrb.mxu3 %v3709_v28  ;;  %v3757_v28 = vld [vmem:[%s6465_s5 + $0x1c] sm:$0xf]  ;;  %v3785_v19 = vld [vmem:[#allocation4 + $0xcc] sm:$0xf]  ;;  %v3564_v54 = vld [vmem:[#allocation4 + $0xc8] sm:$0xf] }
 0x391   : > { %v1887_v12 = vmul.f32 %v5987_v30, %v1857_v34  ;;  %v1888_v49 = vmul.f32 %v5990_v38, %v1853_v22  ;;  %v2032_v52 = vsel %vm329_vm3, %v2018_v50, %v5607_v44  ;;  %2984 = vmatpush.bf16.msra.mxu1 %v3589_v60  ;;  %3041 = vmatpush.bf16.msrb.mxu2 %v3593_v8  ;;  %v6261_v44 = vperm.slane %v6035_v7, 2  ;;  %v3878_v22 = vld [vmem:[%s6460_s2 + $0x7] ss:$8 sm:$0xf] }
 0x392   : > { %v2274_v47 = vpack.c.bf16 %v2264_v13, %v2263_v10  ;;  %v2063_v59 = vmul.f32 %v6045_v41, %v2036_v6  ;;  %v2064_v9 = vmul.f32 %v6052_v46, %v2032_v52  ;;  %v2094_v60 = vpack.c.bf16 %v3877_v57, %v3876_v40  ;;  %v3815_v10 = vld [vmem:[#allocation4 + $0x1b4] sm:$0xf0] }
 0x393   : > { %v1898_v1 = vpack.c.bf16 %v1888_v49, %v1887_v12  ;;  %3748 = vmatmul.msk.bf16.vlgmr.msrb.gmra.mxu0 %vm2951_vm8, %v6089_v5  ;;  %v3819_v14 = vld [vmem:[#allocation4 + $0x1d4] sm:$0xf0]  ;;  %v6301_v34 = vperm.slane %v3878_v22, 2  ;;  %v6303_v12 = vperm.slane %v3878_v22, 3 }
 0x394   : > { %v2076_v43 = vpack.c.bf16 %v2064_v9, %v2063_v59  ;;  %2985 = vmatmul.bf16.vlgmr.msra.gmra.mxu1 %v6231_v17  ;;  %3042 = vmatmul.bf16.vlgmr.msrb.gmra.mxu2 %v6231_v17  ;;  %2282 = vst [vmem:[#allocation4 + $0x1a8] sm:$0xff] %v2274_v47  ;;  %v3879_v47 = vld [vmem:[#allocation2 + $0x78] sm:$0xff]  ;;  %v3880_v59 = vld [vmem:[#allocation2 + $0x28] sm:$0xff] }
 0x395   : > { %3072 = vmatpush.bf16.msrb.mxu1 %v3581_v31  ;;  %1906 = vst [vmem:[#allocation4 + $0x68] sm:$0xff] %v1898_v1  ;;  %v3692_v41 = vld [vmem:[#allocation4 + $0x1c8] sm:$0xf]  ;;  %v2096_v9 = vpack.c.bf16 %v3880_v59, %v3879_v47 }
 0x396   : > { %2084 = vst [vmem:[#allocation4 + $0xd8] sm:$0xff] %v2076_v43  ;;  %v1932_v0 = vpop.permute.xlu1 %1931  ;;  %v3693_v18 = vor.u32 %v3819_v14, %v3692_v41  ;;  %v1930_v42 = vpop.permute.xlu0 %1929  ;;  %v3450_v31 = vld [vmem:[%s6465_s5 + $0x24] sm:$0xf0] }
 0x397   : > { %v2132_v46 = vpop.permute.xlu2 %2131  ;;  %v1944_v35 = vsel %vm240_vm1, %v1932_v0, %v5746_v4  ;;  %v1948_v32 = vsel %vm240_vm1, %v6512_v58, %v1932_v0  ;;  %v1947_v4 = vsel %vm240_vm1, %v6514_v55, %v1930_v42  ;;  %2102 = vst [vmem:[#allocation4 + $0x128] sm:$0xff] %v2094_v60  ;;  %v6305_v1 = vor.u32 %v3757_v28, %v3450_v31  ;;  %v3881_v0 = vld [vmem:[#allocation2 + $0x58] sm:$0xff] }
 0x398   : > { %v2138_v48 = vsel %vm475_vm4, %v6126_v63, %v2132_v46  ;;  %v2150_v7 = vsel %vm475_vm4, %v2132_v46, %v6105_v24  ;;  %v1981_v15 = vmul.f32 %v6192_v61, %v1948_v32  ;;  %v1982_v63 = vmul.f32 %v6197_v25, %v1944_v35  ;;  %3092 = vmatpush.bf16.msrb.mxu3 %v3693_v18  ;;  %v3882_v18 = vld [vmem:[#allocation2 + $0x18] sm:$0xff]  ;;  %v3884_v35 = vld [vmem:[#allocation2 + $0x48] sm:$0xff] }
 0x399   : > { %v2169_v56 = vmul.f32 %v6261_v44, %v2138_v48  ;;  %v2170_v27 = vmul.f32 %v6264_v51, %v2150_v7  ;;  %v1943_v24 = vsel %vm240_vm1, %v1930_v42, %v6513_v21  ;;  %v1977_v29 = vmul.f32 %v6192_v61, %v1947_v4  ;;  %v3883_v7 = vld [vmem:[#allocation2 + $0x8] sm:$0xff]  ;;  %v6515_v32 = vld [vmem:[#allocation12_spill] sm:$0xff]  ;;  %v6518_v21 = vld [vmem:[#allocation21_spill] sm:$0xff]  ;;  %2104 = vst [vmem:[#allocation4 + $0x138] sm:$0xff] %v2096_v9 }
 0x39a   : > { %v1990_v8 = vpack.c.bf16 %v1982_v63, %v1981_v15  ;;  %v1978_v39 = vmul.f32 %v6197_v25, %v1943_v24  ;;  %v2090_v48 = vpack.c.bf16 %v3882_v18, %v3881_v0  ;;  %v2092_v58 = vpack.c.bf16 %v3884_v35, %v3883_v7  ;;  %v6517_v15 = vld [vmem:[#allocation17_spill] sm:$0xff] }
 0x39b   : > { %v2182_v62 = vpack.c.bf16 %v2170_v27, %v2169_v56  ;;  %v3676_v49 = vld [vmem:[#allocation4 + $0x1a8] sm:$0xf]  ;;  %v6516_v56 = vld [vmem:[#allocation8_spill] sm:$0xff] }
 0x39c   : > { %v1988_v50 = vpack.c.bf16 %v1978_v39, %v1977_v29  ;;  %1998 = vst [vmem:[#allocation4 + $0xb8] sm:$0xff] %v1990_v8  ;;  %v3677_v13 = vor.u32 %v3815_v10, %v3676_v49  ;;  %v6520_v29 = vld [vmem:[#allocation23_spill] sm:$0xff] }
 0x39d   : > { %2190 = vst [vmem:[#allocation4 + $0x158] sm:$0xff] %v2182_v62  ;;  %v3566_v52 = vld [vmem:[#allocation4 + $0xd8] sm:$0xf0]  ;;  %v3787_v6 = vld [vmem:[#allocation4 + $0xd4] sm:$0xf0]  ;;  %v6519_v62 = vld [vmem:[#allocation22_spill] sm:$0xff] }
 0x39e   : > { %1996 = vst [vmem:[#allocation4 + $0xa8] sm:$0xff] %v1988_v50  ;;  %v1926_v14 = vpop.permute.xlu1 %1925  ;;  %v6307_v41 = vor.u32 %v3785_v19, %v3566_v52  ;;  %v3565_v46 = vor.u32 %v3787_v6, %v3564_v54  ;;  %3093 = vmatpush.bf16.msrb.mxu3 %v3677_v13  ;;  %v2222_v55 = vpop.permute.xlu0 %2221  ;;  %v6521_v6 = vld [vmem:[#allocation25_spill] sm:$0xff] }
 0x39f   : > { %v2406_v43 = vpop.permute.xlu2 %2405  ;;  %v1941_v63 = vsel %vm240_vm1, %v1926_v14, %v6517_v15  ;;  %v1945_v24 = vsel %vm240_vm1, %v6518_v21, %v1926_v14  ;;  %v2228_v8 = vsel %vm564_vm5, %v6519_v62, %v2222_v55  ;;  %v2240_v39 = vsel %vm564_vm5, %v2222_v55, %v6520_v29  ;;  %2098 = vst [vmem:[#allocation4 + $0x108] sm:$0xff] %v2090_v48  ;;  %v3534_v48 = vld [vmem:[#allocation4 + $0x98] sm:$0xf0] }
 0x3a0   : > { %v2410_v42 = vsel %vm742_vm7, %v6515_v32, %v2406_v43  ;;  %v2422_v27 = vsel %vm742_vm7, %v2406_v43, %v6516_v56  ;;  %v1969_v57 = vmul.f32 %v6192_v61, %v1945_v24  ;;  %v1970_v60 = vmul.f32 %v6197_v25, %v1941_v63  ;;  %3130 = vmatpush.bf16.msra.mxu0 %v6307_v41  ;;  %v6522_v24 = vld [vmem:[#allocation20_spill] sm:$0xff] }
 0x3a1   : > { %v2447_v4 = vmul.f32 %v6301_v34, %v2410_v42  ;;  %v2448_v40 = vmul.f32 %v6303_v12, %v2422_v27  ;;  %3073 = vmatpush.bf16.msrb.mxu1 %v3565_v46  ;;  %v2259_v22 = vmul.f32 %v6112_v53, %v2228_v8  ;;  %v2260_v61 = vmul.f32 %v6121_v20, %v2240_v39 }
 0x3a2   : > { %v1984_v31 = vpack.c.bf16 %v1970_v60, %v1969_v57  ;;  %2100 = vst [vmem:[#allocation4 + $0x118] sm:$0xff] %v2092_v58  ;;  %v3779_v58 = vld [vmem:[#allocation4 + $0x94] sm:$0xf0] }
 0x3a3   : > { %v2456_v28 = vpack.c.bf16 %v2448_v40, %v2447_v4  ;;  %3749 = vmatmul.msk.bf16.gmra.mxu0 %vm2951_vm8, %v6153_v26  ;;  %v2272_v25 = vpack.c.bf16 %v2260_v61, %v2259_v22  ;;  %v3550_v19 = vld [vmem:[#allocation4 + $0xb8] sm:$0xf0]  ;;  %v3783_v54 = vld [vmem:[#allocation4 + $0xb4] sm:$0xf0]  ;;  %v6523_v4 = vld [vmem:[#allocation6_spill] sm:$0xff] }
 0x3a4   : > { %2990 = vmatmul.bf16.gmra.mxu1 %v6305_v1  ;;  %3047 = vmatmul.bf16.gmra.mxu2 %v6305_v1  ;;  %1992 = vst [vmem:[#allocation4 + $0x88] sm:$0xff] %v1984_v31  ;;  %v6524_v61 = vld [vmem:[#allocation9_spill] sm:$0xff] }
 0x3a5   : > { %2464 = vst [vmem:[#allocation4 + $0x238] sm:$0xff] %v2456_v28  ;;  %v3781_v50 = vld [vmem:[#allocation4 + $0xac] sm:$0xf]  ;;  %v3548_v49 = vld [vmem:[#allocation4 + $0xa8] sm:$0xf] }
 0x3a6   : > { %2280 = vst [vmem:[#allocation4 + $0x198] sm:$0xff] %v2272_v25  ;;  %v6338_v53 = vor.u32 %v3781_v50, %v3550_v19  ;;  %v3549_v20 = vor.u32 %v3783_v54, %v3548_v49  ;;  %v2136_v10 = vpop.permute.xlu1 %2135  ;;  %v2134_v13 = vpop.permute.xlu0 %2133  ;;  %v6526_v19 = vld [vmem:[#allocation24_spill] sm:$0xff]  ;;  %v6527_v50 = vld [vmem:[#allocation7_spill] sm:$0xff] }
 0x3a7   : > { %v2140_v52 = vsel %vm475_vm4, %v6061_v2, %v2136_v10  ;;  %v2152_v47 = vsel %vm475_vm4, %v2136_v10, %v6521_v6  ;;  %v2139_v59 = vsel %vm475_vm4, %v6073_v36, %v2134_v13  ;;  %v2151_v9 = vsel %vm475_vm4, %v2134_v13, %v5927_v16  ;;  %v3660_v36 = vld [vmem:[#allocation4 + $0x188] sm:$0xf] }
 0x3a8   : > { %3131 = vmatpush.bf16.msra.mxu0 %v6338_v53  ;;  %v2177_v43 = vmul.f32 %v6261_v44, %v2140_v52  ;;  %v2178_v14 = vmul.f32 %v6264_v51, %v2152_v47  ;;  %v2173_v2 = vmul.f32 %v6261_v44, %v2139_v59  ;;  %v2174_v46 = vmul.f32 %v6264_v51, %v2151_v9  ;;  %v3773_v59 = vld [vmem:[#allocation4 + $0x6c] sm:$0xf]  ;;  %v3516_v9 = vld [vmem:[#allocation4 + $0x68] sm:$0xf] }
 0x3a9   : > { %3074 = vmatpush.bf16.msrb.mxu1 %v3549_v20 }
 0x3aa   : > { %v2186_v0 = vpack.c.bf16 %v2178_v14, %v2177_v43  ;;  %v2184_v18 = vpack.c.bf16 %v2174_v46, %v2173_v2  ;;  %v3612_v43 = vld [vmem:[#allocation4 + $0x128] sm:$0xf]  ;;  %v3803_v2 = vld [vmem:[#allocation4 + $0x154] sm:$0xf0] }
 0x3ab   : > { %v3777_v7 = vld [vmem:[#allocation4 + $0x8c] sm:$0xf]  ;;  %v3532_v35 = vld [vmem:[#allocation4 + $0x88] sm:$0xf]  ;;  %v3799_v46 = vld [vmem:[#allocation4 + $0x134] sm:$0xf0] }
 0x3ac   : > { %2194 = vst [vmem:[#allocation4 + $0x178] sm:$0xff] %v2186_v0  ;;  %v6357_v42 = vor.u32 %v3777_v7, %v3534_v48  ;;  %v3533_v16 = vor.u32 %v3779_v58, %v3532_v35 }
 0x3ad   : > { %v3811_v32 = vld [vmem:[#allocation4 + $0x194] sm:$0xf0]  ;;  %2192 = vst [vmem:[#allocation4 + $0x168] sm:$0xff] %v2184_v18 }
 0x3ae   : > { %v3661_v56 = vor.u32 %v3811_v32, %v3660_v36  ;;  %v2130_v27 = vpop.permute.xlu1 %2129  ;;  %3132 = vmatpush.bf16.msra.mxu0 %v6357_v42  ;;  %v1842_v15 = vpop.permute.xlu0 %1841  ;;  %3075 = vmatpush.bf16.msrb.mxu1 %v3533_v16  ;;  %v6528_v36 = vld [vmem:[#allocation19_spill] sm:$0xff]  ;;  %v6529_v16 = vld [vmem:[#allocation13_spill] sm:$0xff] }
 0x3af   : > { %v2137_v63 = vsel %vm475_vm4, %v6139_v3, %v2130_v27  ;;  %v2149_v21 = vsel %vm475_vm4, %v2130_v27, %v5964_v33  ;;  %v1854_v55 = vsel %vm151_vm2, %v1842_v15, %v6522_v24  ;;  %v1858_v40 = vsel %vm151_vm2, %v6523_v4, %v1842_v15  ;;  %v6530_v27 = vld [vmem:[#allocation16_spill] sm:$0xff]  ;;  %v3596_v24 = vld [vmem:[#allocation4 + $0x108] sm:$0xf] }
 0x3b0   : > { %3094 = vmatpush.bf16.msrb.mxu3 %v3661_v56  ;;  %v2165_v57 = vmul.f32 %v6261_v44, %v2137_v63  ;;  %v2166_v60 = vmul.f32 %v6264_v51, %v2149_v21  ;;  %v1891_v62 = vmul.f32 %v5987_v30, %v1858_v40  ;;  %v1892_v3 = vmul.f32 %v5990_v38, %v1854_v55  ;;  %v6525_v44 = vld [vmem:[#allocation11_spill] sm:$0xff]  ;;  %v6531_v63 = vld [vmem:[#allocation18_spill] sm:$0xff]  ;;  %v3795_v55 = vld [vmem:[#allocation4 + $0x114] sm:$0xf0] }
 0x3b2   : > { %v2180_v8 = vpack.c.bf16 %v2166_v60, %v2165_v57  ;;  %v1900_v29 = vpack.c.bf16 %v1892_v3, %v1891_v62 }
 0x3b3   : > { %v3807_v33 = vld [vmem:[#allocation4 + $0x174] sm:$0xf0] }
 0x3b4   : > { %2188 = vst [vmem:[#allocation4 + $0x148] sm:$0xff] %v2180_v8  ;;  %v3644_v39 = vld [vmem:[#allocation4 + $0x168] sm:$0xf] }
 0x3b5   : > { %1908 = vst [vmem:[#allocation4 + $0x78] sm:$0xff] %v1900_v29  ;;  %v3645_v28 = vor.u32 %v3807_v33, %v3644_v39  ;;  %v3500_v8 = vld [vmem:[#allocation4 + $0x48] sm:$0xf]  ;;  %v3597_v29 = vor.u32 %v3795_v55, %v3596_v24  ;;  %v3831_v33 = vld [vmem:[#allocation4 + $0x234] sm:$0xf0] }
 0x3b6   : > { %v2404_v31 = vpop.permute.xlu1 %2403  ;;  %v1838_v22 = vpop.permute.xlu0 %1837  ;;  %v3769_v39 = vld [vmem:[#allocation4 + $0x4c] sm:$0xf]  ;;  %v3614_v55 = vld [vmem:[#allocation4 + $0x138] sm:$0xf0] }
 0x3b7   : > { %v2409_v25 = vsel %vm742_vm7, %v6524_v61, %v2404_v31  ;;  %v2421_v51 = vsel %vm742_vm7, %v2404_v31, %v6525_v44  ;;  %3095 = vmatpush.bf16.msrb.mxu3 %v3645_v28  ;;  %v1852_v54 = vsel %vm151_vm2, %v1838_v22, %v6526_v19  ;;  %v1856_v49 = vsel %vm151_vm2, %v6527_v50, %v1838_v22  ;;  %v3742_v22 = vld [vmem:[#allocation4 + $0x238] sm:$0xf0]  ;;  %v3484_v50 = vld [vmem:[#allocation4 + $0x28] sm:$0xf] }
 0x3b8   : > { %v2443_v20 = vmul.f32 %v6301_v34, %v2409_v25  ;;  %v2444_v10 = vmul.f32 %v6303_v12, %v2421_v51  ;;  %v1883_v13 = vmul.f32 %v5987_v30, %v1856_v49  ;;  %v1884_v52 = vmul.f32 %v5990_v38, %v1852_v54  ;;  %v3486_v54 = vld [vmem:[#allocation4 + $0x38] sm:$0xf0]  ;;  %v3765_v49 = vld [vmem:[#allocation4 + $0x2c] sm:$0xf] }
 0x3b9   : > { %v3613_v38 = vor.u32 %v3799_v46, %v3612_v43 }
 0x3ba   : > { %v2454_v6 = vpack.c.bf16 %v2444_v10, %v2443_v20  ;;  %v1896_v47 = vpack.c.bf16 %v1884_v52, %v1883_v13  ;;  %v3489_v10 = vor.u32 %v3765_v49, %v3486_v54  ;;  %v3468_v13 = vld [vmem:[#allocation4 + $0x8] sm:$0xf]  ;;  %v3763_v52 = vld [vmem:[#allocation4 + $0x14] sm:$0xf0]  ;;  %v2550_v49 = vld [vmem:[#allocation3 + $0x30] sm:$0xff] }
 0x3bb   : > { %v3628_v14 = vld [vmem:[#allocation4 + $0x148] sm:$0xf]  ;;  %v3469_v46 = vor.u32 %v3763_v52, %v3468_v13  ;;  %v3801_v24 = vld [vmem:[#allocation4 + $0x14c] sm:$0xf]  ;;  %v2553_v13 = vld [vmem:[#allocation3 + $0x20] sm:$0xff] }
 0x3bc   : > { %2462 = vst [vmem:[#allocation4 + $0x228] sm:$0xff] %v2454_v6  ;;  %v3629_v0 = vor.u32 %v3803_v2, %v3628_v14  ;;  %v3518_v18 = vld [vmem:[#allocation4 + $0x78] sm:$0xf0]  ;;  %v3775_v48 = vld [vmem:[#allocation4 + $0x74] sm:$0xf0] }
 0x3bd   : > { %1904 = vst [vmem:[#allocation4 + $0x58] sm:$0xff] %v1896_v47  ;;  %v6392_v7 = vor.u32 %v3773_v59, %v3518_v18  ;;  %v3517_v35 = vor.u32 %v3775_v48, %v3516_v9  ;;  %v3470_v6 = vld [vmem:[#allocation4 + $0x18] sm:$0xf0]  ;;  %v3761_v59 = vld [vmem:[#allocation4 + $0xc] sm:$0xf] }
 0x3be   : > { %v2402_v58 = vpop.permute.xlu1 %2401  ;;  %3096 = vmatpush.bf16.msrb.mxu3 %v3629_v0  ;;  %v2400_v30 = vpop.permute.xlu0 %2399  ;;  %v3710_v2 = vld [vmem:[#allocation4 + $0x1f8] sm:$0xf0]  ;;  %v3473_v48 = vor.u32 %v3761_v59, %v3470_v6 }
 0x3bf   : > { %v2408_v32 = vsel %vm742_vm7, %v6528_v36, %v2402_v58  ;;  %v2420_v56 = vsel %vm742_vm7, %v2402_v58, %v6529_v16  ;;  %3133 = vmatpush.bf16.msra.mxu0 %v6392_v7  ;;  %v2407_v15 = vsel %vm742_vm7, %v6530_v27, %v2400_v30  ;;  %v2419_v21 = vsel %vm742_vm7, %v2400_v30, %v6531_v63  ;;  %v3817_v30 = vld [vmem:[#allocation4 + $0x1cc] sm:$0xf]  ;;  %v3678_v16 = vld [vmem:[#allocation4 + $0x1b8] sm:$0xf0] }
 0x3c0   : > { %v2439_v4 = vmul.f32 %v6301_v34, %v2408_v32  ;;  %v2440_v40 = vmul.f32 %v6303_v12, %v2420_v56  ;;  %v2435_v57 = vmul.f32 %v6301_v34, %v2407_v15  ;;  %v2436_v60 = vmul.f32 %v6303_v12, %v2419_v21  ;;  %3076 = vmatpush.bf16.msrb.mxu1 %v3517_v35  ;;  %v3767_v12 = vld [vmem:[#allocation4 + $0x34] sm:$0xf0]  ;;  %v3821_v35 = vld [vmem:[#allocation4 + $0x1ec] sm:$0xf]  ;;  %v3662_v27 = vld [vmem:[#allocation4 + $0x198] sm:$0xf0] }
 0x3c1   : > { %v3485_v20 = vor.u32 %v3767_v12, %v3484_v50  ;;  %v3713_v58 = vor.u32 %v3821_v35, %v3710_v2  ;;  %v3813_v32 = vld [vmem:[#allocation4 + $0x1ac] sm:$0xf]  ;;  %v3646_v21 = vld [vmem:[#allocation4 + $0x178] sm:$0xf0] }
 0x3c2   : > { %v2452_v62 = vpack.c.bf16 %v2440_v40, %v2439_v4  ;;  %v2450_v3 = vpack.c.bf16 %v2436_v60, %v2435_v57  ;;  %3097 = vmatpush.bf16.msrb.mxu3 %v3613_v38  ;;  %v3694_v38 = vld [vmem:[#allocation4 + $0x1d8] sm:$0xf0]  ;;  %v3681_v56 = vor.u32 %v3813_v32, %v3678_v16  ;;  %v3805_v63 = vld [vmem:[#allocation4 + $0x16c] sm:$0xf] }
 0x3c3   : > { %v3740_v28 = vld [vmem:[#allocation4 + $0x228] sm:$0xf]  ;;  %v3829_v31 = vld [vmem:[#allocation4 + $0x22c] sm:$0xf]  ;;  %v3697_v36 = vor.u32 %v3817_v30, %v3694_v38  ;;  %v3598_v57 = vld [vmem:[#allocation4 + $0x118] sm:$0xf0] }
 0x3c4   : > { %2460 = vst [vmem:[#allocation4 + $0x218] sm:$0xff] %v2452_v62  ;;  %v3771_v61 = vld [vmem:[#allocation4 + $0x54] sm:$0xf0]  ;;  %v3741_v25 = vor.u32 %v3831_v33, %v3740_v28  ;;  %v3502_v44 = vld [vmem:[#allocation4 + $0x58] sm:$0xf0]  ;;  %v3745_v51 = vor.u32 %v3829_v31, %v3742_v22  ;;  %v2545_v28 = vld [vmem:[#allocation3 + $0x28] sm:$0xff] }
 0x3c5   : > { %2458 = vst [vmem:[#allocation4 + $0x208] sm:$0xff] %v2450_v3  ;;  %v3501_v34 = vor.u32 %v3771_v61, %v3500_v8  ;;  %v6411_v19 = vor.u32 %v3769_v39, %v3502_v44 }
 0x3c6   : > { %3098 = vmatpush.bf16.msrb.mxu3 %v3597_v29  ;;  %3116 = vmatpush.bf16.msra.mxu2 %v3741_v25  ;;  %v2546_v25 = vld [vmem:[#allocation3 + $0x68] sm:$0xff] }
 0x3c7   : > { %3077 = vmatpush.bf16.msrb.mxu1 %v3501_v34  ;;  %3134 = vmatpush.bf16.msra.mxu0 %v6411_v19 }
 0x3c9   : > { %3099 = vmatmul.bf16.vlgmr.msrb.gmra.mxu3 %v6231_v17 }
 0x3ca   : > { %3173 = vmatpush.bf16.msra.mxu3 %v3745_v51  ;;  %v2549_v51 = vld [vmem:[#allocation3 + $0x48] sm:$0xff] }
 0x3cb   : > { %3078 = vmatpush.bf16.msrb.mxu1 %v3485_v20  ;;  %3135 = vmatpush.bf16.msra.mxu0 %v3489_v10  ;;  %v3827_v47 = vld [vmem:[#allocation4 + $0x214] sm:$0xf0]  ;;  %v3726_v9 = vld [vmem:[#allocation4 + $0x218] sm:$0xf0] }
 0x3cc   : > { %v3724_v43 = vld [vmem:[#allocation4 + $0x208] sm:$0xf]  ;;  %v3825_v14 = vld [vmem:[#allocation4 + $0x20c] sm:$0xf] }
 0x3cd   : > { %v3725_v0 = vor.u32 %v3827_v47, %v3724_v43  ;;  %v3729_v18 = vor.u32 %v3825_v14, %v3726_v9 }
 0x3cf   : > { %3079 = vmatpush.bf16.msrb.mxu1 %v3469_v46  ;;  %3117 = vmatpush.bf16.msra.mxu2 %v3725_v0 }
 0x3d0   : > { %3136 = vmatpush.bf16.msra.mxu0 %v3473_v48  ;;  %3174 = vmatpush.bf16.msra.mxu3 %v3729_v18  ;;  %v2554_v18 = vld [vmem:[#allocation3 + $0x78] sm:$0xff] }
 0x3d2   : > { %3750 = vmatmul.msk.bf16.vlgmr.msra.gmra.mxu2 %vm2951_vm8, %v6089_v5  ;;  %3080 = vmatmul.bf16.vlgmr.msrb.gmra.mxu1 %v6109_v45 }
 0x3d3   : > { %3832 = vmatpush.bf16.msrb.mxu2 %v6229_v11  ;;  %3148 = vmatpush.bf16.msra.mxu1 %v3713_v58  ;;  %v3809_v11 = vld [vmem:[#allocation4 + $0x18c] sm:$0xf]  ;;  %v2557_v58 = vld [vmem:[#allocation3] sm:$0xff] }
 0x3d4   : > { %3137 = vmatmul.bf16.vlgmr.msra.gmra.mxu0 %v6109_v45  ;;  %v3665_v15 = vor.u32 %v3809_v11, %v3662_v27  ;;  %v3649_v45 = vor.u32 %v3805_v63, %v3646_v21  ;;  %v2558_v63 = vld [vmem:[#allocation3 + $0x8] sm:$0xff] }
 0x3d7   : > { %3833 = vmatpush.bf16.msrb.mxu2 %v6307_v41  ;;  %3149 = vmatpush.bf16.msra.mxu1 %v3697_v36  ;;  %v3630_v41 = vld [vmem:[#allocation4 + $0x158] sm:$0xf0] }
 0x3d8   : > { %v3633_v4 = vor.u32 %v3801_v24, %v3630_v41 }
 0x3d9   : > { %3104 = vmatmul.bf16.gmra.mxu3 %v6305_v1 }
 0x3db   : > { %3834 = vmatpush.bf16.msrb.mxu2 %v6338_v53  ;;  %3150 = vmatpush.bf16.msra.mxu1 %v3681_v56  ;;  %v3797_v53 = vld [vmem:[#allocation4 + $0x12c] sm:$0xf] }
 0x3dc   : > { %v3617_v40 = vor.u32 %v3797_v53, %v3614_v55 }
 0x3df   : > { %3835 = vmatpush.bf16.msrb.mxu2 %v6357_v42  ;;  %3151 = vmatpush.bf16.msra.mxu1 %v3665_v15  ;;  %v3793_v42 = vld [vmem:[#allocation4 + $0x10c] sm:$0xf] }
 0x3e0   : > { %v3601_v60 = vor.u32 %v3793_v42, %v3598_v57 }
 0x3e2   : > { %3751 = vmatmul.msk.bf16.gmra.mxu2 %vm2951_vm8, %v6153_v26  ;;  %3085 = vmatmul.bf16.gmra.mxu1 %v6187_v23 }
 0x3e3   : > { %3836 = vmatpush.bf16.msrb.mxu2 %v6392_v7  ;;  %3152 = vmatpush.bf16.msra.mxu1 %v3649_v45 }
 0x3e7   : > { %3837 = vmatpush.bf16.msrb.mxu2 %v6411_v19  ;;  %3153 = vmatpush.bf16.msra.mxu1 %v3633_v4 }
 0x3e9   : > { %3752 = vmatmul.msk.bf16.vlgmr.msra.gmra.mxu3 %vm2951_vm8, %v6089_v5 }
 0x3eb   : > { %3838 = vmatpush.bf16.msrb.mxu2 %v3489_v10  ;;  %3154 = vmatpush.bf16.msra.mxu1 %v3617_v40 }
 0x3ef   : > { %3839 = vmatpush.bf16.msrb.mxu2 %v3473_v48  ;;  %3155 = vmatpush.bf16.msra.mxu1 %v3601_v60  ;;  %v3005_v7 = vpop.f32.mrf.mxu2  ;;  %v2967_v62 = vpop.f32.mrf.mxu0 }
 0x3f0   : > { %v2968_v22 = vadd.f32 %v2967_v62, %v2545_v28 }
 0x3f2   : > { %3156 = vmatmul.bf16.vlgmr.msra.gmra.mxu1 %v6231_v17  ;;  %3142 = vmatmul.bf16.vlgmr.msrb.gmra.mxu2 %v6187_v23 }
 0x3f5   : > { %v3024_v5 = vpop.f32.mrf.mxu3 }
 0x3f6   : > { %v3025_v34 = vadd.f32 %v3024_v5, %v2546_v25  ;;  %v2551_v5 = vld [vmem:[#allocation3 + $0x70] sm:$0xff] }
 0x3f7   : > { %v2969_v3 = vpop.f32.mrf.mxu0  ;;  %v3007_v8 = vpop.f32.mrf.mxu2 }
 0x3f8   : > { %v2970_v54 = vadd.f32 %v2969_v3, %v2549_v51  ;;  %v2547_v3 = vld [vmem:[#allocation3 + $0x10] sm:$0xff]  ;;  %v2555_v51 = vld [vmem:[#allocation3 + $0x18] sm:$0xff] }
 0x3f9   : > { %3753 = vmatmul.msk.bf16.gmra.mxu3 %vm2951_vm8, %v6153_v26 }
 0x3fd   : > { %v3026_v19 = vpop.f32.mrf.mxu3 }
 0x3fe   : > { %v3027_v59 = vadd.f32 %v3026_v19, %v2550_v49 }
 0x3ff   : > { %v3010_v33 = vpop.f32.mrf.mxu2 }
 0x400   : > { %v2972_v29 = vpop.f32.mrf.mxu0 }
 0x401   : > { %v2973_v43 = vadd.f32 %v2972_v29, %v2553_v13 }
 0x402   : > { %3161 = vmatmul.bf16.gmra.mxu1 %v6305_v1 }
 0x406   : > { %v3029_v2 = vpop.f32.mrf.mxu3 }
 0x407   : > { %v3012_v31 = vpop.f32.mrf.mxu2  ;;  %v3030_v36 = vadd.f32 %v3029_v2, %v2554_v18 }
 0x408   : > { %v2974_v39 = vpop.f32.mrf.mxu0 }
 0x409   : > { %v2975_v56 = vadd.f32 %v2974_v39, %v2557_v58 }
 0x40e   : > { %v3031_v21 = vpop.f32.mrf.mxu3 }
 0x40f   : > { %v3032_v55 = vadd.f32 %v3031_v21, %v2558_v63 }
 0x410   : > { %v3062_v44 = vpop.f32.mrf.mxu0 }
 0x411   : > { %v2986_v61 = vpop.f32.mrf.mxu1 }
 0x412   : > { %v2987_v17 = vadd.f32 %v2986_v61, %v2968_v22 }
 0x414   : > { %v3006_v23 = vadd.f32 %v3005_v7, %v2987_v17 }
 0x416   : > { %v3186_v12 = vmax.f32 %v3006_v23, 0.0 }
 0x417   : > { %v3043_v26 = vpop.f32.mrf.mxu2 }
 0x418   : > { %3202 = vst [vmem:[#allocation2 + $0x30] sm:$0xff] %v3186_v12  ;;  %v3044_v50 = vadd.f32 %v3043_v26, %v3025_v34  ;;  %v3064_v52 = vpop.f32.mrf.mxu0 }
 0x419   : > { %v2988_v1 = vpop.f32.mrf.mxu1 }
 0x41a   : > { %v2989_v20 = vadd.f32 %v2988_v1, %v2970_v54  ;;  %v3063_v10 = vadd.f32 %v3062_v44, %v3044_v50  ;;  %v2559_v1 = vld [vmem:[#allocation3 + $0x60] sm:$0xff] }
 0x41c   : > { %v3008_v6 = vadd.f32 %v3007_v8, %v2989_v20  ;;  %v3187_v47 = vmax.f32 %v3063_v10, 0.0 }
 0x41e   : > { %v3190_v9 = vmax.f32 %v3008_v6, 0.0  ;;  %3203 = vst [vmem:[#allocation2] sm:$0xff] %v3187_v47  ;;  %v2548_v47 = vld [vmem:[#allocation3 + $0x40] sm:$0xff] }
 0x41f   : > { %v3045_v14 = vpop.f32.mrf.mxu2 }
 0x420   : > { %3206 = vst [vmem:[#allocation2 + $0x50] sm:$0xff] %v3190_v9  ;;  %v3046_v46 = vadd.f32 %v3045_v14, %v3027_v59  ;;  %v3067_v32 = vpop.f32.mrf.mxu0 }
 0x421   : > { %v2991_v0 = vpop.f32.mrf.mxu1 }
 0x422   : > { %v2992_v48 = vadd.f32 %v2991_v0, %v2973_v43  ;;  %v3065_v35 = vadd.f32 %v3064_v52, %v3046_v46 }
 0x424   : > { %v3011_v30 = vadd.f32 %v3010_v33, %v2992_v48  ;;  %v3191_v38 = vmax.f32 %v3065_v35, 0.0  ;;  %v2552_v48 = vld [vmem:[#allocation3 + $0x38] sm:$0xff] }
 0x426   : > { %v3194_v16 = vmax.f32 %v3011_v30, 0.0  ;;  %3207 = vst [vmem:[#allocation2 + $0x68] sm:$0xff] %v3191_v38 }
 0x427   : > { %v3048_v27 = vpop.f32.mrf.mxu2 }
 0x428   : > { %3210 = vst [vmem:[#allocation2 + $0x40] sm:$0xff] %v3194_v16  ;;  %v3049_v11 = vadd.f32 %v3048_v27, %v3030_v36  ;;  %v3069_v42 = vpop.f32.mrf.mxu0 }
 0x429   : > { %v2993_v15 = vpop.f32.mrf.mxu1 }
 0x42a   : > { %v2994_v45 = vadd.f32 %v2993_v15, %v2975_v56  ;;  %v3068_v24 = vadd.f32 %v3067_v32, %v3049_v11  ;;  %v2556_v56 = vld [vmem:[#allocation3 + $0x58] sm:$0xff] }
 0x42c   : > { %v3013_v41 = vadd.f32 %v3012_v31, %v2994_v45  ;;  %v3195_v53 = vmax.f32 %v3068_v24, 0.0 }
 0x42e   : > { %v3198_v4 = vmax.f32 %v3013_v41, 0.0  ;;  %3211 = vst [vmem:[#allocation2 + $0x20] sm:$0xff] %v3195_v53  ;;  %v2560_v53 = vld [vmem:[#allocation3 + $0x50] sm:$0xff] }
 0x42f   : > { %v3050_v40 = vpop.f32.mrf.mxu2 }
 0x430   : > { %3214 = vst [vmem:[#allocation2 + $0x60] sm:$0xff] %v3198_v4  ;;  %v3051_v57 = vadd.f32 %v3050_v40, %v3032_v55 }
 0x432   : > { %v3070_v60 = vadd.f32 %v3069_v42, %v3051_v57 }
 0x434   : > { %v3199_v7 = vmax.f32 %v3070_v60, 0.0 }
 0x436   : > { %3215 = vst [vmem:[#allocation2 + $0x70] sm:$0xff] %v3199_v7 }
 0x44c   : > { %v3100_v62 = vpop.f32.mrf.mxu3 }
 0x44f   : > { %v3081_v8 = vpop.f32.mrf.mxu1 }
 0x450   : > { %v3082_v29 = vadd.f32 %v3081_v8, %v2547_v3  ;;  %v6532_v3 = vmov (%p1709_p0), 0   ;;  %v3236_v8 = vld [vmem:[%s6466_s8 + $0x10] sm:$0xff] (%p1709_p0) }
 0x451   : > { %v3138_v13 = vpop.f32.mrf.mxu0  ;;  %3886 = vset.pattern.permute.xlu1 (%p1709_p0), %v6532_v3  ;;  %3885 = vset.pattern.permute.xlu0 (%p1709_p0), %v6532_v3 }
 0x452   : > { %v3101_v33 = vadd.f32 %v3100_v62, %v3082_v29  ;;  %v3139_v9 = vadd.f32 %v3138_v13, %v2548_v47  ;;  %v3234_v29 = vld [vmem:[%s6466_s8] sm:$0xff] (%p1709_p0)  ;;  %3250 = vperm.xlu1 (%p1709_p0), %3886, %v3236_v8   ;;  %3887 = vset.pattern.permute.xlu2 (%p1709_p0), %v6532_v3 }
 0x453   :  { %3240 = vperm.xlu0 (%p1709_p0), %3885, %v3234_v29  }
 0x454   : > { %v3102_v39 = vpop.f32.mrf.mxu3 }
 0x455   : > { %v3119_v28 = vpop.f32.mrf.mxu2 }
 0x456   : > { %v3120_v31 = vadd.f32 %v3119_v28, %v3101_v33  ;;  %v3310_v33 = vld [vmem:[#allocation5] sm:$0x1] (%p1709_p0) }
 0x457   : > { %v3083_v22 = vpop.f32.mrf.mxu1  ;;  %3313 = vperm.xlu2 (%p1709_p0), %3887, %v3310_v33  }
 0x458   : > { %v3188_v61 = vmax.f32 %v3120_v31, 0.0  ;;  %v3084_v25 = vadd.f32 %v3083_v22, %v2551_v5  ;;  %v3218_v31 = vld [vmem:[#allocation2 + $0x30] sm:$0xff] (%p1709_p0)  ;;  %v3219_v22 = vld [vmem:[#allocation2] sm:$0xff] (%p1709_p0) }
 0x459   : > { %v3140_v35 = vpop.f32.mrf.mxu0 }
 0x45a   : > { %3204 = vst [vmem:[#allocation2 + $0x58] sm:$0xff] %v3188_v61  ;;  %v3103_v44 = vadd.f32 %v3102_v39, %v3084_v25  ;;  %v3141_v38 = vadd.f32 %v3140_v35, %v2552_v48  ;;  %v3235_v39 = vld [vmem:[%s6466_s8 + $0x8] sm:$0xff] (%p1709_p0)  ;;  %3255 = vperm.xlu1 (%p1709_p0), %3886, %v3237_v37   ;;  %v3226_v61 = vld [vmem:[#allocation2 + $0x40] sm:$0xff] (%p1709_p0) }
 0x45b   :  { %3245 = vperm.xlu0 (%p1709_p0), %3885, %v3235_v39  }
 0x45c   : > { %v3105_v23 = vpop.f32.mrf.mxu3 }
 0x45d   : > { %v3121_v17 = vpop.f32.mrf.mxu2 }
 0x45e   : > { %v3122_v34 = vadd.f32 %v3121_v17, %v3103_v44  ;;  %v3222_v17 = vld [vmem:[#allocation2 + $0x50] sm:$0xff] (%p1709_p0) }
 0x45f   : > { %v3086_v19 = vpop.f32.mrf.mxu1 }
 0x460   : > { %v3192_v12 = vmax.f32 %v3122_v34, 0.0  ;;  %v3087_v54 = vadd.f32 %v3086_v19, %v2555_v51  ;;  %v3223_v51 = vld [vmem:[#allocation2 + $0x68] sm:$0xff] (%p1709_p0)  ;;  %v3227_v19 = vld [vmem:[#allocation2 + $0x20] sm:$0xff] (%p1709_p0) }
 0x461   :  { %v3220_v25 = vld [vmem:[#allocation2 + $0x58] sm:$0xff] (%p1709_p0) }
 0x462   : > { %3208 = vst [vmem:[#allocation2 + $0x8] sm:$0xff] %v3192_v12  ;;  %v3106_v26 = vadd.f32 %v3105_v23, %v3087_v54 }
 0x464   : > { %v3107_v49 = vpop.f32.mrf.mxu3 }
 0x465   : > { %v3124_v50 = vpop.f32.mrf.mxu2 }
 0x466   : > { %v3125_v20 = vadd.f32 %v3124_v50, %v3106_v26 }
 0x467   : > { %v3088_v10 = vpop.f32.mrf.mxu1 }
 0x468   : > { %v3196_v52 = vmax.f32 %v3125_v20, 0.0  ;;  %v3089_v6 = vadd.f32 %v3088_v10, %v2559_v1  ;;  %v3230_v10 = vld [vmem:[#allocation2 + $0x60] sm:$0xff] (%p1709_p0) }
 0x469   :  { %v3224_v23 = vld [vmem:[#allocation2 + $0x8] sm:$0xff] (%p1709_p0) }
 0x46a   : > { %3212 = vst [vmem:[#allocation2 + $0x10] sm:$0xff] %v3196_v52  ;;  %v3108_v59 = vadd.f32 %v3107_v49, %v3089_v6  ;;  %v3231_v52 = vld [vmem:[#allocation2 + $0x70] sm:$0xff] (%p1709_p0) }
 0x46c   : > { %v3176_v14 = vpop.f32.mrf.mxu3 }
 0x46d   : > { %v3126_v43 = vpop.f32.mrf.mxu2 }
 0x46e   : > { %v3127_v2 = vadd.f32 %v3126_v43, %v3108_v59 }
 0x46f   : > { %v3157_v46 = vpop.f32.mrf.mxu1 }
 0x470   : > { %v3200_v0 = vmax.f32 %v3127_v2, 0.0  ;;  %v3158_v18 = vadd.f32 %v3157_v46, %v3139_v9 }
 0x471   :  { %v3228_v12 = vld [vmem:[#allocation2 + $0x10] sm:$0xff] (%p1709_p0) }
 0x472   : > { %3216 = vst [vmem:[#allocation2 + $0x78] sm:$0xff] %v3200_v0  ;;  %v3177_v58 = vadd.f32 %v3176_v14, %v3158_v18 }
 0x474   : > { %v3189_v30 = vmax.f32 %v3177_v58, 0.0  ;;  %v3178_v36 = vpop.f32.mrf.mxu3 }
 0x475   : > { %v3143_v27 = vpop.f32.mrf.mxu2 }
 0x476   : > { %3205 = vst [vmem:[#allocation2 + $0x18] sm:$0xff] %v3189_v30  ;;  %v3144_v63 = vadd.f32 %v3143_v27, %v2556_v56 }
 0x477   : > { %v3159_v32 = vpop.f32.mrf.mxu1 }
 0x478   : > { %v3160_v16 = vadd.f32 %v3159_v32, %v3141_v38 }
 0x479   :  { %v3232_v6 = vld [vmem:[#allocation2 + $0x78] sm:$0xff] (%p1709_p0) }
 0x47a   : > { %v3179_v11 = vadd.f32 %v3178_v36, %v3160_v16 }
 0x47c   : > { %v3193_v15 = vmax.f32 %v3179_v11, 0.0  ;;  %v3181_v45 = vpop.f32.mrf.mxu3 }
 0x47d   : > { %v3145_v55 = vpop.f32.mrf.mxu2  ;;  %v3221_v44 = vld [vmem:[#allocation2 + $0x18] sm:$0xff] (%p1709_p0) }
 0x47e   : > { %3209 = vst [vmem:[#allocation2 + $0x48] sm:$0xff] %v3193_v15  ;;  %v3146_v40 = vadd.f32 %v3145_v55, %v2560_v53 }
 0x47f   : > { %v3162_v21 = vpop.f32.mrf.mxu1 }
 0x480   : > { %v3163_v24 = vadd.f32 %v3162_v21, %v3144_v63 }
 0x482   : > { %v3182_v41 = vadd.f32 %v3181_v45, %v3163_v24 }
 0x484   : > { %v3197_v4 = vmax.f32 %v3182_v41, 0.0  ;;  %v3183_v60 = vpop.f32.mrf.mxu3 }
 0x485   :  { %v3225_v34 = vld [vmem:[#allocation2 + $0x48] sm:$0xff] (%p1709_p0) }
 0x486   : > { %3213 = vst [vmem:[#allocation2 + $0x38] sm:$0xff] %v3197_v4 }
 0x487   : > { %v3164_v42 = vpop.f32.mrf.mxu1 }
 0x488   : > { %v3165_v57 = vadd.f32 %v3164_v42, %v3146_v40 }
 0x48a   : > { %v3184_v7 = vadd.f32 %v3183_v60, %v3165_v57  ;;  %1711 = sbr.rel (!%p1709_p0) target bundleno = 507 (0x1fb), region = 90 }
 0x48c   : > { %v3201_v62 = vmax.f32 %v3184_v7, 0.0 }
 0x48d   :  { %v3229_v54 = vld [vmem:[#allocation2 + $0x38] sm:$0xff] (%p1709_p0) }
 0x48e   : > { %3217 = vst [vmem:[#allocation2 + $0x28] sm:$0xff] %v3201_v62 }
 0x495   :  { %v3233_v47 = vld [vmem:[#allocation2 + $0x28] sm:$0xff] }
 0x4b1   :  { %v3314_v29 = vpop.permute.xlu2 %3313 }
 0x4c4   :  { %v3251_v28 = vpop.permute.xlu1 %3250 }
 0x4c5   :  { %v3241_v5 = vpop.permute.xlu0 %3240  ;;  %v3266_v2 = vmul.f32 %v3251_v28, %v3226_v61  ;;  %v3267_v46 = vmul.f32 %v3251_v28, %v3227_v19  ;;  %v3268_v0 = vmul.f32 %v3251_v28, %v3228_v12  ;;  %v3269_v18 = vmul.f32 %v3251_v28, %v3229_v54 }
 0x4c6   :  { %v3258_v50 = vmul.f32 %v3241_v5, %v3218_v31  ;;  %v3259_v1 = vmul.f32 %v3241_v5, %v3219_v22  ;;  %v3260_v49 = vmul.f32 %v3241_v5, %v3220_v25  ;;  %v3261_v20 = vmul.f32 %v3241_v5, %v3221_v44 }
 0x4c7   :  { %v3316_v5 = vperm.slane %v3314_v29, 0 }
 0x4cc   :  { %v3256_v13 = vpop.permute.xlu1 %3255 }
 0x4cd   :  { %v3246_v26 = vpop.permute.xlu0 %3245  ;;  %v3270_v38 = vmul.f32 %v3256_v13, %v3230_v10  ;;  %v3271_v36 = vmul.f32 %v3256_v13, %v3231_v52  ;;  %v3272_v32 = vmul.f32 %v3256_v13, %v3232_v6  ;;  %v3273_v16 = vmul.f32 %v3256_v13, %v3233_v47 }
 0x4ce   :  { %v3262_v59 = vmul.f32 %v3246_v26, %v3222_v17  ;;  %v3263_v9 = vmul.f32 %v3246_v26, %v3223_v51  ;;  %v3264_v43 = vmul.f32 %v3246_v26, %v3224_v23  ;;  %v3265_v14 = vmul.f32 %v3246_v26, %v3225_v34 }
 0x4d0   :  { %v3274_v48 = vadd.f32 %v3262_v59, %v3258_v50  ;;  %v3283_v35 = vadd.f32 %v3263_v9, %v3259_v1  ;;  %v3292_v58 = vadd.f32 %v3264_v43, %v3260_v49  ;;  %v3301_v30 = vadd.f32 %v3265_v14, %v3261_v20 }
 0x4d1   :  { %v6533_v49 = vlaneseq }
 0x4d2   :  { %v3275_v56 = vadd.f32 %v3274_v48, %v3266_v2  ;;  %v3284_v27 = vadd.f32 %v3283_v35, %v3267_v46  ;;  %v3293_v11 = vadd.f32 %v3292_v58, %v3268_v0  ;;  %v3302_v15 = vadd.f32 %v3301_v30, %v3269_v18 }
 0x4d3   :  { %vm3337_vm12 = vcmp.lt.s32.totalorder %v6533_v49, 512 }
 0x4d4   :  { %v3276_v63 = vadd.f32 %v3275_v56, %v3270_v38  ;;  %v3285_v21 = vadd.f32 %v3284_v27, %v3271_v36  ;;  %v3294_v45 = vadd.f32 %v3293_v11, %v3272_v32  ;;  %v3303_v24 = vadd.f32 %v3302_v15, %v3273_v16 }
 0x4d6   :  { %v3277_v41 = vrot.slane %v3276_v63, 4  ;;  %v3286_v53 = vrot.slane %v3285_v21, 4  ;;  %v3295_v55 = vrot.slane %v3294_v45, 4  ;;  %v3304_v4 = vrot.slane %v3303_v24, 4 }
 0x4d8   :  { %v3278_v40 = vadd.f32 %v3277_v41, %v3276_v63  ;;  %v3287_v42 = vadd.f32 %v3286_v53, %v3285_v21  ;;  %v3296_v57 = vadd.f32 %v3295_v55, %v3294_v45  ;;  %v3305_v60 = vadd.f32 %v3304_v4, %v3303_v24 }
 0x4da   :  { %v3279_v7 = vrot.slane %v3278_v40, 2  ;;  %v3288_v62 = vrot.slane %v3287_v42, 2  ;;  %v3297_v3 = vrot.slane %v3296_v57, 2  ;;  %v3306_v8 = vrot.slane %v3305_v60, 2 }
 0x4dc   :  { %v3280_v33 = vadd.f32 %v3279_v7, %v3278_v40  ;;  %v3289_v37 = vadd.f32 %v3288_v62, %v3287_v42  ;;  %v3298_v39 = vadd.f32 %v3297_v3, %v3296_v57  ;;  %v3307_v28 = vadd.f32 %v3306_v8, %v3305_v60 }
 0x4de   :  { %v3281_v31 = vrot.slane %v3280_v33, 1  ;;  %v3290_v22 = vrot.slane %v3289_v37, 1  ;;  %v3299_v61 = vrot.slane %v3298_v39, 1  ;;  %v3308_v25 = vrot.slane %v3307_v28, 1 }
 0x4e0   :  { %v3282_v44 = vadd.f32 %v3281_v31, %v3280_v33  ;;  %v3291_v17 = vadd.f32 %v3290_v22, %v3289_v37  ;;  %v3300_v51 = vadd.f32 %v3299_v61, %v3298_v39  ;;  %v3309_v23 = vadd.f32 %v3308_v25, %v3307_v28 }
 0x4e2   :  { %v3318_v34 = vadd.f32 %v3316_v5, %v3291_v17  ;;  %v3319_v19 = vadd.f32 %v3316_v5, %v3300_v51  ;;  %v3320_v12 = vadd.f32 %v3316_v5, %v3309_v23  ;;  %v3317_v54 = vadd.f32 %v3316_v5, %v3282_v44 }
 0x4e4   :  { %v3325_v26 = vrot.slane %v3318_v34, 7  ;;  %v3326_v50 = vrot.slane %v3319_v19, 6  ;;  %v3327_v1 = vrot.slane %v3320_v12, 5 }
 0x4e6   :  { %v3329_v20 = vsel %vm3328_vm9, %v3317_v54, %v3325_v26  ;;  %v3331_v10 = vsel %vm3330_vm10, %v3326_v50, %v3327_v1 }
 0x4e7   :  { %v3333_v13 = vsel %vm3332_vm11, %v3329_v20, %v3331_v10 }
 0x4e8   :  { %3339 = vst.msk [vmem:[%s6467_s10] sm:$0xf] %vm3337_vm12, %v3333_v13 }

</bundles_post_ra>
